<compile_context>
chip_gen: v7x
topology: tpu7x:2x2x1
jax: 0.10.0
libtpu: 0.0.40
codegen_flags: <defaults>
</compile_context>

<pallas_src>
import functools

import jax
import jax.numpy as jnp
from jax.experimental import pallas as pl
from jax.experimental.pallas import tpu as pltpu

# ----------------------------- synthetic SigLIP config -----------------------------
IMAGE_SIZE = 16
PATCH_SIZE = 4
NUM_CHANNELS = 3
HIDDEN = 32
NUM_HEADS = 4
HEAD_DIM = HIDDEN // NUM_HEADS
INTERMEDIATE = 64
NUM_LAYERS = 3
NUM_PATCHES = (IMAGE_SIZE // PATCH_SIZE) ** 2  # 16
PATCH_DIM = NUM_CHANNELS * PATCH_SIZE * PATCH_SIZE  # 48

SELECT_LAYER = -2
SELECT_FEATURE = "patch"
LN_EPS = 1e-6


# ----------------------------- in-kernel helpers -----------------------------
def _layernorm(x, w, b):
    mu = jnp.mean(x, axis=-1, keepdims=True)
    var = jnp.mean((x - mu) ** 2, axis=-1, keepdims=True)
    return (x - mu) * jax.lax.rsqrt(var + LN_EPS) * w + b


# ----------------------------- fused tower kernel -----------------------------
def _tower_kernel(
    patches_ref,          # [N, K]      bf16   (N = V*B*S rows, views folded into batch)
    pw_ref,               # [K, D]      bf16   patch-conv weight (flattened)
    posb_ref,             # [N, D]      f32    pos-emb + conv-bias, pre-tiled per image
    wqkv_ref,             # [L, D, 3D]  bf16   fused q|k|v projection
    wo_ref,               # [L, D, D]   bf16
    w1_ref,               # [L, D, I]   bf16
    w2_ref,               # [L, I, D]   bf16
    vecs_ref,             # [L, 8, 128] f32    packed ln1w,ln1b,bqkv,bo,ln2w,ln2b,b1,b2
    o_ref,                # [N, D]      f32
    *, n_img, seq, hidden, inter, num_heads, head_dim, num_layers,
):
    f32 = jnp.float32
    bf16 = jnp.bfloat16
    n = n_img * seq

    # ---- fused patch embedding: conv-as-matmul + (bias + position embedding) ----
    x = jnp.dot(patches_ref[...], pw_ref[...], preferred_element_type=f32) + posb_ref[...]

    # ---- per-head lane masks (heads live in lane groups of head_dim within D) ----
    # Built once; masking replaces per-head lane slicing (no cross-lane relayouts).
    lane = jax.lax.broadcasted_iota(jnp.int32, (1, hidden), 1)
    scale = head_dim ** -0.5
    q_masks, v_masks = [], []
    for h in range(num_heads):
        m = jnp.logical_and(lane >= h * head_dim, lane < (h + 1) * head_dim).astype(f32)
        v_masks.append(m)
        q_masks.append(m * scale)   # fold the attention scale into the q mask

    # ---- encoder layers: static unroll, all weights resident in VMEM ----
    for l in range(num_layers):
        wqkv = wqkv_ref[l]
        wo = wo_ref[l]
        w1 = w1_ref[l]
        w2 = w2_ref[l]
        ln1w = vecs_ref[l, 0:1, :hidden]
        ln1b = vecs_ref[l, 1:2, :hidden]
        bqkv = vecs_ref[l, 2:3, :3 * hidden]
        bo = vecs_ref[l, 3:4, :hidden]
        ln2w = vecs_ref[l, 4:5, :hidden]
        ln2b = vecs_ref[l, 5:6, :hidden]
        b1 = vecs_ref[l, 6:7, :inter]
        b2 = vecs_ref[l, 7:8, :hidden]

        # ---- self attention (pre-LN), fused QKV projection ----
        h_ln = _layernorm(x, ln1w, ln1b)
        qkv = jnp.dot(h_ln.astype(bf16), wqkv, preferred_element_type=f32) + bqkv  # [n, 3D]
        q3 = qkv[:, :hidden].reshape(n_img, seq, hidden)
        k3 = qkv[:, hidden:2 * hidden].reshape(n_img, seq, hidden)
        v3 = qkv[:, 2 * hidden:].reshape(n_img, seq, hidden)
        k_bf = k3.astype(bf16)

        ctx = None
        for h in range(num_heads):                       # compile-time unrolled (4 heads)
            qh = (q3 * q_masks[h]).astype(bf16)          # only this head's lanes survive
            vh = (v3 * v_masks[h]).astype(bf16)          # head's ctx lands in its lanes
            s = jnp.einsum("bqd,bkd->bqk", qh, k_bf, preferred_element_type=f32)
            s = s - jnp.max(s, axis=-1, keepdims=True)
            p = jnp.exp(s)
            p = p * pl.reciprocal(jnp.sum(p, axis=-1, keepdims=True), approx=True)
            c = jnp.einsum("bqk,bkd->bqd", p.astype(bf16), vh, preferred_element_type=f32)
            ctx = c if ctx is None else ctx + c          # exact: other lanes are zero
        ctx2 = ctx.reshape(n, hidden)
        # single output projection, effective K = D (not 4x K = head_dim)
        x = x + jnp.dot(ctx2.astype(bf16), wo, preferred_element_type=f32) + bo

        # ---- MLP (pre-LN, gelu_pytorch_tanh) ----
        h2 = _layernorm(x, ln2w, ln2b)
        m1 = jnp.dot(h2.astype(bf16), w1, preferred_element_type=f32) + b1
        m1 = jax.nn.gelu(m1, approximate=True)
        x = x + jnp.dot(m1.astype(bf16), w2, preferred_element_type=f32) + b2

    # TODO(synk): a lane-dense output layout (e.g. [N*D/128, 128]) would avoid the masked
    # 32-lane stores, but requires a lane-changing reshape whose Mosaic lowering is not
    # guaranteed at these tiny dims; the dense [N, D] store costs only a few KB here.
    o_ref[...] = x


# ----------------------------- wrapper / weight staging -----------------------------
def _pack_layer_vecs(layers, num_layers):
    """Pack the ten tiny per-layer vectors into one [L, 8, 128] f32 operand."""
    def pad_row(v):
        v = jnp.asarray(v, jnp.float32).reshape(1, -1)
        return jnp.pad(v, ((0, 0), (0, 128 - v.shape[1])))

    rows = []
    for i in range(num_layers):
        lay = layers[i]
        bqkv = jnp.concatenate([lay["bq"], lay["bk"], lay["bv"]], axis=1)
        rows.append(jnp.concatenate([
            pad_row(lay["ln1_w"]), pad_row(lay["ln1_b"]), pad_row(bqkv), pad_row(lay["bo"]),
            pad_row(lay["ln2_w"]), pad_row(lay["ln2_b"]), pad_row(lay["b1"]), pad_row(lay["b2"]),
        ], axis=0))
    return jnp.stack(rows)                                   # [L, 8, 128]


def siglip_tower_hidden(patches2d, params, num_layers_used, *, n_img, seq):
    """patches2d: [N, K] with N = n_img*seq -> hidden_states[num_layers_used] as [N, D]."""
    N, K = patches2d.shape
    D, I, L = HIDDEN, INTERMEDIATE, num_layers_used
    assert 3 * D <= 128 and I <= 128, "packed-vector rows must fit in 128 lanes"

    layers = params["layers"]
    wqkv = jnp.stack([
        jnp.concatenate([layers[i]["wq"], layers[i]["wk"], layers[i]["wv"]], axis=1)
        for i in range(L)]).astype(jnp.bfloat16)             # [L, D, 3D]
    wo = jnp.stack([layers[i]["wo"] for i in range(L)]).astype(jnp.bfloat16)
    w1 = jnp.stack([layers[i]["w1"] for i in range(L)]).astype(jnp.bfloat16)
    w2 = jnp.stack([layers[i]["w2"] for i in range(L)]).astype(jnp.bfloat16)
    vecs = _pack_layer_vecs(layers, L)

    pw = params["patch_w"].astype(jnp.bfloat16)              # [K, D]
    # pos emb + conv bias, pre-tiled to the folded row layout -> one f32 add in-kernel.
    posb = jnp.tile(params["pos_emb"] + params["patch_b"], (n_img, 1)).astype(jnp.float32)
    patches_bf = patches2d.astype(jnp.bfloat16)

    kernel = functools.partial(
        _tower_kernel, n_img=n_img, seq=seq, hidden=D, inter=I,
        num_heads=NUM_HEADS, head_dim=HEAD_DIM, num_layers=L,
    )

    def full(shape):
        return pl.BlockSpec(shape, lambda i, _s=shape: (0,) * len(_s))

    # Single grid step: every operand is a fully resident VMEM block (total < 100 KB).
    return pl.pallas_call(
        kernel,
        out_shape=jax.ShapeDtypeStruct((N, D), jnp.float32),
        grid=(1,),
        in_specs=[
            full((N, K)),            # patches
            full((K, D)),            # patch conv weight
            full((N, D)),            # pos emb + conv bias (tiled)
            full((L, D, 3 * D)),     # fused qkv weights
            full((L, D, D)),         # out-proj weights
            full((L, D, I)),         # fc1 weights
            full((L, I, D)),         # fc2 weights
            full((L, 8, 128)),       # packed small vectors
        ],
        out_specs=full((N, D)),
        compiler_params=pltpu.CompilerParams(dimension_semantics=("arbitrary",)),
    )(patches_bf, pw, posb, wqkv, wo, w1, w2, vecs)


# ----------------------------- plain-JAX glue -----------------------------
def extract_patches(images):
    """images: [N, C, H, W] (NCHW) -> [N, Np, C*P*P] with (C, ph, pw) flatten order,
    matching a Conv2d(kernel=P, stride=P) weight flattened over (C, kh, kw)."""
    N, C, H, W = images.shape
    P = PATCH_SIZE
    x = images.reshape(N, C, H // P, P, W // P, P)
    x = x.transpose(0, 2, 4, 1, 3, 5)          # [N, Hp, Wp, C, P, P]
    return x.reshape(N, (H // P) * (W // P), C * P * P)


def _num_encoder_layers_needed(select_layer, num_layers):
    # hidden_states has num_layers + 1 entries (embedding + each layer output);
    # hidden_states[idx] needs exactly `idx` encoder layers.
    idx = int(select_layer)
    if idx < 0:
        idx = num_layers + 1 + idx
    if not (1 <= idx <= num_layers):
        raise ValueError(f"Unsupported select_layer: {select_layer}")
    return idx


def siglip_vision_tower_forward(images, params,
                                select_layer=SELECT_LAYER,
                                select_feature=SELECT_FEATURE):
    """images: [2, B, C, H, W] -> features [2, B, 1, S', D]."""
    if images.shape[0] != 2:
        raise ValueError(
            f"Expected images.shape[0] == 2, but got {images.shape[0]}. "
            "Ensure the input includes both current and previous images.")
    if select_layer == "all":
        # TODO(synk): the 'all'-layers path needs per-layer output slabs; not required
        # for the configured select_layer=-2 and omitted from the fused kernel.
        raise NotImplementedError("select_layer='all' not supported by the fused kernel")

    V, B, C, H, W = images.shape
    patches = extract_patches(images.reshape(V * B, C, H, W))        # [V*B, S, K]
    S, K = patches.shape[1], patches.shape[2]

    # Only run the layers actually consumed (skips the dead last layer for -2).
    n_layers = _num_encoder_layers_needed(select_layer, NUM_LAYERS)
    hidden = siglip_tower_hidden(patches.reshape(V * B * S, K), params, n_layers,
                                 n_img=V * B, seq=S)                 # [V*B*S, D]
    hidden = hidden.reshape(V, B, S, HIDDEN)

    if select_feature == "patch":
        hidden = hidden[:, :, 1:, :]
    elif select_feature == "cls_patch":
        pass
    else:
        raise ValueError(f"Unexpected select feature: {select_feature}")

    # torch.stack([sel]).permute(1,0,2,3) per view, then stack the two views:
    return hidden[:, :, None, :, :]                                  # [2, B, 1, S', D]


# ----------------------------- deterministic param init -----------------------------
def init_params(key):
    def nrm(k, shape, scale=0.02):
        return (scale * jax.random.normal(k, shape)).astype(jnp.float32)

    keys = jax.random.split(key, 3 + NUM_LAYERS)
    params = {
        "patch_w": nrm(keys[0], (PATCH_DIM, HIDDEN)),   # conv weight flattened [C*P*P, D]
        "patch_b": jnp.zeros((1, HIDDEN), jnp.float32),
        "pos_emb": nrm(keys[1], (NUM_PATCHES, HIDDEN)),
        "layers": [],
    }
    for li in range(NUM_LAYERS):
        lk = jax.random.split(keys[3 + li], 6)
        params["layers"].append({
            "ln1_w": jnp.ones((1, HIDDEN), jnp.float32),
            "ln1_b": jnp.zeros((1, HIDDEN), jnp.float32),
            "wq": nrm(lk[0], (HIDDEN, HIDDEN)),
            "bq": jnp.zeros((1, HIDDEN), jnp.float32),
            "wk": nrm(lk[1], (HIDDEN, HIDDEN)),
            "bk": jnp.zeros((1, HIDDEN), jnp.float32),
            "wv": nrm(lk[2], (HIDDEN, HIDDEN)),
            "bv": jnp.zeros((1, HIDDEN), jnp.float32),
            "wo": nrm(lk[3], (HIDDEN, HIDDEN)),
            "bo": jnp.zeros((1, HIDDEN), jnp.float32),
            "ln2_w": jnp.ones((1, HIDDEN), jnp.float32),
            "ln2_b": jnp.zeros((1, HIDDEN), jnp.float32),
            "w1": nrm(lk[4], (HIDDEN, INTERMEDIATE)),
            "b1": jnp.zeros((1, INTERMEDIATE), jnp.float32),
            "w2": nrm(lk[5], (INTERMEDIATE, HIDDEN)),
            "b2": jnp.zeros((1, HIDDEN), jnp.float32),
        })
    return params


# TODO(synk): SiglipImageProcessor preprocessing (resize/normalize) and from_pretrained
# weight loading have no kernel-side equivalent; inputs are assumed preprocessed tensors.

if __name__ == "__main__":
    key = jax.random.PRNGKey(0)
    pkey, xkey = jax.random.split(key)
    params = init_params(pkey)

    B = 2
    # [2 views, B, C, H, W] — NCHW like the PyTorch module.
    images = jax.random.normal(
        xkey, (2, B, NUM_CHANNELS, IMAGE_SIZE, IMAGE_SIZE), dtype=jnp.float32
    )

    out = siglip_vision_tower_forward(images, params)
    out = jax.block_until_ready(out)

    expected = (2, B, 1, NUM_PATCHES - 1, HIDDEN)  # select_feature='patch' drops token 0
    assert out.shape == expected, (out.shape, expected)
    assert bool(jnp.all(jnp.isfinite(out)))
    print("KERNEL_OK")
</pallas_src>

<mosaic_0001>
module attributes {stable_mosaic.version = 11 : i64} {
  func.func @_tower_kernel(%arg0: i32, %arg1: memref<64x48xbf16, #tpu.memory_space<vmem>>, %arg2: memref<48x32xbf16, #tpu.memory_space<vmem>>, %arg3: memref<64x32xf32, #tpu.memory_space<vmem>>, %arg4: memref<2x32x96xbf16, #tpu.memory_space<vmem>>, %arg5: memref<2x32x32xbf16, #tpu.memory_space<vmem>>, %arg6: memref<2x32x64xbf16, #tpu.memory_space<vmem>>, %arg7: memref<2x64x32xbf16, #tpu.memory_space<vmem>>, %arg8: memref<2x8x128xf32, #tpu.memory_space<vmem>>, %arg9: memref<64x32xf32, #tpu.memory_space<vmem>>) attributes {dimension_semantics = [#tpu.dimension_semantics<arbitrary>], iteration_bounds = array<i64: 1>, scalar_prefetch = 0 : i64, scratch_operands = 0 : i64, tpu.core_type = #tpu.core_type<tc>, window_params = [{pipeline_mode = #tpu.pipeline_mode<synchronous>, transform_indices = @transform_0, window_bounds = array<i64: 64, 48>}, {pipeline_mode = #tpu.pipeline_mode<synchronous>, transform_indices = @transform_1, window_bounds = array<i64: 48, 32>}, {pipeline_mode = #tpu.pipeline_mode<synchronous>, transform_indices = @transform_2, window_bounds = array<i64: 64, 32>}, {pipeline_mode = #tpu.pipeline_mode<synchronous>, transform_indices = @transform_3, window_bounds = array<i64: 2, 32, 96>}, {pipeline_mode = #tpu.pipeline_mode<synchronous>, transform_indices = @transform_4, window_bounds = array<i64: 2, 32, 32>}, {pipeline_mode = #tpu.pipeline_mode<synchronous>, transform_indices = @transform_5, window_bounds = array<i64: 2, 32, 64>}, {pipeline_mode = #tpu.pipeline_mode<synchronous>, transform_indices = @transform_6, window_bounds = array<i64: 2, 64, 32>}, {pipeline_mode = #tpu.pipeline_mode<synchronous>, transform_indices = @transform_7, window_bounds = array<i64: 2, 8, 128>}, {pipeline_mode = #tpu.pipeline_mode<synchronous>, transform_indices = @transform_8, window_bounds = array<i64: 64, 32>}]} {
    %c0 = arith.constant 0 : index
    %c0_0 = arith.constant 0 : index
    %0 = vector.load %arg1[%c0, %c0_0] : memref<64x48xbf16, #tpu.memory_space<vmem>>, vector<64x48xbf16>
    %c0_1 = arith.constant 0 : index
    %c0_2 = arith.constant 0 : index
    %1 = vector.load %arg2[%c0_1, %c0_2] : memref<48x32xbf16, #tpu.memory_space<vmem>>, vector<48x32xbf16>
    %cst = arith.constant dense<0.000000e+00> : vector<64x32xf32>
    %2 = tpu.matmul %0, %1, %cst {dimension_numbers = #tpu.dot_dimension_numbers<[1], [0], [0], [1], [0, 0, 1, 1], [], []>} : vector<64x48xbf16>, vector<48x32xbf16>, vector<64x32xf32> -> vector<64x32xf32>
    %c0_3 = arith.constant 0 : index
    %c0_4 = arith.constant 0 : index
    %3 = vector.load %arg3[%c0_3, %c0_4] : memref<64x32xf32, #tpu.memory_space<vmem>>, vector<64x32xf32>
    %4 = arith.addf %2, %3 : vector<64x32xf32>
    %5 = tpu.iota {dimensions = array<i32: 1>} : vector<1x32xi32>
    %c0_i32 = arith.constant 0 : i32
    %6 = vector.broadcast %c0_i32 : i32 to vector<1x32xi32>
    %7 = arith.cmpi sge, %5, %6 : vector<1x32xi32>
    %c8_i32 = arith.constant 8 : i32
    %8 = vector.broadcast %c8_i32 : i32 to vector<1x32xi32>
    %9 = arith.cmpi slt, %5, %8 : vector<1x32xi32>
    %10 = arith.andi %7, %9 : vector<1x32xi1>
    %11 = arith.extui %10 : vector<1x32xi1> to vector<1x32xi32>
    %12 = arith.sitofp %11 : vector<1x32xi32> to vector<1x32xf32>
    %cst_5 = arith.constant 0.353553385 : f32
    %13 = vector.broadcast %cst_5 : f32 to vector<1x32xf32>
    %14 = arith.mulf %12, %13 : vector<1x32xf32>
    %c8_i32_6 = arith.constant 8 : i32
    %15 = vector.broadcast %c8_i32_6 : i32 to vector<1x32xi32>
    %16 = arith.cmpi sge, %5, %15 : vector<1x32xi32>
    %c16_i32 = arith.constant 16 : i32
    %17 = vector.broadcast %c16_i32 : i32 to vector<1x32xi32>
    %18 = arith.cmpi slt, %5, %17 : vector<1x32xi32>
    %19 = arith.andi %16, %18 : vector<1x32xi1>
    %20 = arith.extui %19 : vector<1x32xi1> to vector<1x32xi32>
    %21 = arith.sitofp %20 : vector<1x32xi32> to vector<1x32xf32>
    %cst_7 = arith.constant 0.353553385 : f32
    %22 = vector.broadcast %cst_7 : f32 to vector<1x32xf32>
    %23 = arith.mulf %21, %22 : vector<1x32xf32>
    %c16_i32_8 = arith.constant 16 : i32
    %24 = vector.broadcast %c16_i32_8 : i32 to vector<1x32xi32>
    %25 = arith.cmpi sge, %5, %24 : vector<1x32xi32>
    %c24_i32 = arith.constant 24 : i32
    %26 = vector.broadcast %c24_i32 : i32 to vector<1x32xi32>
    %27 = arith.cmpi slt, %5, %26 : vector<1x32xi32>
    %28 = arith.andi %25, %27 : vector<1x32xi1>
    %29 = arith.extui %28 : vector<1x32xi1> to vector<1x32xi32>
    %30 = arith.sitofp %29 : vector<1x32xi32> to vector<1x32xf32>
    %cst_9 = arith.constant 0.353553385 : f32
    %31 = vector.broadcast %cst_9 : f32 to vector<1x32xf32>
    %32 = arith.mulf %30, %31 : vector<1x32xf32>
    %c24_i32_10 = arith.constant 24 : i32
    %33 = vector.broadcast %c24_i32_10 : i32 to vector<1x32xi32>
    %34 = arith.cmpi sge, %5, %33 : vector<1x32xi32>
    %c32_i32 = arith.constant 32 : i32
    %35 = vector.broadcast %c32_i32 : i32 to vector<1x32xi32>
    %36 = arith.cmpi slt, %5, %35 : vector<1x32xi32>
    %37 = arith.andi %34, %36 : vector<1x32xi1>
    %38 = arith.extui %37 : vector<1x32xi1> to vector<1x32xi32>
    %39 = arith.sitofp %38 : vector<1x32xi32> to vector<1x32xf32>
    %cst_11 = arith.constant 0.353553385 : f32
    %40 = vector.broadcast %cst_11 : f32 to vector<1x32xf32>
    %41 = arith.mulf %39, %40 : vector<1x32xf32>
    %c0_12 = arith.constant 0 : index
    %c0_13 = arith.constant 0 : index
    %c0_14 = arith.constant 0 : index
    %42 = vector.load %arg4[%c0_12, %c0_13, %c0_14] : memref<2x32x96xbf16, #tpu.memory_space<vmem>>, vector<1x32x96xbf16>
    %43 = vector.shape_cast %42 : vector<1x32x96xbf16> to vector<32x96xbf16>
    %c0_15 = arith.constant 0 : index
    %c0_16 = arith.constant 0 : index
    %c0_17 = arith.constant 0 : index
    %44 = vector.load %arg5[%c0_15, %c0_16, %c0_17] : memref<2x32x32xbf16, #tpu.memory_space<vmem>>, vector<1x32x32xbf16>
    %45 = vector.shape_cast %44 : vector<1x32x32xbf16> to vector<32x32xbf16>
    %c0_18 = arith.constant 0 : index
    %c0_19 = arith.constant 0 : index
    %c0_20 = arith.constant 0 : index
    %46 = vector.load %arg6[%c0_18, %c0_19, %c0_20] : memref<2x32x64xbf16, #tpu.memory_space<vmem>>, vector<1x32x64xbf16>
    %47 = vector.shape_cast %46 : vector<1x32x64xbf16> to vector<32x64xbf16>
    %c0_21 = arith.constant 0 : index
    %c0_22 = arith.constant 0 : index
    %c0_23 = arith.constant 0 : index
    %48 = vector.load %arg7[%c0_21, %c0_22, %c0_23] : memref<2x64x32xbf16, #tpu.memory_space<vmem>>, vector<1x64x32xbf16>
    %49 = vector.shape_cast %48 : vector<1x64x32xbf16> to vector<64x32xbf16>
    %c0_24 = arith.constant 0 : index
    %c0_25 = arith.constant 0 : index
    %c0_26 = arith.constant 0 : index
    %50 = vector.load %arg8[%c0_24, %c0_25, %c0_26] : memref<2x8x128xf32, #tpu.memory_space<vmem>>, vector<1x1x32xf32>
    %51 = vector.shape_cast %50 : vector<1x1x32xf32> to vector<1x32xf32>
    %c0_27 = arith.constant 0 : index
    %c1 = arith.constant 1 : index
    %c0_28 = arith.constant 0 : index
    %52 = vector.load %arg8[%c0_27, %c1, %c0_28] : memref<2x8x128xf32, #tpu.memory_space<vmem>>, vector<1x1x32xf32>
    %53 = vector.shape_cast %52 : vector<1x1x32xf32> to vector<1x32xf32>
    %c0_29 = arith.constant 0 : index
    %c2 = arith.constant 2 : index
    %c0_30 = arith.constant 0 : index
    %54 = vector.load %arg8[%c0_29, %c2, %c0_30] : memref<2x8x128xf32, #tpu.memory_space<vmem>>, vector<1x1x96xf32>
    %55 = vector.shape_cast %54 : vector<1x1x96xf32> to vector<1x96xf32>
    %c0_31 = arith.constant 0 : index
    %c3 = arith.constant 3 : index
    %c0_32 = arith.constant 0 : index
    %56 = vector.load %arg8[%c0_31, %c3, %c0_32] : memref<2x8x128xf32, #tpu.memory_space<vmem>>, vector<1x1x32xf32>
    %57 = vector.shape_cast %56 : vector<1x1x32xf32> to vector<1x32xf32>
    %c0_33 = arith.constant 0 : index
    %c4 = arith.constant 4 : index
    %c0_34 = arith.constant 0 : index
    %58 = vector.load %arg8[%c0_33, %c4, %c0_34] : memref<2x8x128xf32, #tpu.memory_space<vmem>>, vector<1x1x32xf32>
    %59 = vector.shape_cast %58 : vector<1x1x32xf32> to vector<1x32xf32>
    %c0_35 = arith.constant 0 : index
    %c5 = arith.constant 5 : index
    %c0_36 = arith.constant 0 : index
    %60 = vector.load %arg8[%c0_35, %c5, %c0_36] : memref<2x8x128xf32, #tpu.memory_space<vmem>>, vector<1x1x32xf32>
    %61 = vector.shape_cast %60 : vector<1x1x32xf32> to vector<1x32xf32>
    %c0_37 = arith.constant 0 : index
    %c6 = arith.constant 6 : index
    %c0_38 = arith.constant 0 : index
    %62 = vector.load %arg8[%c0_37, %c6, %c0_38] : memref<2x8x128xf32, #tpu.memory_space<vmem>>, vector<1x1x64xf32>
    %63 = vector.shape_cast %62 : vector<1x1x64xf32> to vector<1x64xf32>
    %c0_39 = arith.constant 0 : index
    %c7 = arith.constant 7 : index
    %c0_40 = arith.constant 0 : index
    %64 = vector.load %arg8[%c0_39, %c7, %c0_40] : memref<2x8x128xf32, #tpu.memory_space<vmem>>, vector<1x1x32xf32>
    %65 = vector.shape_cast %64 : vector<1x1x32xf32> to vector<1x32xf32>
    %cst_41 = arith.constant dense<0.000000e+00> : vector<64xf32>
    %66 = vector.multi_reduction <add>, %4, %cst_41 [1] : vector<64x32xf32> to vector<64xf32>
    %67 = vector.shape_cast %66 : vector<64xf32> to vector<64x1xf32>
    %cst_42 = arith.constant 3.200000e+01 : f32
    %68 = vector.broadcast %cst_42 : f32 to vector<64x1xf32>
    %69 = arith.divf %67, %68 : vector<64x1xf32>
    %70 = vector.broadcast %69 : vector<64x1xf32> to vector<64x32xf32>
    %71 = arith.subf %4, %70 : vector<64x32xf32>
    %72 = arith.mulf %71, %71 : vector<64x32xf32>
    %cst_43 = arith.constant dense<0.000000e+00> : vector<64xf32>
    %73 = vector.multi_reduction <add>, %72, %cst_43 [1] : vector<64x32xf32> to vector<64xf32>
    %74 = vector.shape_cast %73 : vector<64xf32> to vector<64x1xf32>
    %cst_44 = arith.constant 3.200000e+01 : f32
    %75 = vector.broadcast %cst_44 : f32 to vector<64x1xf32>
    %76 = arith.divf %74, %75 : vector<64x1xf32>
    %77 = vector.broadcast %69 : vector<64x1xf32> to vector<64x32xf32>
    %78 = arith.subf %4, %77 : vector<64x32xf32>
    %cst_45 = arith.constant 9.99999997E-7 : f32
    %79 = vector.broadcast %cst_45 : f32 to vector<64x1xf32>
    %80 = arith.addf %76, %79 : vector<64x1xf32>
    %81 = math.rsqrt %80 : vector<64x1xf32>
    %82 = vector.broadcast %81 : vector<64x1xf32> to vector<64x32xf32>
    %83 = arith.mulf %78, %82 : vector<64x32xf32>
    %84 = vector.broadcast %51 : vector<1x32xf32> to vector<64x32xf32>
    %85 = arith.mulf %83, %84 : vector<64x32xf32>
    %86 = vector.broadcast %53 : vector<1x32xf32> to vector<64x32xf32>
    %87 = arith.addf %85, %86 : vector<64x32xf32>
    %88 = arith.truncf %87 : vector<64x32xf32> to vector<64x32xbf16>
    %cst_46 = arith.constant dense<0.000000e+00> : vector<64x96xf32>
    %89 = tpu.matmul %88, %43, %cst_46 {dimension_numbers = #tpu.dot_dimension_numbers<[1], [0], [0], [1], [0, 0, 1, 1], [], []>} : vector<64x32xbf16>, vector<32x96xbf16>, vector<64x96xf32> -> vector<64x96xf32>
    %90 = vector.broadcast %55 : vector<1x96xf32> to vector<64x96xf32>
    %91 = arith.addf %89, %90 : vector<64x96xf32>
    %92 = vector.extract_strided_slice %91 {offsets = [0, 0], sizes = [64, 32], strides = [1, 1]} : vector<64x96xf32> to vector<64x32xf32>
    %93 = vector.shape_cast %92 : vector<64x32xf32> to vector<4x16x32xf32>
    %94 = vector.extract_strided_slice %91 {offsets = [0, 32], sizes = [64, 32], strides = [1, 1]} : vector<64x96xf32> to vector<64x32xf32>
    %95 = vector.shape_cast %94 : vector<64x32xf32> to vector<4x16x32xf32>
    %96 = vector.extract_strided_slice %91 {offsets = [0, 64], sizes = [64, 32], strides = [1, 1]} : vector<64x96xf32> to vector<64x32xf32>
    %97 = vector.shape_cast %96 : vector<64x32xf32> to vector<4x16x32xf32>
    %98 = arith.truncf %95 : vector<4x16x32xf32> to vector<4x16x32xbf16>
    %99 = vector.shape_cast %14 : vector<1x32xf32> to vector<1x1x32xf32>
    %100 = vector.broadcast %99 : vector<1x1x32xf32> to vector<4x16x32xf32>
    %101 = arith.mulf %93, %100 : vector<4x16x32xf32>
    %102 = arith.truncf %101 : vector<4x16x32xf32> to vector<4x16x32xbf16>
    %103 = vector.shape_cast %12 : vector<1x32xf32> to vector<1x1x32xf32>
    %104 = vector.broadcast %103 : vector<1x1x32xf32> to vector<4x16x32xf32>
    %105 = arith.mulf %97, %104 : vector<4x16x32xf32>
    %106 = arith.truncf %105 : vector<4x16x32xf32> to vector<4x16x32xbf16>
    "tpu.trace_start"() <{level = 10 : i32, message = "bqd,bkd->bqk"}> : () -> ()
    %cst_47 = arith.constant dense<0.000000e+00> : vector<4x16x16xf32>
    %107 = tpu.matmul %102, %98, %cst_47 {dimension_numbers = #tpu.dot_dimension_numbers<[2], [2], [1], [1], [0, 0, 0, 1, 1, 1], [0], [0]>} : vector<4x16x32xbf16>, vector<4x16x32xbf16>, vector<4x16x16xf32> -> vector<4x16x16xf32>
    "tpu.trace_stop"() : () -> ()
    %cst_48 = arith.constant dense<0xFF800000> : vector<4x16xf32>
    %108 = vector.multi_reduction <maximumf>, %107, %cst_48 [2] : vector<4x16x16xf32> to vector<4x16xf32>
    %109 = vector.shape_cast %108 : vector<4x16xf32> to vector<4x16x1xf32>
    %110 = vector.broadcast %109 : vector<4x16x1xf32> to vector<4x16x16xf32>
    %111 = arith.subf %107, %110 : vector<4x16x16xf32>
    %112 = math.exp %111 : vector<4x16x16xf32>
    %cst_49 = arith.constant dense<0.000000e+00> : vector<4x16xf32>
    %113 = vector.multi_reduction <add>, %112, %cst_49 [2] : vector<4x16x16xf32> to vector<4x16xf32>
    %114 = vector.shape_cast %113 : vector<4x16xf32> to vector<4x16x1xf32>
    %115 = tpu.reciprocal %114 {approx = true} : vector<4x16x1xf32> -> vector<4x16x1xf32>
    %116 = vector.broadcast %115 : vector<4x16x1xf32> to vector<4x16x16xf32>
    %117 = arith.mulf %112, %116 : vector<4x16x16xf32>
    %118 = arith.truncf %117 : vector<4x16x16xf32> to vector<4x16x16xbf16>
    "tpu.trace_start"() <{level = 10 : i32, message = "bqk,bkd->bqd"}> : () -> ()
    %cst_50 = arith.constant dense<0.000000e+00> : vector<4x16x32xf32>
    %119 = tpu.matmul %118, %106, %cst_50 {dimension_numbers = #tpu.dot_dimension_numbers<[2], [1], [1], [2], [0, 0, 0, 1, 1, 2], [0], [0]>} : vector<4x16x16xbf16>, vector<4x16x32xbf16>, vector<4x16x32xf32> -> vector<4x16x32xf32>
    "tpu.trace_stop"() : () -> ()
    %120 = vector.shape_cast %23 : vector<1x32xf32> to vector<1x1x32xf32>
    %121 = vector.broadcast %120 : vector<1x1x32xf32> to vector<4x16x32xf32>
    %122 = arith.mulf %93, %121 : vector<4x16x32xf32>
    %123 = arith.truncf %122 : vector<4x16x32xf32> to vector<4x16x32xbf16>
    %124 = vector.shape_cast %21 : vector<1x32xf32> to vector<1x1x32xf32>
    %125 = vector.broadcast %124 : vector<1x1x32xf32> to vector<4x16x32xf32>
    %126 = arith.mulf %97, %125 : vector<4x16x32xf32>
    %127 = arith.truncf %126 : vector<4x16x32xf32> to vector<4x16x32xbf16>
    "tpu.trace_start"() <{level = 10 : i32, message = "bqd,bkd->bqk"}> : () -> ()
    %cst_51 = arith.constant dense<0.000000e+00> : vector<4x16x16xf32>
    %128 = tpu.matmul %123, %98, %cst_51 {dimension_numbers = #tpu.dot_dimension_numbers<[2], [2], [1], [1], [0, 0, 0, 1, 1, 1], [0], [0]>} : vector<4x16x32xbf16>, vector<4x16x32xbf16>, vector<4x16x16xf32> -> vector<4x16x16xf32>
    "tpu.trace_stop"() : () -> ()
    %cst_52 = arith.constant dense<0xFF800000> : vector<4x16xf32>
    %129 = vector.multi_reduction <maximumf>, %128, %cst_52 [2] : vector<4x16x16xf32> to vector<4x16xf32>
    %130 = vector.shape_cast %129 : vector<4x16xf32> to vector<4x16x1xf32>
    %131 = vector.broadcast %130 : vector<4x16x1xf32> to vector<4x16x16xf32>
    %132 = arith.subf %128, %131 : vector<4x16x16xf32>
    %133 = math.exp %132 : vector<4x16x16xf32>
    %cst_53 = arith.constant dense<0.000000e+00> : vector<4x16xf32>
    %134 = vector.multi_reduction <add>, %133, %cst_53 [2] : vector<4x16x16xf32> to vector<4x16xf32>
    %135 = vector.shape_cast %134 : vector<4x16xf32> to vector<4x16x1xf32>
    %136 = tpu.reciprocal %135 {approx = true} : vector<4x16x1xf32> -> vector<4x16x1xf32>
    %137 = vector.broadcast %136 : vector<4x16x1xf32> to vector<4x16x16xf32>
    %138 = arith.mulf %133, %137 : vector<4x16x16xf32>
    %139 = arith.truncf %138 : vector<4x16x16xf32> to vector<4x16x16xbf16>
    "tpu.trace_start"() <{level = 10 : i32, message = "bqk,bkd->bqd"}> : () -> ()
    %cst_54 = arith.constant dense<0.000000e+00> : vector<4x16x32xf32>
    %140 = tpu.matmul %139, %127, %cst_54 {dimension_numbers = #tpu.dot_dimension_numbers<[2], [1], [1], [2], [0, 0, 0, 1, 1, 2], [0], [0]>} : vector<4x16x16xbf16>, vector<4x16x32xbf16>, vector<4x16x32xf32> -> vector<4x16x32xf32>
    "tpu.trace_stop"() : () -> ()
    %141 = arith.addf %119, %140 : vector<4x16x32xf32>
    %142 = vector.shape_cast %32 : vector<1x32xf32> to vector<1x1x32xf32>
    %143 = vector.broadcast %142 : vector<1x1x32xf32> to vector<4x16x32xf32>
    %144 = arith.mulf %93, %143 : vector<4x16x32xf32>
    %145 = arith.truncf %144 : vector<4x16x32xf32> to vector<4x16x32xbf16>
    %146 = vector.shape_cast %30 : vector<1x32xf32> to vector<1x1x32xf32>
    %147 = vector.broadcast %146 : vector<1x1x32xf32> to vector<4x16x32xf32>
    %148 = arith.mulf %97, %147 : vector<4x16x32xf32>
    %149 = arith.truncf %148 : vector<4x16x32xf32> to vector<4x16x32xbf16>
    "tpu.trace_start"() <{level = 10 : i32, message = "bqd,bkd->bqk"}> : () -> ()
    %cst_55 = arith.constant dense<0.000000e+00> : vector<4x16x16xf32>
    %150 = tpu.matmul %145, %98, %cst_55 {dimension_numbers = #tpu.dot_dimension_numbers<[2], [2], [1], [1], [0, 0, 0, 1, 1, 1], [0], [0]>} : vector<4x16x32xbf16>, vector<4x16x32xbf16>, vector<4x16x16xf32> -> vector<4x16x16xf32>
    "tpu.trace_stop"() : () -> ()
    %cst_56 = arith.constant dense<0xFF800000> : vector<4x16xf32>
    %151 = vector.multi_reduction <maximumf>, %150, %cst_56 [2] : vector<4x16x16xf32> to vector<4x16xf32>
    %152 = vector.shape_cast %151 : vector<4x16xf32> to vector<4x16x1xf32>
    %153 = vector.broadcast %152 : vector<4x16x1xf32> to vector<4x16x16xf32>
    %154 = arith.subf %150, %153 : vector<4x16x16xf32>
    %155 = math.exp %154 : vector<4x16x16xf32>
    %cst_57 = arith.constant dense<0.000000e+00> : vector<4x16xf32>
    %156 = vector.multi_reduction <add>, %155, %cst_57 [2] : vector<4x16x16xf32> to vector<4x16xf32>
    %157 = vector.shape_cast %156 : vector<4x16xf32> to vector<4x16x1xf32>
    %158 = tpu.reciprocal %157 {approx = true} : vector<4x16x1xf32> -> vector<4x16x1xf32>
    %159 = vector.broadcast %158 : vector<4x16x1xf32> to vector<4x16x16xf32>
    %160 = arith.mulf %155, %159 : vector<4x16x16xf32>
    %161 = arith.truncf %160 : vector<4x16x16xf32> to vector<4x16x16xbf16>
    "tpu.trace_start"() <{level = 10 : i32, message = "bqk,bkd->bqd"}> : () -> ()
    %cst_58 = arith.constant dense<0.000000e+00> : vector<4x16x32xf32>
    %162 = tpu.matmul %161, %149, %cst_58 {dimension_numbers = #tpu.dot_dimension_numbers<[2], [1], [1], [2], [0, 0, 0, 1, 1, 2], [0], [0]>} : vector<4x16x16xbf16>, vector<4x16x32xbf16>, vector<4x16x32xf32> -> vector<4x16x32xf32>
    "tpu.trace_stop"() : () -> ()
    %163 = arith.addf %141, %162 : vector<4x16x32xf32>
    %164 = vector.shape_cast %41 : vector<1x32xf32> to vector<1x1x32xf32>
    %165 = vector.broadcast %164 : vector<1x1x32xf32> to vector<4x16x32xf32>
    %166 = arith.mulf %93, %165 : vector<4x16x32xf32>
    %167 = arith.truncf %166 : vector<4x16x32xf32> to vector<4x16x32xbf16>
    %168 = vector.shape_cast %39 : vector<1x32xf32> to vector<1x1x32xf32>
    %169 = vector.broadcast %168 : vector<1x1x32xf32> to vector<4x16x32xf32>
    %170 = arith.mulf %97, %169 : vector<4x16x32xf32>
    %171 = arith.truncf %170 : vector<4x16x32xf32> to vector<4x16x32xbf16>
    "tpu.trace_start"() <{level = 10 : i32, message = "bqd,bkd->bqk"}> : () -> ()
    %cst_59 = arith.constant dense<0.000000e+00> : vector<4x16x16xf32>
    %172 = tpu.matmul %167, %98, %cst_59 {dimension_numbers = #tpu.dot_dimension_numbers<[2], [2], [1], [1], [0, 0, 0, 1, 1, 1], [0], [0]>} : vector<4x16x32xbf16>, vector<4x16x32xbf16>, vector<4x16x16xf32> -> vector<4x16x16xf32>
    "tpu.trace_stop"() : () -> ()
    %cst_60 = arith.constant dense<0xFF800000> : vector<4x16xf32>
    %173 = vector.multi_reduction <maximumf>, %172, %cst_60 [2] : vector<4x16x16xf32> to vector<4x16xf32>
    %174 = vector.shape_cast %173 : vector<4x16xf32> to vector<4x16x1xf32>
    %175 = vector.broadcast %174 : vector<4x16x1xf32> to vector<4x16x16xf32>
    %176 = arith.subf %172, %175 : vector<4x16x16xf32>
    %177 = math.exp %176 : vector<4x16x16xf32>
    %cst_61 = arith.constant dense<0.000000e+00> : vector<4x16xf32>
    %178 = vector.multi_reduction <add>, %177, %cst_61 [2] : vector<4x16x16xf32> to vector<4x16xf32>
    %179 = vector.shape_cast %178 : vector<4x16xf32> to vector<4x16x1xf32>
    %180 = tpu.reciprocal %179 {approx = true} : vector<4x16x1xf32> -> vector<4x16x1xf32>
    %181 = vector.broadcast %180 : vector<4x16x1xf32> to vector<4x16x16xf32>
    %182 = arith.mulf %177, %181 : vector<4x16x16xf32>
    %183 = arith.truncf %182 : vector<4x16x16xf32> to vector<4x16x16xbf16>
    "tpu.trace_start"() <{level = 10 : i32, message = "bqk,bkd->bqd"}> : () -> ()
    %cst_62 = arith.constant dense<0.000000e+00> : vector<4x16x32xf32>
    %184 = tpu.matmul %183, %171, %cst_62 {dimension_numbers = #tpu.dot_dimension_numbers<[2], [1], [1], [2], [0, 0, 0, 1, 1, 2], [0], [0]>} : vector<4x16x16xbf16>, vector<4x16x32xbf16>, vector<4x16x32xf32> -> vector<4x16x32xf32>
    "tpu.trace_stop"() : () -> ()
    %185 = arith.addf %163, %184 : vector<4x16x32xf32>
    %186 = vector.shape_cast %185 : vector<4x16x32xf32> to vector<64x32xf32>
    %187 = arith.truncf %186 : vector<64x32xf32> to vector<64x32xbf16>
    %cst_63 = arith.constant dense<0.000000e+00> : vector<64x32xf32>
    %188 = tpu.matmul %187, %45, %cst_63 {dimension_numbers = #tpu.dot_dimension_numbers<[1], [0], [0], [1], [0, 0, 1, 1], [], []>} : vector<64x32xbf16>, vector<32x32xbf16>, vector<64x32xf32> -> vector<64x32xf32>
    %189 = arith.addf %4, %188 : vector<64x32xf32>
    %190 = vector.broadcast %57 : vector<1x32xf32> to vector<64x32xf32>
    %191 = arith.addf %189, %190 : vector<64x32xf32>
    %cst_64 = arith.constant dense<0.000000e+00> : vector<64xf32>
    %192 = vector.multi_reduction <add>, %191, %cst_64 [1] : vector<64x32xf32> to vector<64xf32>
    %193 = vector.shape_cast %192 : vector<64xf32> to vector<64x1xf32>
    %cst_65 = arith.constant 3.200000e+01 : f32
    %194 = vector.broadcast %cst_65 : f32 to vector<64x1xf32>
    %195 = arith.divf %193, %194 : vector<64x1xf32>
    %196 = vector.broadcast %195 : vector<64x1xf32> to vector<64x32xf32>
    %197 = arith.subf %191, %196 : vector<64x32xf32>
    %198 = arith.mulf %197, %197 : vector<64x32xf32>
    %cst_66 = arith.constant dense<0.000000e+00> : vector<64xf32>
    %199 = vector.multi_reduction <add>, %198, %cst_66 [1] : vector<64x32xf32> to vector<64xf32>
    %200 = vector.shape_cast %199 : vector<64xf32> to vector<64x1xf32>
    %cst_67 = arith.constant 3.200000e+01 : f32
    %201 = vector.broadcast %cst_67 : f32 to vector<64x1xf32>
    %202 = arith.divf %200, %201 : vector<64x1xf32>
    %203 = vector.broadcast %195 : vector<64x1xf32> to vector<64x32xf32>
    %204 = arith.subf %191, %203 : vector<64x32xf32>
    %cst_68 = arith.constant 9.99999997E-7 : f32
    %205 = vector.broadcast %cst_68 : f32 to vector<64x1xf32>
    %206 = arith.addf %202, %205 : vector<64x1xf32>
    %207 = math.rsqrt %206 : vector<64x1xf32>
    %208 = vector.broadcast %207 : vector<64x1xf32> to vector<64x32xf32>
    %209 = arith.mulf %204, %208 : vector<64x32xf32>
    %210 = vector.broadcast %59 : vector<1x32xf32> to vector<64x32xf32>
    %211 = arith.mulf %209, %210 : vector<64x32xf32>
    %212 = vector.broadcast %61 : vector<1x32xf32> to vector<64x32xf32>
    %213 = arith.addf %211, %212 : vector<64x32xf32>
    %214 = arith.truncf %213 : vector<64x32xf32> to vector<64x32xbf16>
    %cst_69 = arith.constant dense<0.000000e+00> : vector<64x64xf32>
    %215 = tpu.matmul %214, %47, %cst_69 {dimension_numbers = #tpu.dot_dimension_numbers<[1], [0], [0], [1], [0, 0, 1, 1], [], []>} : vector<64x32xbf16>, vector<32x64xbf16>, vector<64x64xf32> -> vector<64x64xf32>
    %216 = vector.broadcast %63 : vector<1x64xf32> to vector<64x64xf32>
    %217 = arith.addf %215, %216 : vector<64x64xf32>
    %218 = arith.mulf %217, %217 : vector<64x64xf32>
    %219 = arith.mulf %217, %218 : vector<64x64xf32>
    %cst_70 = arith.constant 4.471500e-02 : f32
    %220 = vector.broadcast %cst_70 : f32 to vector<64x64xf32>
    %221 = arith.mulf %220, %219 : vector<64x64xf32>
    %222 = arith.addf %217, %221 : vector<64x64xf32>
    %cst_71 = arith.constant 0.797884583 : f32
    %223 = vector.broadcast %cst_71 : f32 to vector<64x64xf32>
    %224 = arith.mulf %223, %222 : vector<64x64xf32>
    %225 = math.tanh %224 : vector<64x64xf32>
    %cst_72 = arith.constant 1.000000e+00 : f32
    %226 = vector.broadcast %cst_72 : f32 to vector<64x64xf32>
    %227 = arith.addf %226, %225 : vector<64x64xf32>
    %cst_73 = arith.constant 5.000000e-01 : f32
    %228 = vector.broadcast %cst_73 : f32 to vector<64x64xf32>
    %229 = arith.mulf %228, %227 : vector<64x64xf32>
    %230 = arith.mulf %217, %229 : vector<64x64xf32>
    %231 = arith.truncf %230 : vector<64x64xf32> to vector<64x64xbf16>
    %cst_74 = arith.constant dense<0.000000e+00> : vector<64x32xf32>
    %232 = tpu.matmul %231, %49, %cst_74 {dimension_numbers = #tpu.dot_dimension_numbers<[1], [0], [0], [1], [0, 0, 1, 1], [], []>} : vector<64x64xbf16>, vector<64x32xbf16>, vector<64x32xf32> -> vector<64x32xf32>
    %233 = arith.addf %191, %232 : vector<64x32xf32>
    %234 = vector.broadcast %65 : vector<1x32xf32> to vector<64x32xf32>
    %235 = arith.addf %233, %234 : vector<64x32xf32>
    %c1_75 = arith.constant 1 : index
    %c0_76 = arith.constant 0 : index
    %c0_77 = arith.constant 0 : index
    %236 = vector.load %arg4[%c1_75, %c0_76, %c0_77] : memref<2x32x96xbf16, #tpu.memory_space<vmem>>, vector<1x32x96xbf16>
    %237 = vector.shape_cast %236 : vector<1x32x96xbf16> to vector<32x96xbf16>
    %c1_78 = arith.constant 1 : index
    %c0_79 = arith.constant 0 : index
    %c0_80 = arith.constant 0 : index
    %238 = vector.load %arg5[%c1_78, %c0_79, %c0_80] : memref<2x32x32xbf16, #tpu.memory_space<vmem>>, vector<1x32x32xbf16>
    %239 = vector.shape_cast %238 : vector<1x32x32xbf16> to vector<32x32xbf16>
    %c1_81 = arith.constant 1 : index
    %c0_82 = arith.constant 0 : index
    %c0_83 = arith.constant 0 : index
    %240 = vector.load %arg6[%c1_81, %c0_82, %c0_83] : memref<2x32x64xbf16, #tpu.memory_space<vmem>>, vector<1x32x64xbf16>
    %241 = vector.shape_cast %240 : vector<1x32x64xbf16> to vector<32x64xbf16>
    %c1_84 = arith.constant 1 : index
    %c0_85 = arith.constant 0 : index
    %c0_86 = arith.constant 0 : index
    %242 = vector.load %arg7[%c1_84, %c0_85, %c0_86] : memref<2x64x32xbf16, #tpu.memory_space<vmem>>, vector<1x64x32xbf16>
    %243 = vector.shape_cast %242 : vector<1x64x32xbf16> to vector<64x32xbf16>
    %c1_87 = arith.constant 1 : index
    %c0_88 = arith.constant 0 : index
    %c0_89 = arith.constant 0 : index
    %244 = vector.load %arg8[%c1_87, %c0_88, %c0_89] : memref<2x8x128xf32, #tpu.memory_space<vmem>>, vector<1x1x32xf32>
    %245 = vector.shape_cast %244 : vector<1x1x32xf32> to vector<1x32xf32>
    %c1_90 = arith.constant 1 : index
    %c1_91 = arith.constant 1 : index
    %c0_92 = arith.constant 0 : index
    %246 = vector.load %arg8[%c1_90, %c1_91, %c0_92] : memref<2x8x128xf32, #tpu.memory_space<vmem>>, vector<1x1x32xf32>
    %247 = vector.shape_cast %246 : vector<1x1x32xf32> to vector<1x32xf32>
    %c1_93 = arith.constant 1 : index
    %c2_94 = arith.constant 2 : index
    %c0_95 = arith.constant 0 : index
    %248 = vector.load %arg8[%c1_93, %c2_94, %c0_95] : memref<2x8x128xf32, #tpu.memory_space<vmem>>, vector<1x1x96xf32>
    %249 = vector.shape_cast %248 : vector<1x1x96xf32> to vector<1x96xf32>
    %c1_96 = arith.constant 1 : index
    %c3_97 = arith.constant 3 : index
    %c0_98 = arith.constant 0 : index
    %250 = vector.load %arg8[%c1_96, %c3_97, %c0_98] : memref<2x8x128xf32, #tpu.memory_space<vmem>>, vector<1x1x32xf32>
    %251 = vector.shape_cast %250 : vector<1x1x32xf32> to vector<1x32xf32>
    %c1_99 = arith.constant 1 : index
    %c4_100 = arith.constant 4 : index
    %c0_101 = arith.constant 0 : index
    %252 = vector.load %arg8[%c1_99, %c4_100, %c0_101] : memref<2x8x128xf32, #tpu.memory_space<vmem>>, vector<1x1x32xf32>
    %253 = vector.shape_cast %252 : vector<1x1x32xf32> to vector<1x32xf32>
    %c1_102 = arith.constant 1 : index
    %c5_103 = arith.constant 5 : index
    %c0_104 = arith.constant 0 : index
    %254 = vector.load %arg8[%c1_102, %c5_103, %c0_104] : memref<2x8x128xf32, #tpu.memory_space<vmem>>, vector<1x1x32xf32>
    %255 = vector.shape_cast %254 : vector<1x1x32xf32> to vector<1x32xf32>
    %c1_105 = arith.constant 1 : index
    %c6_106 = arith.constant 6 : index
    %c0_107 = arith.constant 0 : index
    %256 = vector.load %arg8[%c1_105, %c6_106, %c0_107] : memref<2x8x128xf32, #tpu.memory_space<vmem>>, vector<1x1x64xf32>
    %257 = vector.shape_cast %256 : vector<1x1x64xf32> to vector<1x64xf32>
    %c1_108 = arith.constant 1 : index
    %c7_109 = arith.constant 7 : index
    %c0_110 = arith.constant 0 : index
    %258 = vector.load %arg8[%c1_108, %c7_109, %c0_110] : memref<2x8x128xf32, #tpu.memory_space<vmem>>, vector<1x1x32xf32>
    %259 = vector.shape_cast %258 : vector<1x1x32xf32> to vector<1x32xf32>
    %cst_111 = arith.constant dense<0.000000e+00> : vector<64xf32>
    %260 = vector.multi_reduction <add>, %235, %cst_111 [1] : vector<64x32xf32> to vector<64xf32>
    %261 = vector.shape_cast %260 : vector<64xf32> to vector<64x1xf32>
    %cst_112 = arith.constant 3.200000e+01 : f32
    %262 = vector.broadcast %cst_112 : f32 to vector<64x1xf32>
    %263 = arith.divf %261, %262 : vector<64x1xf32>
    %264 = vector.broadcast %263 : vector<64x1xf32> to vector<64x32xf32>
    %265 = arith.subf %235, %264 : vector<64x32xf32>
    %266 = arith.mulf %265, %265 : vector<64x32xf32>
    %cst_113 = arith.constant dense<0.000000e+00> : vector<64xf32>
    %267 = vector.multi_reduction <add>, %266, %cst_113 [1] : vector<64x32xf32> to vector<64xf32>
    %268 = vector.shape_cast %267 : vector<64xf32> to vector<64x1xf32>
    %cst_114 = arith.constant 3.200000e+01 : f32
    %269 = vector.broadcast %cst_114 : f32 to vector<64x1xf32>
    %270 = arith.divf %268, %269 : vector<64x1xf32>
    %271 = vector.broadcast %263 : vector<64x1xf32> to vector<64x32xf32>
    %272 = arith.subf %235, %271 : vector<64x32xf32>
    %cst_115 = arith.constant 9.99999997E-7 : f32
    %273 = vector.broadcast %cst_115 : f32 to vector<64x1xf32>
    %274 = arith.addf %270, %273 : vector<64x1xf32>
    %275 = math.rsqrt %274 : vector<64x1xf32>
    %276 = vector.broadcast %275 : vector<64x1xf32> to vector<64x32xf32>
    %277 = arith.mulf %272, %276 : vector<64x32xf32>
    %278 = vector.broadcast %245 : vector<1x32xf32> to vector<64x32xf32>
    %279 = arith.mulf %277, %278 : vector<64x32xf32>
    %280 = vector.broadcast %247 : vector<1x32xf32> to vector<64x32xf32>
    %281 = arith.addf %279, %280 : vector<64x32xf32>
    %282 = arith.truncf %281 : vector<64x32xf32> to vector<64x32xbf16>
    %cst_116 = arith.constant dense<0.000000e+00> : vector<64x96xf32>
    %283 = tpu.matmul %282, %237, %cst_116 {dimension_numbers = #tpu.dot_dimension_numbers<[1], [0], [0], [1], [0, 0, 1, 1], [], []>} : vector<64x32xbf16>, vector<32x96xbf16>, vector<64x96xf32> -> vector<64x96xf32>
    %284 = vector.broadcast %249 : vector<1x96xf32> to vector<64x96xf32>
    %285 = arith.addf %283, %284 : vector<64x96xf32>
    %286 = vector.extract_strided_slice %285 {offsets = [0, 0], sizes = [64, 32], strides = [1, 1]} : vector<64x96xf32> to vector<64x32xf32>
    %287 = vector.shape_cast %286 : vector<64x32xf32> to vector<4x16x32xf32>
    %288 = vector.extract_strided_slice %285 {offsets = [0, 32], sizes = [64, 32], strides = [1, 1]} : vector<64x96xf32> to vector<64x32xf32>
    %289 = vector.shape_cast %288 : vector<64x32xf32> to vector<4x16x32xf32>
    %290 = vector.extract_strided_slice %285 {offsets = [0, 64], sizes = [64, 32], strides = [1, 1]} : vector<64x96xf32> to vector<64x32xf32>
    %291 = vector.shape_cast %290 : vector<64x32xf32> to vector<4x16x32xf32>
    %292 = arith.truncf %289 : vector<4x16x32xf32> to vector<4x16x32xbf16>
    %293 = vector.shape_cast %14 : vector<1x32xf32> to vector<1x1x32xf32>
    %294 = vector.broadcast %293 : vector<1x1x32xf32> to vector<4x16x32xf32>
    %295 = arith.mulf %287, %294 : vector<4x16x32xf32>
    %296 = arith.truncf %295 : vector<4x16x32xf32> to vector<4x16x32xbf16>
    %297 = vector.shape_cast %12 : vector<1x32xf32> to vector<1x1x32xf32>
    %298 = vector.broadcast %297 : vector<1x1x32xf32> to vector<4x16x32xf32>
    %299 = arith.mulf %291, %298 : vector<4x16x32xf32>
    %300 = arith.truncf %299 : vector<4x16x32xf32> to vector<4x16x32xbf16>
    "tpu.trace_start"() <{level = 10 : i32, message = "bqd,bkd->bqk"}> : () -> ()
    %cst_117 = arith.constant dense<0.000000e+00> : vector<4x16x16xf32>
    %301 = tpu.matmul %296, %292, %cst_117 {dimension_numbers = #tpu.dot_dimension_numbers<[2], [2], [1], [1], [0, 0, 0, 1, 1, 1], [0], [0]>} : vector<4x16x32xbf16>, vector<4x16x32xbf16>, vector<4x16x16xf32> -> vector<4x16x16xf32>
    "tpu.trace_stop"() : () -> ()
    %cst_118 = arith.constant dense<0xFF800000> : vector<4x16xf32>
    %302 = vector.multi_reduction <maximumf>, %301, %cst_118 [2] : vector<4x16x16xf32> to vector<4x16xf32>
    %303 = vector.shape_cast %302 : vector<4x16xf32> to vector<4x16x1xf32>
    %304 = vector.broadcast %303 : vector<4x16x1xf32> to vector<4x16x16xf32>
    %305 = arith.subf %301, %304 : vector<4x16x16xf32>
    %306 = math.exp %305 : vector<4x16x16xf32>
    %cst_119 = arith.constant dense<0.000000e+00> : vector<4x16xf32>
    %307 = vector.multi_reduction <add>, %306, %cst_119 [2] : vector<4x16x16xf32> to vector<4x16xf32>
    %308 = vector.shape_cast %307 : vector<4x16xf32> to vector<4x16x1xf32>
    %309 = tpu.reciprocal %308 {approx = true} : vector<4x16x1xf32> -> vector<4x16x1xf32>
    %310 = vector.broadcast %309 : vector<4x16x1xf32> to vector<4x16x16xf32>
    %311 = arith.mulf %306, %310 : vector<4x16x16xf32>
    %312 = arith.truncf %311 : vector<4x16x16xf32> to vector<4x16x16xbf16>
    "tpu.trace_start"() <{level = 10 : i32, message = "bqk,bkd->bqd"}> : () -> ()
    %cst_120 = arith.constant dense<0.000000e+00> : vector<4x16x32xf32>
    %313 = tpu.matmul %312, %300, %cst_120 {dimension_numbers = #tpu.dot_dimension_numbers<[2], [1], [1], [2], [0, 0, 0, 1, 1, 2], [0], [0]>} : vector<4x16x16xbf16>, vector<4x16x32xbf16>, vector<4x16x32xf32> -> vector<4x16x32xf32>
    "tpu.trace_stop"() : () -> ()
    %314 = vector.shape_cast %23 : vector<1x32xf32> to vector<1x1x32xf32>
    %315 = vector.broadcast %314 : vector<1x1x32xf32> to vector<4x16x32xf32>
    %316 = arith.mulf %287, %315 : vector<4x16x32xf32>
    %317 = arith.truncf %316 : vector<4x16x32xf32> to vector<4x16x32xbf16>
    %318 = vector.shape_cast %21 : vector<1x32xf32> to vector<1x1x32xf32>
    %319 = vector.broadcast %318 : vector<1x1x32xf32> to vector<4x16x32xf32>
    %320 = arith.mulf %291, %319 : vector<4x16x32xf32>
    %321 = arith.truncf %320 : vector<4x16x32xf32> to vector<4x16x32xbf16>
    "tpu.trace_start"() <{level = 10 : i32, message = "bqd,bkd->bqk"}> : () -> ()
    %cst_121 = arith.constant dense<0.000000e+00> : vector<4x16x16xf32>
    %322 = tpu.matmul %317, %292, %cst_121 {dimension_numbers = #tpu.dot_dimension_numbers<[2], [2], [1], [1], [0, 0, 0, 1, 1, 1], [0], [0]>} : vector<4x16x32xbf16>, vector<4x16x32xbf16>, vector<4x16x16xf32> -> vector<4x16x16xf32>
    "tpu.trace_stop"() : () -> ()
    %cst_122 = arith.constant dense<0xFF800000> : vector<4x16xf32>
    %323 = vector.multi_reduction <maximumf>, %322, %cst_122 [2] : vector<4x16x16xf32> to vector<4x16xf32>
    %324 = vector.shape_cast %323 : vector<4x16xf32> to vector<4x16x1xf32>
    %325 = vector.broadcast %324 : vector<4x16x1xf32> to vector<4x16x16xf32>
    %326 = arith.subf %322, %325 : vector<4x16x16xf32>
    %327 = math.exp %326 : vector<4x16x16xf32>
    %cst_123 = arith.constant dense<0.000000e+00> : vector<4x16xf32>
    %328 = vector.multi_reduction <add>, %327, %cst_123 [2] : vector<4x16x16xf32> to vector<4x16xf32>
    %329 = vector.shape_cast %328 : vector<4x16xf32> to vector<4x16x1xf32>
    %330 = tpu.reciprocal %329 {approx = true} : vector<4x16x1xf32> -> vector<4x16x1xf32>
    %331 = vector.broadcast %330 : vector<4x16x1xf32> to vector<4x16x16xf32>
    %332 = arith.mulf %327, %331 : vector<4x16x16xf32>
    %333 = arith.truncf %332 : vector<4x16x16xf32> to vector<4x16x16xbf16>
    "tpu.trace_start"() <{level = 10 : i32, message = "bqk,bkd->bqd"}> : () -> ()
    %cst_124 = arith.constant dense<0.000000e+00> : vector<4x16x32xf32>
    %334 = tpu.matmul %333, %321, %cst_124 {dimension_numbers = #tpu.dot_dimension_numbers<[2], [1], [1], [2], [0, 0, 0, 1, 1, 2], [0], [0]>} : vector<4x16x16xbf16>, vector<4x16x32xbf16>, vector<4x16x32xf32> -> vector<4x16x32xf32>
    "tpu.trace_stop"() : () -> ()
    %335 = arith.addf %313, %334 : vector<4x16x32xf32>
    %336 = vector.shape_cast %32 : vector<1x32xf32> to vector<1x1x32xf32>
    %337 = vector.broadcast %336 : vector<1x1x32xf32> to vector<4x16x32xf32>
    %338 = arith.mulf %287, %337 : vector<4x16x32xf32>
    %339 = arith.truncf %338 : vector<4x16x32xf32> to vector<4x16x32xbf16>
    %340 = vector.shape_cast %30 : vector<1x32xf32> to vector<1x1x32xf32>
    %341 = vector.broadcast %340 : vector<1x1x32xf32> to vector<4x16x32xf32>
    %342 = arith.mulf %291, %341 : vector<4x16x32xf32>
    %343 = arith.truncf %342 : vector<4x16x32xf32> to vector<4x16x32xbf16>
    "tpu.trace_start"() <{level = 10 : i32, message = "bqd,bkd->bqk"}> : () -> ()
    %cst_125 = arith.constant dense<0.000000e+00> : vector<4x16x16xf32>
    %344 = tpu.matmul %339, %292, %cst_125 {dimension_numbers = #tpu.dot_dimension_numbers<[2], [2], [1], [1], [0, 0, 0, 1, 1, 1], [0], [0]>} : vector<4x16x32xbf16>, vector<4x16x32xbf16>, vector<4x16x16xf32> -> vector<4x16x16xf32>
    "tpu.trace_stop"() : () -> ()
    %cst_126 = arith.constant dense<0xFF800000> : vector<4x16xf32>
    %345 = vector.multi_reduction <maximumf>, %344, %cst_126 [2] : vector<4x16x16xf32> to vector<4x16xf32>
    %346 = vector.shape_cast %345 : vector<4x16xf32> to vector<4x16x1xf32>
    %347 = vector.broadcast %346 : vector<4x16x1xf32> to vector<4x16x16xf32>
    %348 = arith.subf %344, %347 : vector<4x16x16xf32>
    %349 = math.exp %348 : vector<4x16x16xf32>
    %cst_127 = arith.constant dense<0.000000e+00> : vector<4x16xf32>
    %350 = vector.multi_reduction <add>, %349, %cst_127 [2] : vector<4x16x16xf32> to vector<4x16xf32>
    %351 = vector.shape_cast %350 : vector<4x16xf32> to vector<4x16x1xf32>
    %352 = tpu.reciprocal %351 {approx = true} : vector<4x16x1xf32> -> vector<4x16x1xf32>
    %353 = vector.broadcast %352 : vector<4x16x1xf32> to vector<4x16x16xf32>
    %354 = arith.mulf %349, %353 : vector<4x16x16xf32>
    %355 = arith.truncf %354 : vector<4x16x16xf32> to vector<4x16x16xbf16>
    "tpu.trace_start"() <{level = 10 : i32, message = "bqk,bkd->bqd"}> : () -> ()
    %cst_128 = arith.constant dense<0.000000e+00> : vector<4x16x32xf32>
    %356 = tpu.matmul %355, %343, %cst_128 {dimension_numbers = #tpu.dot_dimension_numbers<[2], [1], [1], [2], [0, 0, 0, 1, 1, 2], [0], [0]>} : vector<4x16x16xbf16>, vector<4x16x32xbf16>, vector<4x16x32xf32> -> vector<4x16x32xf32>
    "tpu.trace_stop"() : () -> ()
    %357 = arith.addf %335, %356 : vector<4x16x32xf32>
    %358 = vector.shape_cast %41 : vector<1x32xf32> to vector<1x1x32xf32>
    %359 = vector.broadcast %358 : vector<1x1x32xf32> to vector<4x16x32xf32>
    %360 = arith.mulf %287, %359 : vector<4x16x32xf32>
    %361 = arith.truncf %360 : vector<4x16x32xf32> to vector<4x16x32xbf16>
    %362 = vector.shape_cast %39 : vector<1x32xf32> to vector<1x1x32xf32>
    %363 = vector.broadcast %362 : vector<1x1x32xf32> to vector<4x16x32xf32>
    %364 = arith.mulf %291, %363 : vector<4x16x32xf32>
    %365 = arith.truncf %364 : vector<4x16x32xf32> to vector<4x16x32xbf16>
    "tpu.trace_start"() <{level = 10 : i32, message = "bqd,bkd->bqk"}> : () -> ()
    %cst_129 = arith.constant dense<0.000000e+00> : vector<4x16x16xf32>
    %366 = tpu.matmul %361, %292, %cst_129 {dimension_numbers = #tpu.dot_dimension_numbers<[2], [2], [1], [1], [0, 0, 0, 1, 1, 1], [0], [0]>} : vector<4x16x32xbf16>, vector<4x16x32xbf16>, vector<4x16x16xf32> -> vector<4x16x16xf32>
    "tpu.trace_stop"() : () -> ()
    %cst_130 = arith.constant dense<0xFF800000> : vector<4x16xf32>
    %367 = vector.multi_reduction <maximumf>, %366, %cst_130 [2] : vector<4x16x16xf32> to vector<4x16xf32>
    %368 = vector.shape_cast %367 : vector<4x16xf32> to vector<4x16x1xf32>
    %369 = vector.broadcast %368 : vector<4x16x1xf32> to vector<4x16x16xf32>
    %370 = arith.subf %366, %369 : vector<4x16x16xf32>
    %371 = math.exp %370 : vector<4x16x16xf32>
    %cst_131 = arith.constant dense<0.000000e+00> : vector<4x16xf32>
    %372 = vector.multi_reduction <add>, %371, %cst_131 [2] : vector<4x16x16xf32> to vector<4x16xf32>
    %373 = vector.shape_cast %372 : vector<4x16xf32> to vector<4x16x1xf32>
    %374 = tpu.reciprocal %373 {approx = true} : vector<4x16x1xf32> -> vector<4x16x1xf32>
    %375 = vector.broadcast %374 : vector<4x16x1xf32> to vector<4x16x16xf32>
    %376 = arith.mulf %371, %375 : vector<4x16x16xf32>
    %377 = arith.truncf %376 : vector<4x16x16xf32> to vector<4x16x16xbf16>
    "tpu.trace_start"() <{level = 10 : i32, message = "bqk,bkd->bqd"}> : () -> ()
    %cst_132 = arith.constant dense<0.000000e+00> : vector<4x16x32xf32>
    %378 = tpu.matmul %377, %365, %cst_132 {dimension_numbers = #tpu.dot_dimension_numbers<[2], [1], [1], [2], [0, 0, 0, 1, 1, 2], [0], [0]>} : vector<4x16x16xbf16>, vector<4x16x32xbf16>, vector<4x16x32xf32> -> vector<4x16x32xf32>
    "tpu.trace_stop"() : () -> ()
    %379 = arith.addf %357, %378 : vector<4x16x32xf32>
    %380 = vector.shape_cast %379 : vector<4x16x32xf32> to vector<64x32xf32>
    %381 = arith.truncf %380 : vector<64x32xf32> to vector<64x32xbf16>
    %cst_133 = arith.constant dense<0.000000e+00> : vector<64x32xf32>
    %382 = tpu.matmul %381, %239, %cst_133 {dimension_numbers = #tpu.dot_dimension_numbers<[1], [0], [0], [1], [0, 0, 1, 1], [], []>} : vector<64x32xbf16>, vector<32x32xbf16>, vector<64x32xf32> -> vector<64x32xf32>
    %383 = arith.addf %235, %382 : vector<64x32xf32>
    %384 = vector.broadcast %251 : vector<1x32xf32> to vector<64x32xf32>
    %385 = arith.addf %383, %384 : vector<64x32xf32>
    %cst_134 = arith.constant dense<0.000000e+00> : vector<64xf32>
    %386 = vector.multi_reduction <add>, %385, %cst_134 [1] : vector<64x32xf32> to vector<64xf32>
    %387 = vector.shape_cast %386 : vector<64xf32> to vector<64x1xf32>
    %cst_135 = arith.constant 3.200000e+01 : f32
    %388 = vector.broadcast %cst_135 : f32 to vector<64x1xf32>
    %389 = arith.divf %387, %388 : vector<64x1xf32>
    %390 = vector.broadcast %389 : vector<64x1xf32> to vector<64x32xf32>
    %391 = arith.subf %385, %390 : vector<64x32xf32>
    %392 = arith.mulf %391, %391 : vector<64x32xf32>
    %cst_136 = arith.constant dense<0.000000e+00> : vector<64xf32>
    %393 = vector.multi_reduction <add>, %392, %cst_136 [1] : vector<64x32xf32> to vector<64xf32>
    %394 = vector.shape_cast %393 : vector<64xf32> to vector<64x1xf32>
    %cst_137 = arith.constant 3.200000e+01 : f32
    %395 = vector.broadcast %cst_137 : f32 to vector<64x1xf32>
    %396 = arith.divf %394, %395 : vector<64x1xf32>
    %397 = vector.broadcast %389 : vector<64x1xf32> to vector<64x32xf32>
    %398 = arith.subf %385, %397 : vector<64x32xf32>
    %cst_138 = arith.constant 9.99999997E-7 : f32
    %399 = vector.broadcast %cst_138 : f32 to vector<64x1xf32>
    %400 = arith.addf %396, %399 : vector<64x1xf32>
    %401 = math.rsqrt %400 : vector<64x1xf32>
    %402 = vector.broadcast %401 : vector<64x1xf32> to vector<64x32xf32>
    %403 = arith.mulf %398, %402 : vector<64x32xf32>
    %404 = vector.broadcast %253 : vector<1x32xf32> to vector<64x32xf32>
    %405 = arith.mulf %403, %404 : vector<64x32xf32>
    %406 = vector.broadcast %255 : vector<1x32xf32> to vector<64x32xf32>
    %407 = arith.addf %405, %406 : vector<64x32xf32>
    %408 = arith.truncf %407 : vector<64x32xf32> to vector<64x32xbf16>
    %cst_139 = arith.constant dense<0.000000e+00> : vector<64x64xf32>
    %409 = tpu.matmul %408, %241, %cst_139 {dimension_numbers = #tpu.dot_dimension_numbers<[1], [0], [0], [1], [0, 0, 1, 1], [], []>} : vector<64x32xbf16>, vector<32x64xbf16>, vector<64x64xf32> -> vector<64x64xf32>
    %410 = vector.broadcast %257 : vector<1x64xf32> to vector<64x64xf32>
    %411 = arith.addf %409, %410 : vector<64x64xf32>
    %412 = arith.mulf %411, %411 : vector<64x64xf32>
    %413 = arith.mulf %411, %412 : vector<64x64xf32>
    %cst_140 = arith.constant 4.471500e-02 : f32
    %414 = vector.broadcast %cst_140 : f32 to vector<64x64xf32>
    %415 = arith.mulf %414, %413 : vector<64x64xf32>
    %416 = arith.addf %411, %415 : vector<64x64xf32>
    %cst_141 = arith.constant 0.797884583 : f32
    %417 = vector.broadcast %cst_141 : f32 to vector<64x64xf32>
    %418 = arith.mulf %417, %416 : vector<64x64xf32>
    %419 = math.tanh %418 : vector<64x64xf32>
    %cst_142 = arith.constant 1.000000e+00 : f32
    %420 = vector.broadcast %cst_142 : f32 to vector<64x64xf32>
    %421 = arith.addf %420, %419 : vector<64x64xf32>
    %cst_143 = arith.constant 5.000000e-01 : f32
    %422 = vector.broadcast %cst_143 : f32 to vector<64x64xf32>
    %423 = arith.mulf %422, %421 : vector<64x64xf32>
    %424 = arith.mulf %411, %423 : vector<64x64xf32>
    %425 = arith.truncf %424 : vector<64x64xf32> to vector<64x64xbf16>
    %cst_144 = arith.constant dense<0.000000e+00> : vector<64x32xf32>
    %426 = tpu.matmul %425, %243, %cst_144 {dimension_numbers = #tpu.dot_dimension_numbers<[1], [0], [0], [1], [0, 0, 1, 1], [], []>} : vector<64x64xbf16>, vector<64x32xbf16>, vector<64x32xf32> -> vector<64x32xf32>
    %427 = arith.addf %385, %426 : vector<64x32xf32>
    %428 = vector.broadcast %259 : vector<1x32xf32> to vector<64x32xf32>
    %429 = arith.addf %427, %428 : vector<64x32xf32>
    %c0_145 = arith.constant 0 : index
    %c0_146 = arith.constant 0 : index
    %430 = vector.load %arg9[%c0_145, %c0_146] : memref<64x32xf32, #tpu.memory_space<vmem>>, vector<64x32xf32>
    tpu.vector_store %arg9[%c0_145, %c0_146], %429 {strides = array<i32>} : memref<64x32xf32, #tpu.memory_space<vmem>>, vector<64x32xf32>,
    return
  }
  func.func @transform_0(%arg0: i32) -> (i32, i32) {
    %c0_i32 = arith.constant 0 : i32
    %c0_i32_0 = arith.constant 0 : i32
    %c0_i32_1 = arith.constant 0 : i32
    return %c0_i32, %c0_i32_0 : i32, i32
  }
  func.func @transform_1(%arg0: i32) -> (i32, i32) {
    %c0_i32 = arith.constant 0 : i32
    %c0_i32_0 = arith.constant 0 : i32
    %c0_i32_1 = arith.constant 0 : i32
    return %c0_i32, %c0_i32_0 : i32, i32
  }
  func.func @transform_2(%arg0: i32) -> (i32, i32) {
    %c0_i32 = arith.constant 0 : i32
    %c0_i32_0 = arith.constant 0 : i32
    %c0_i32_1 = arith.constant 0 : i32
    return %c0_i32, %c0_i32_0 : i32, i32
  }
  func.func @transform_3(%arg0: i32) -> (i32, i32, i32) {
    %c0_i32 = arith.constant 0 : i32
    %c0_i32_0 = arith.constant 0 : i32
    %c0_i32_1 = arith.constant 0 : i32
    %c0_i32_2 = arith.constant 0 : i32
    return %c0_i32, %c0_i32_0, %c0_i32_1 : i32, i32, i32
  }
  func.func @transform_4(%arg0: i32) -> (i32, i32, i32) {
    %c0_i32 = arith.constant 0 : i32
    %c0_i32_0 = arith.constant 0 : i32
    %c0_i32_1 = arith.constant 0 : i32
    %c0_i32_2 = arith.constant 0 : i32
    return %c0_i32, %c0_i32_0, %c0_i32_1 : i32, i32, i32
  }
  func.func @transform_5(%arg0: i32) -> (i32, i32, i32) {
    %c0_i32 = arith.constant 0 : i32
    %c0_i32_0 = arith.constant 0 : i32
    %c0_i32_1 = arith.constant 0 : i32
    %c0_i32_2 = arith.constant 0 : i32
    return %c0_i32, %c0_i32_0, %c0_i32_1 : i32, i32, i32
  }
  func.func @transform_6(%arg0: i32) -> (i32, i32, i32) {
    %c0_i32 = arith.constant 0 : i32
    %c0_i32_0 = arith.constant 0 : i32
    %c0_i32_1 = arith.constant 0 : i32
    %c0_i32_2 = arith.constant 0 : i32
    return %c0_i32, %c0_i32_0, %c0_i32_1 : i32, i32, i32
  }
  func.func @transform_7(%arg0: i32) -> (i32, i32, i32) {
    %c0_i32 = arith.constant 0 : i32
    %c0_i32_0 = arith.constant 0 : i32
    %c0_i32_1 = arith.constant 0 : i32
    %c0_i32_2 = arith.constant 0 : i32
    return %c0_i32, %c0_i32_0, %c0_i32_1 : i32, i32, i32
  }
  func.func @transform_8(%arg0: i32) -> (i32, i32) {
    %c0_i32 = arith.constant 0 : i32
    %c0_i32_0 = arith.constant 0 : i32
    %c0_i32_1 = arith.constant 0 : i32
    return %c0_i32, %c0_i32_0 : i32, i32
  }
}

</mosaic_0001>

<bundles_post_ra>
// kernel: tpu_custom_call.1
= control target key start
LH: loop header
LB: loop body
LE: loop exit
PB: predicated region body
PF: predicated region fallthrough
CT: control target
= control target key end

     0   :  { %vm90_vm0 = vcmask 392192   ;;  %vm222_vm1 = vcmask 261120   ;;  %vm7115_vm2 = vmmov 0   ;;  %s7116_s19 = smov 96   ;;  %vm681_vm7 = vcmask 130048   ;;  %s7117_s20 = smov 64   ;;  %s9210_s1 = inlined_call_operand.vmem [shape: bf16[48,32], index: 1, kind: input, shape index: {}]   ;;  %s9211_s0 = inlined_call_operand.vmem [shape: bf16[64,48], index: 0, kind: input, shape index: {}]   ;;  %s9212_s2 = inlined_call_operand.vmem [shape: f32[64,32], index: 2, kind: input, shape index: {}]   ;;  %s9213_s3 = inlined_call_operand.vmem [shape: bf16[2,32,96], index: 3, kind: input, shape index: {}]   ;;  %s9214_s7 = inlined_call_operand.vmem [shape: f32[2,8,128], index: 7, kind: input, shape index: {}]   ;;  %s9215_s4 = inlined_call_operand.vmem [shape: bf16[2,32,32], index: 4, kind: input, shape index: {}]   ;;  %s9216_s5 = inlined_call_operand.vmem [shape: bf16[2,32,64], index: 5, kind: input, shape index: {}]   ;;  %s9217_s6 = inlined_call_operand.vmem [shape: bf16[2,64,32], index: 6, kind: input, shape index: {}]   ;;  %s9218_s8 = inlined_call_operand.vmem [shape: f32[64,32], index: 8, kind: output, shape index: {}]  }
   0x1   :  { %v6735_v0 = vld [vmem:[%s9210_s1] sm:$0xff]   ;;  %v6736_v1 = vld [vmem:[%s9210_s1 + $0x8] sm:$0xff]   ;;  %v6737_v3 = vld [vmem:[%s9210_s1 + $0x10] sm:$0xff]   ;;  %vm2884_vm14 = vcmask 523264  }
   0x2   :  { %6129 = vmatprep.subr.bf16.mxu0 %v6735_v0  ;;  %v6738_v2 = vld [vmem:[%s9211_s0] sm:$0xff]   ;;  %v6739_v4 = vld [vmem:[%s9211_s0 + $0x8] sm:$0xff]   ;;  %v6740_v5 = vld [vmem:[%s9211_s0 + $0x10] sm:$0xff]  }
   0x3   :  { %6130 = vmatpush3.bf16.msra.mxu0 %v6735_v0  ;;  %6135 = vmatprep.mubr.msk.bf16.mxu0 %vm90_vm0, %v6738_v2  ;;  %v6741_v6 = vld [vmem:[%s9211_s0 + $0x18] sm:$0xff]   ;;  %v46_v7 = vld [vmem:[%s9212_s2 + $0x10] sm:$0xff]  ;;  %v44_v8 = vld [vmem:[%s9212_s2] sm:$0xff] }
   0x4   :  { %6131 = vmatprep.subr.bf16.mxu0 %v6736_v1  ;;  %v47_v10 = vld [vmem:[%s9212_s2 + $0x18] sm:$0xff]  ;;  %v45_v13 = vld [vmem:[%s9212_s2 + $0x8] sm:$0xff]  ;;  %v48_v22 = vld [vmem:[%s9212_s2 + $0x20] sm:$0xff] }
   0x5   :  { %v50_v25 = vld [vmem:[%s9212_s2 + $0x30] sm:$0xff]  ;;  %v49_v27 = vld [vmem:[%s9212_s2 + $0x28] sm:$0xff]  ;;  %v51_v30 = vld [vmem:[%s9212_s2 + $0x38] sm:$0xff] }
   0x7   :  { %6132 = vmatpush3.bf16.msra.mxu0 %v6736_v1 }
   0x8   :  { %6133 = vmatprep.subr.bf16.mxu0 %v6737_v3 }
   0xb   :  { %6134 = vmatpush3.bf16.msra.mxu0 %v6737_v3 }
   0xe   :  { %6136 = vmatmul.mubr.msk.bf16.vlgmr.msra.gmra.mrb[0].mxu0 %vm90_vm0, %v6739_v4 }
   0xf   :  { %6139 = vmatprep.mubr.msk.bf16.mxu0 %vm90_vm0, %v6740_v5 }
  0x16   :  { %6140 = vmatmul.mubr.msk.bf16.gmra.mrb[4].mxu0 %vm90_vm0, %v6741_v6 }
  0xe1   :  { %v6137_v9 = vpop.f32.mrb[0].mxu0 }
  0xe2   :  { %v7193_v11 = vadd.f32 %v6137_v9, %v46_v7  ;;  %v137_v12 = vpop.f32.mrb[1].mxu0 }
  0xe3   :  { %v7198_v14 = vadd.f32 %v137_v12, %v44_v8  ;;  %v6138_v15 = vpop.f32.mrb[2].mxu0 }
  0xe4   :  { %v7200_v16 = vadd.f32 %v6138_v15, %v47_v10  ;;  %v140_v17 = vpop.f32.mrb[3].mxu0  ;;  %v229_v18 = vsel %vm222_vm1, %v7193_v11, 0.0 }
  0xe5   :  { %v7204_v19 = vadd.f32 %v140_v17, %v45_v13  ;;  %230 = vadd.xlane.f32.xlu1 %v229_v18  ;;  %v223_v20 = vsel %vm222_vm1, %v7198_v14, 0.0  ;;  %v6742_v18 = vld [vmem:[%s9213_s3] sm:$0xff]  }
  0xe6   :  { %224 = vadd.xlane.f32.xlu0 %v223_v20  ;;  %v232_v21 = vsel %vm222_vm1, %v7200_v16, 0.0  ;;  %6143 = vmatprep.subr.bf16.mxu0 %v6742_v18  ;;  %v6743_v20 = vld [vmem:[%s9213_s3 + $0x8] sm:$0xff]  }
  0xe7   :  { %v226_v24 = vsel %vm222_vm1, %v7204_v19, 0.0  ;;  %6631 = vmatprep.subr.bf16.mxu1 %v6742_v18  ;;  %6144 = vmatpush3.bf16.msra.mxu0 %v6742_v18 }
  0xe8   :  { %6633 = vmatpush3.bf16.msra.mxu1 %v6742_v18  ;;  %6145 = vmatprep.subr.bf16.mxu0 %v6743_v20 }
  0xe9   :  { %233 = vadd.xlane.f32.xlu1 %v232_v21  ;;  %v6141_v23 = vpop.f32.mrb[4].mxu0  ;;  %6632 = vmatprep.subr.bf16.mxu1 %v6743_v20 }
  0xea   :  { %v153_v26 = vpop.f32.mrb[5].mxu0  ;;  %227 = vadd.xlane.f32.xlu0 %v226_v24  ;;  %v7226_v32 = vadd.f32 %v6141_v23, %v50_v25 }
  0xeb   :  { %v7221_v28 = vadd.f32 %v153_v26, %v48_v22  ;;  %v6142_v29 = vpop.f32.mrb[6].mxu0  ;;  %6146 = vmatpush3.bf16.msra.mxu0 %v6743_v20 }
  0xec   :  { %v156_v31 = vpop.f32.mrb[7].mxu0  ;;  %v7232_v35 = vadd.f32 %v6142_v29, %v51_v30  ;;  %v241_v37 = vsel %vm222_vm1, %v7226_v32, 0.0  ;;  %6634 = vmatpush3.bf16.msra.mxu1 %v6743_v20 }
  0xed   :  { %v7228_v33 = vadd.f32 %v156_v31, %v49_v27  ;;  %v235_v34 = vsel %vm222_vm1, %v7221_v28, 0.0 }
  0xee   :  { %236 = vadd.xlane.f32.xlu0 %v235_v34  ;;  %v244_v38 = vsel %vm222_vm1, %v7232_v35, 0.0 }
  0xef   :  { %v238_v36 = vsel %vm222_vm1, %v7228_v33, 0.0 }
  0xf0   :  { %239 = vadd.xlane.f32.xlu1 %v238_v36 }
  0xf2   :  { %242 = vadd.xlane.f32.xlu0 %v241_v37 }
  0xf4   :  { %245 = vadd.xlane.f32.xlu1 %v244_v38 }
 0x172   :  { %v231_v39 = vpop.xlane.xlu1 %230 }
 0x173   :  { %v250_v40 = vmul.f32 0.03125, %v231_v39  ;;  %v225_v41 = vpop.xlane.xlu0 %224 }
 0x174   :  { %v248_v42 = vmul.f32 0.03125, %v225_v41 }
 0x175   :  { %v7241_v43 = vsub.f32 %v7193_v11, %v250_v40 }
 0x176   :  { %v7244_v44 = vsub.f32 %v7198_v14, %v248_v42  ;;  %v234_v45 = vpop.xlane.xlu1 %233 }
 0x177   :  { %v251_v46 = vmul.f32 0.03125, %v234_v45  ;;  %v228_v47 = vpop.xlane.xlu0 %227  ;;  %v266_v53 = vmul.f32 %v7241_v43, %v7241_v43 }
 0x178   :  { %v249_v48 = vmul.f32 0.03125, %v228_v47  ;;  %v264_v49 = vmul.f32 %v7244_v44, %v7244_v44 }
 0x179   :  { %v7249_v50 = vsub.f32 %v7200_v16, %v251_v46  ;;  %v278_v61 = vsel %vm222_vm1, %v266_v53, 0.0  ;;  %v5782_v53 = vld [vmem:[%s9214_s7] ss:$0 sm:$0xff] }
 0x17a   :  { %v7252_v51 = vsub.f32 %v7204_v19, %v249_v48  ;;  %v272_v52 = vsel %vm222_vm1, %v264_v49, 0.0 }
 0x17b   :  { %273 = vadd.xlane.f32.xlu0 %v272_v52  ;;  %v237_v54 = vpop.xlane.xlu0 %236  ;;  %v267_v58 = vmul.f32 %v7249_v50, %v7249_v50 }
 0x17c   :  { %v252_v55 = vmul.f32 0.03125, %v237_v54  ;;  %v265_v56 = vmul.f32 %v7252_v51, %v7252_v51 }
 0x17d   :  { %v240_v57 = vpop.xlane.xlu1 %239  ;;  %v281_v4 = vsel %vm222_vm1, %v267_v58, 0.0 }
 0x17e   :  { %v7262_v59 = vsub.f32 %v7221_v28, %v252_v55  ;;  %v253_v60 = vmul.f32 0.03125, %v240_v57  ;;  %v275_v62 = vsel %vm222_vm1, %v265_v56, 0.0 }
 0x17f   :  { %279 = vadd.xlane.f32.xlu0 %v278_v61  ;;  %276 = vadd.xlane.f32.xlu1 %v275_v62  ;;  %v243_v63 = vpop.xlane.xlu0 %242  ;;  %v5783_v61 = vld [vmem:[%s9214_s7 + $0x1] ss:$0 sm:$0xff] }
 0x180   :  { %v7267_v0 = vsub.f32 %v7228_v33, %v253_v60  ;;  %v254_v1 = vmul.f32 0.03125, %v243_v63  ;;  %v268_v2 = vmul.f32 %v7262_v59, %v7262_v59 }
 0x181   :  { %v246_v3 = vpop.xlane.xlu1 %245 }
 0x182   :  { %v7273_v5 = vsub.f32 %v7226_v32, %v254_v1  ;;  %v255_v6 = vmul.f32 0.03125, %v246_v3  ;;  %v284_v7 = vsel %vm222_vm1, %v268_v2, 0.0  ;;  %v269_v8 = vmul.f32 %v7267_v0, %v7267_v0 }
 0x183   :  { %282 = vadd.xlane.f32.xlu1 %v281_v4  ;;  %285 = vadd.xlane.f32.xlu0 %v284_v7 }
 0x184   :  { %v7279_v9 = vsub.f32 %v7232_v35, %v255_v6  ;;  %v270_v10 = vmul.f32 %v7273_v5, %v7273_v5  ;;  %v287_v12 = vsel %vm222_vm1, %v269_v8, 0.0 }
 0x186   :  { %v290_v13 = vsel %vm222_vm1, %v270_v10, 0.0  ;;  %v271_v15 = vmul.f32 %v7279_v9, %v7279_v9 }
 0x187   :  { %288 = vadd.xlane.f32.xlu1 %v287_v12  ;;  %291 = vadd.xlane.f32.xlu0 %v290_v13 }
 0x188   :  { %v293_v17 = vsel %vm222_vm1, %v271_v15, 0.0 }
 0x18b   :  { %294 = vadd.xlane.f32.xlu1 %v293_v17 }
 0x208   :  { %v274_v21 = vpop.xlane.xlu0 %273 }
 0x209   :  { %v296_v22 = vmul.f32 0.03125, %v274_v21 }
 0x20b   :  { %v304_v23 = vadd.f32 1e-06, %v296_v22 }
 0x20c   :  { %v277_v24 = vpop.xlane.xlu1 %276  ;;  %v280_v25 = vpop.xlane.xlu0 %279 }
 0x20d   :  { %6762 = vrsqrt.f32 %v304_v23  ;;  %v297_v26 = vmul.f32 0.03125, %v277_v24  ;;  %v298_v27 = vmul.f32 0.03125, %v280_v25 }
 0x20f   :  { %v305_v29 = vadd.f32 1e-06, %v297_v26  ;;  %v306_v30 = vadd.f32 1e-06, %v298_v27 }
 0x210   :  { %v283_v31 = vpop.xlane.xlu1 %282  ;;  %v286_v34 = vpop.xlane.xlu0 %285 }
 0x211   :  { %6764 = vrsqrt.f32 %v305_v29  ;;  %v299_v36 = vmul.f32 0.03125, %v283_v31  ;;  %v300_v37 = vmul.f32 0.03125, %v286_v34 }
 0x212   :  { %6766 = vrsqrt.f32 %v306_v30  ;;  %v5784_v30 = vld [vmem:[%s9214_s7 + $0x2] ss:$0 sm:$0xff] }
 0x213   :  { %v307_v38 = vadd.f32 1e-06, %v299_v36  ;;  %v308_v39 = vadd.f32 1e-06, %v300_v37 }
 0x214   :  { %v289_v40 = vpop.xlane.xlu1 %288  ;;  %v292_v41 = vpop.xlane.xlu0 %291 }
 0x215   :  { %6768 = vrsqrt.f32 %v307_v38  ;;  %v301_v42 = vmul.f32 0.03125, %v289_v40  ;;  %v302_v45 = vmul.f32 0.03125, %v292_v41 }
 0x216   :  { %6770 = vrsqrt.f32 %v308_v39 }
 0x217   :  { %v6763_v46 = vpop.eup %6762  ;;  %v309_v47 = vadd.f32 1e-06, %v301_v42  ;;  %v310_v48 = vadd.f32 1e-06, %v302_v45 }
 0x218   :  { %v295_v49 = vpop.xlane.xlu1 %294  ;;  %v320_v52 = vmul.f32 %v6763_v46, %v7244_v44 }
 0x219   :  { %6772 = vrsqrt.f32 %v309_v47  ;;  %v303_v54 = vmul.f32 0.03125, %v295_v49 }
 0x21a   :  { %6774 = vrsqrt.f32 %v310_v48  ;;  %v332_v60 = vmul.f32 %v5782_v53, %v320_v52 }
 0x21b   :  { %v6765_v55 = vpop.eup %6764  ;;  %v311_v56 = vadd.f32 1e-06, %v303_v54 }
 0x21c   :  { %v6767_v57 = vpop.eup %6766  ;;  %v321_v58 = vmul.f32 %v6765_v55, %v7252_v51  ;;  %v344_v4 = vadd.f32 %v5783_v61, %v332_v60 }
 0x21d   :  { %v322_v62 = vmul.f32 %v6767_v57, %v7241_v43  ;;  %6776 = vrsqrt.f32 %v311_v56  ;;  %v168_v57 = vlaneseq }
 0x21e   :  { %v333_v44 = vmul.f32 %v5782_v53, %v321_v58 }
 0x21f   :  { %v6769_v63 = vpop.eup %6768  ;;  %v334_v2 = vmul.f32 %v5782_v53, %v322_v62  ;;  %v7349_v58 = vand.u32 127, %v168_v57 }
 0x220   :  { %v6771_v1 = vpop.eup %6770  ;;  %v323_v3 = vmul.f32 %v6769_v63, %v7249_v50  ;;  %v345_v6 = vadd.f32 %v5783_v61, %v333_v44 }
 0x221   :  { %v324_v7 = vmul.f32 %v6771_v1, %v7262_v59  ;;  %v346_v13 = vadd.f32 %v5783_v61, %v334_v2  ;;  %vm171_vm3 = vcmp.lt.s32.totalorder %v7349_v58, 8  ;;  %vm176_vm4 = vcmp.ge.s32.totalorder %v7349_v58, 8 }
 0x222   :  { %v335_v8 = vmul.f32 %v5782_v53, %v323_v3  ;;  %v352_v51 = vpack.c.bf16 %v345_v6, %v344_v4  ;;  %vm177_vm5 = vcmp.lt.s32.totalorder %v7349_v58, 16  ;;  %vm182_vm8 = vcmp.ge.s32.totalorder %v7349_v58, 16 }
 0x223   :  { %v6773_v10 = vpop.eup %6772  ;;  %v336_v17 = vmul.f32 %v5782_v53, %v324_v7  ;;  %vm178_vm6 = vmand %vm176_vm4, %vm177_vm5  ;;  %vm183_vm9 = vcmp.lt.s32.totalorder %v7349_v58, 24  ;;  %vm188_vm11 = vcmp.ge.s32.totalorder %v7349_v58, 24  ;;  %vm189_vm12 = vcmp.lt.s32.totalorder %v7349_v58, 32 }
 0x224   :  { %v6775_v12 = vpop.eup %6774  ;;  %v347_v15 = vadd.f32 %v5783_v61, %v335_v8  ;;  %6147 = vmatprep.mubr.msk.bf16.mxu0 %vm222_vm1, %v352_v51  ;;  %v325_v43 = vmul.f32 %v6773_v10, %v7267_v0  ;;  %vm184_vm10 = vmand %vm182_vm8, %vm183_vm9 }
 0x225   :  { %v326_v18 = vmul.f32 %v6775_v12, %v7273_v5  ;;  %v348_v22 = vadd.f32 %v5783_v61, %v336_v17  ;;  %v9221_v5 = vmov 0.0   ;;  %vm190_vm13 = vmand %vm188_vm11, %vm189_vm12 }
 0x226   :  { %v353_v20 = vpack.c.bf16 %v347_v15, %v346_v13  ;;  %v337_v21 = vmul.f32 %v5782_v53, %v325_v43  ;;  %6161 = vmatprep.subr.bf16.mxu0 %v9221_v5  ;;  %6155 = vmatprep.subr.bf16.mxu1 %v9221_v5  ;;  %v7353_v60 = vsel %vm171_vm3, 1.0, %v9221_v5  ;;  %v7398_v17 = vsel %vm178_vm6, 1.0, %v9221_v5 }
 0x227   :  { %v6777_v50 = vpop.eup %6776  ;;  %v338_v24 = vmul.f32 %v5782_v53, %v326_v18  ;;  %v7359_v63 = vmul.f32 0.35355338, %v7353_v60 }
 0x228   :  { %6148 = vmatmul.mubr.msk.bf16.vlgmr.msra.gmra.mrb[8].mxu0 %vm222_vm1, %v353_v20  ;;  %v349_v59 = vadd.f32 %v5783_v61, %v337_v21  ;;  %v327_v23 = vmul.f32 %v6777_v50, %v7279_v9  ;;  %v7407_v50 = vmul.f32 0.35355338, %v7398_v17 }
 0x229   :  { %v350_v27 = vadd.f32 %v5783_v61, %v338_v24  ;;  %6163 = vmatprep.mubr.msk.bf16.mxu0 %vm7115_vm2, %v9221_v5 }
 0x22a   :  { %v354_v25 = vpack.c.bf16 %v349_v59, %v348_v22  ;;  %v339_v26 = vmul.f32 %v5782_v53, %v327_v23 }
 0x22c   :  { %6151 = vmatprep.mubr.msk.bf16.mxu1 %vm222_vm1, %v354_v25  ;;  %v351_v29 = vadd.f32 %v5783_v61, %v339_v26 }
 0x22e   :  { %v355_v0 = vpack.c.bf16 %v351_v29, %v350_v27 }
 0x230   :  { %6152 = vmatmul.mubr.msk.bf16.vlgmr.msra.gmra.mrb[0].mxu1 %vm222_vm1, %v355_v0 }
 0x231   :  { %6157 = vmatprep.mubr.msk.bf16.mxu1 %vm7115_vm2, %v9221_v5 }
 0x2fb   :  { %v6149_v9 = vpop.f32.mrb[8].mxu0 }
 0x2fc   :  { %v418_v31 = vpop.f32.mrb[9].mxu0  ;;  %v7321_v36 = vadd.f32 %v6149_v9, %v5784_v30 }
 0x2fd   :  { %v6150_v34 = vpop.f32.mrb[10].mxu0  ;;  %v7325_v39 = vadd.f32 %v5784_v30, %v418_v31 }
 0x2fe   :  { %v7323_v37 = vadd.f32 %v6150_v34, %v5784_v30  ;;  %v421_v38 = vpop.f32.mrb[11].mxu0  ;;  %v455_v4 = vmul.f32 %v7321_v36, %v7359_v63  ;;  %v776_v26 = vmul.f32 %v7321_v36, %v7407_v50 }
 0x2ff   :  { %v7327_v40 = vadd.f32 %v5784_v30, %v421_v38  ;;  %v453_v6 = vmul.f32 %v7325_v39, %v7359_v63  ;;  %v774_v23 = vmul.f32 %v7325_v39, %v7407_v50 }
 0x300   :  { %v450_v41 = vpack.c.bf16 %v7323_v37, %v7321_v36  ;;  %v456_v2 = vmul.f32 %v7323_v37, %v7359_v63  ;;  %v777_v25 = vmul.f32 %v7323_v37, %v7407_v50 }
 0x301   :  { %v449_v42 = vpack.c.bf16 %v7327_v40, %v7325_v39  ;;  %v454_v3 = vmul.f32 %v7327_v40, %v7359_v63  ;;  %v775_v59 = vmul.f32 %v7327_v40, %v7407_v50 }
 0x302   :  { %532 = vrot.lane.b32.xlu1 %v450_v41, %s7116_s19  ;;  %v462_v7 = vpack.c.bf16 %v456_v2, %v455_v4  ;;  %v783_v27 = vpack.c.bf16 %v777_v25, %v776_v26 }
 0x303   :  { %482 = vrot.lane.b32.xlu0 %v449_v42, %s7116_s19  ;;  %v6153_v45 = vpop.f32.mrb[0].mxu1  ;;  %v461_v8 = vpack.c.bf16 %v454_v3, %v453_v6  ;;  %v782_v24 = vpack.c.bf16 %v775_v59, %v774_v23 }
 0x304   :  { %v434_v46 = vpop.f32.mrb[1].mxu1  ;;  %v7343_v55 = vadd.f32 %v6153_v45, %v5784_v30 }
 0x305   :  { %v6154_v47 = vpop.f32.mrb[2].mxu1  ;;  %v7335_v49 = vadd.f32 %v5784_v30, %v434_v46 }
 0x306   :  { %v437_v48 = vpop.f32.mrb[3].mxu1  ;;  %v7339_v53 = vadd.f32 %v6154_v47, %v5784_v30  ;;  %v459_v21 = vmul.f32 %v7343_v55, %v7359_v63  ;;  %v780_v31 = vmul.f32 %v7343_v55, %v7407_v50 }
 0x307   :  { %v7337_v52 = vadd.f32 %v5784_v30, %v437_v48  ;;  %v457_v43 = vmul.f32 %v7335_v49, %v7359_v63  ;;  %v778_v0 = vmul.f32 %v7335_v49, %v7407_v50 }
 0x308   :  { %v452_v56 = vpack.c.bf16 %v7339_v53, %v7343_v55  ;;  %v460_v20 = vmul.f32 %v7339_v53, %v7359_v63  ;;  %v781_v30 = vmul.f32 %v7339_v53, %v7407_v50 }
 0x309   :  { %v451_v54 = vpack.c.bf16 %v7337_v52, %v7335_v49  ;;  %v458_v12 = vmul.f32 %v7337_v52, %v7359_v63  ;;  %v779_v29 = vmul.f32 %v7337_v52, %v7407_v50 }
 0x30a   :  { %v464_v22 = vpack.c.bf16 %v460_v20, %v459_v21  ;;  %v785_v34 = vpack.c.bf16 %v781_v30, %v780_v31 }
 0x30b   :  { %582 = vrot.lane.b32.xlu1 %v451_v54, %s7116_s19  ;;  %v463_v18 = vpack.c.bf16 %v458_v12, %v457_v43  ;;  %v784_v9 = vpack.c.bf16 %v779_v29, %v778_v0 }
 0x30f   :  { %632 = vrot.lane.b32.xlu1 %v452_v56, %s7116_s19 }
 0x374   :  { %v533_v61 = vpop.permute.xlu1 %532 }
 0x375   :  { %v7356_v62 = vsel %vm222_vm1, %v533_v61, 0  ;;  %v483_v44 = vpop.permute.xlu0 %482 }
 0x376   :  { %v7362_v1 = vsel %vm222_vm1, %v483_v44, 0  ;;  %6162 = vmatpush3.bf16.xpose.msra.mxu0 %v7356_v62 }
 0x377   :  { %6156 = vmatpush3.bf16.xpose.msra.mxu1 %v7362_v1  ;;  %6173 = vmatprep.subr.bf16.mxu0 %v9221_v5 }
 0x378   :  { %6167 = vmatprep.subr.bf16.mxu1 %v9221_v5 }
 0x37d   :  { %6164 = vmatmul.mubr.msk.bf16.vlgmr.msra.gmra.mrb[12].mxu0 %vm222_vm1, %v462_v7  ;;  %v583_v51 = vpop.permute.xlu1 %582 }
 0x37e   :  { %v7380_v10 = vsel %vm222_vm1, %v583_v51, 0  ;;  %6158 = vmatmul.mubr.msk.bf16.vlgmr.msra.gmra.mrb[4].mxu1 %vm222_vm1, %v461_v8  ;;  %6175 = vmatprep.mubr.msk.bf16.mxu0 %vm7115_vm2, %v9221_v5 }
 0x37f   :  { %6168 = vmatpush3.bf16.xpose.msra.mxu1 %v7380_v10  ;;  %6169 = vmatprep.mubr.msk.bf16.mxu1 %vm7115_vm2, %v9221_v5 }
 0x380   :  { %6179 = vmatprep.subr.bf16.mxu1 %v9221_v5 }
 0x381   :  { %v633_v13 = vpop.permute.xlu1 %632 }
 0x382   :  { %v7392_v15 = vsel %vm222_vm1, %v633_v13, 0 }
 0x383   :  { %6174 = vmatpush3.bf16.xpose.msra.mxu0 %v7392_v15 }
 0x384   :  { %6185 = vmatprep.subr.bf16.mxu0 %v9221_v5 }
 0x386   :  { %6170 = vmatmul.mubr.msk.bf16.vlgmr.msra.gmra.mrb[8].mxu1 %vm222_vm1, %v463_v18 }
 0x387   :  { %6180 = vmatpush3.bf16.xpose.msra.mxu1 %v7362_v1  ;;  %6181 = vmatprep.mubr.msk.bf16.mxu1 %vm7115_vm2, %v9221_v5 }
 0x388   :  { %6191 = vmatprep.subr.bf16.mxu1 %v9221_v5 }
 0x38a   :  { %6176 = vmatmul.mubr.msk.bf16.vlgmr.msra.gmra.mrb[16].mxu0 %vm222_vm1, %v464_v22 }
 0x38b   :  { %6186 = vmatpush3.bf16.xpose.msra.mxu0 %v7356_v62  ;;  %6187 = vmatprep.mubr.msk.bf16.mxu0 %vm7115_vm2, %v9221_v5 }
 0x38c   :  { %6197 = vmatprep.subr.bf16.mxu0 %v9221_v5 }
 0x38e   :  { %6182 = vmatmul.mubr.msk.bf16.vlgmr.msra.gmra.mrb[12].mxu1 %vm222_vm1, %v782_v24 }
 0x38f   :  { %6192 = vmatpush3.bf16.xpose.msra.mxu1 %v7380_v10  ;;  %6193 = vmatprep.mubr.msk.bf16.mxu1 %vm7115_vm2, %v9221_v5 }
 0x390   :  { %6203 = vmatprep.subr.bf16.mxu1 %v9221_v5 }
 0x392   :  { %6188 = vmatmul.mubr.msk.bf16.vlgmr.msra.gmra.mrb[20].mxu0 %vm222_vm1, %v783_v27 }
 0x393   :  { %6198 = vmatpush3.bf16.xpose.msra.mxu0 %v7392_v15  ;;  %6199 = vmatprep.mubr.msk.bf16.mxu0 %vm7115_vm2, %v9221_v5 }
 0x394   :  { %6209 = vmatprep.subr.bf16.mxu0 %v9221_v5 }
 0x396   :  { %6194 = vmatmul.mubr.msk.bf16.vlgmr.msra.gmra.mrb[16].mxu1 %vm222_vm1, %v784_v9 }
 0x397   :  { %6205 = vmatprep.mubr.msk.bf16.mxu1 %vm7115_vm2, %v9221_v5 }
 0x39a   :  { %6200 = vmatmul.mubr.msk.bf16.vlgmr.msra.gmra.mrb[24].mxu0 %vm222_vm1, %v785_v34 }
 0x39b   :  { %6211 = vmatprep.mubr.msk.bf16.mxu0 %vm7115_vm2, %v9221_v5 }
 0x450   :  { %v7450_v38 = vpop.f32.mrb[12].mxu0 }
 0x451   :  { %v7452_v41 = vpop.f32.mrb[4].mxu1  ;;  %v6165_v42 = vpop.f32.mrb[13].mxu0  ;;  %v688_v45 = vsel %vm681_vm7, %v7450_v38, -inf }
 0x452   :  { %v7456_v46 = vpop.f32.mrb[14].mxu0  ;;  %689 = vmax.xlane.f32.xlu0 %v688_v45  ;;  %v6159_v47 = vpop.f32.mrb[5].mxu1  ;;  %v682_v61 = vsel %vm681_vm7, %v7452_v41, -inf }
 0x453   :  { %v7458_v48 = vpop.f32.mrb[6].mxu1  ;;  %v6166_v54 = vpop.f32.mrb[15].mxu0  ;;  %v691_v56 = vsel %vm681_vm7, %v7456_v46, -inf }
 0x454   :  { %692 = vmax.xlane.f32.xlu1 %v691_v56  ;;  %v6160_v57 = vpop.f32.mrb[7].mxu1  ;;  %v685_v44 = vsel %vm681_vm7, %v7458_v48, -inf }
 0x456   :  { %683 = vmax.xlane.f32.xlu0 %v682_v61 }
 0x458   :  { %686 = vmax.xlane.f32.xlu1 %v685_v44 }
 0x459   :  { %v7466_v2 = vpop.f32.mrb[8].mxu1 }
 0x45a   :  { %v6171_v3 = vpop.f32.mrb[9].mxu1  ;;  %v694_v21 = vsel %vm681_vm7, %v7466_v2, -inf }
 0x45b   :  { %v7468_v4 = vpop.f32.mrb[10].mxu1 }
 0x45c   :  { %v6172_v6 = vpop.f32.mrb[11].mxu1  ;;  %v697_v23 = vsel %vm681_vm7, %v7468_v4, -inf }
 0x45d   :  { %v7470_v7 = vpop.f32.mrb[16].mxu0 }
 0x45e   :  { %v6177_v8 = vpop.f32.mrb[17].mxu0  ;;  %v700_v51 = vsel %vm681_vm7, %v7470_v7, -inf }
 0x45f   :  { %v7474_v12 = vpop.f32.mrb[18].mxu0  ;;  %701 = vmax.xlane.f32.xlu0 %v700_v51 }
 0x460   :  { %v6178_v13 = vpop.f32.mrb[19].mxu0  ;;  %v703_v43 = vsel %vm681_vm7, %v7474_v12, -inf }
 0x461   :  { %704 = vmax.xlane.f32.xlu1 %v703_v43  ;;  %v7478_v18 = vpop.f32.mrb[12].mxu1 }
 0x462   :  { %v6183_v20 = vpop.f32.mrb[13].mxu1  ;;  %v978_v31 = vsel %vm681_vm7, %v7478_v18, -inf }
 0x463   :  { %695 = vmax.xlane.f32.xlu0 %v694_v21  ;;  %v7482_v22 = vpop.f32.mrb[14].mxu1 }
 0x464   :  { %v6184_v59 = vpop.f32.mrb[15].mxu1  ;;  %v981_v0 = vsel %vm681_vm7, %v7482_v22, -inf }
 0x465   :  { %v7486_v24 = vpop.f32.mrb[20].mxu0  ;;  %698 = vmax.xlane.f32.xlu1 %v697_v23 }
 0x466   :  { %v6189_v25 = vpop.f32.mrb[21].mxu0  ;;  %v984_v26 = vsel %vm681_vm7, %v7486_v24, -inf }
 0x467   :  { %v7490_v27 = vpop.f32.mrb[22].mxu0  ;;  %985 = vmax.xlane.f32.xlu0 %v984_v26 }
 0x468   :  { %v6190_v29 = vpop.f32.mrb[23].mxu0  ;;  %v987_v54 = vsel %vm681_vm7, %v7490_v27, -inf }
 0x469   :  { %982 = vmax.xlane.f32.xlu1 %v981_v0  ;;  %v7494_v9 = vpop.f32.mrb[16].mxu1 }
 0x46a   :  { %v6195_v30 = vpop.f32.mrb[17].mxu1  ;;  %v990_v44 = vsel %vm681_vm7, %v7494_v9, -inf }
 0x46b   :  { %979 = vmax.xlane.f32.xlu0 %v978_v31  ;;  %v7498_v34 = vpop.f32.mrb[18].mxu1 }
 0x46c   :  { %v6196_v42 = vpop.f32.mrb[19].mxu1  ;;  %v993_v6 = vsel %vm681_vm7, %v7498_v34, -inf }
 0x46d   :  { %v7500_v45 = vpop.f32.mrb[24].mxu0 }
 0x46e   :  { %v6201_v47 = vpop.f32.mrb[25].mxu0  ;;  %v996_v61 = vsel %vm681_vm7, %v7500_v45, -inf }
 0x46f   :  { %v7504_v56 = vpop.f32.mrb[26].mxu0  ;;  %988 = vmax.xlane.f32.xlu0 %v987_v54 }
 0x470   :  { %v6202_v57 = vpop.f32.mrb[27].mxu0  ;;  %v999_v3 = vsel %vm681_vm7, %v7504_v56, -inf }
 0x473   :  { %997 = vmax.xlane.f32.xlu0 %v996_v61 }
 0x477   :  { %991 = vmax.xlane.f32.xlu0 %v990_v44 }
 0x47a   :  { %466 = vrot.lane.b32.xlu1 %v7353_v60, %s7117_s20 }
 0x48d   :  { %787 = vrot.lane.b32.xlu0 %v7398_v17, %s7117_s20 }
 0x49e   :  { %1000 = vmax.xlane.f32.xlu1 %v999_v3 }
 0x4a2   :  { %994 = vmax.xlane.f32.xlu1 %v993_v6 }
 0x4df   :  { %v690_v8 = vpop.xlane.xlu0 %689 }
 0x4e0   :  { %v708_v51 = vsub.f32 %v7450_v38, %v690_v8 }
 0x4e1   :  { %v693_v13 = vpop.xlane.xlu1 %692 }
 0x4e2   :  { %v718_v43 = vmul.f32 1.442695, %v708_v51  ;;  %v709_v20 = vsub.f32 %v7456_v46, %v693_v13 }
 0x4e3   :  { %v684_v21 = vpop.xlane.xlu0 %683 }
 0x4e4   :  { %6778 = vpow2.f32 %v718_v43  ;;  %v720_v60 = vmul.f32 1.442695, %v709_v20  ;;  %v706_v17 = vsub.f32 %v7452_v41, %v684_v21 }
 0x4e5   :  { %v687_v59 = vpop.xlane.xlu1 %686 }
 0x4e6   :  { %6780 = vpow2.f32 %v720_v60  ;;  %v714_v23 = vmul.f32 1.442695, %v706_v17  ;;  %v707_v25 = vsub.f32 %v7458_v48, %v687_v59 }
 0x4e8   :  { %6782 = vpow2.f32 %v714_v23  ;;  %v716_v26 = vmul.f32 1.442695, %v707_v25 }
 0x4ea   :  { %6784 = vpow2.f32 %v716_v26 }
 0x4ec   :  { %v702_v29 = vpop.xlane.xlu0 %701 }
 0x4ed   :  { %v712_v38 = vsub.f32 %v7470_v7, %v702_v29 }
 0x4ee   :  { %v7523_v0 = vpop.eup %6778  ;;  %v705_v30 = vpop.xlane.xlu1 %704 }
 0x4ef   :  { %v726_v46 = vmul.f32 1.442695, %v712_v38  ;;  %v713_v31 = vsub.f32 %v7474_v12, %v705_v30  ;;  %v736_v41 = vsel %vm681_vm7, %v7523_v0, 0.0 }
 0x4f0   :  { %v7528_v42 = vpop.eup %6780  ;;  %737 = vadd.xlane.f32.xlu0 %v736_v41  ;;  %v696_v47 = vpop.xlane.xlu0 %695 }
 0x4f1   :  { %6786 = vpow2.f32 %v726_v46  ;;  %v728_v48 = vmul.f32 1.442695, %v713_v31  ;;  %v710_v54 = vsub.f32 %v7466_v2, %v696_v47  ;;  %v739_v7 = vsel %vm681_vm7, %v7528_v42, 0.0 }
 0x4f2   :  { %v7533_v57 = vpop.eup %6782  ;;  %v699_v61 = vpop.xlane.xlu1 %698  ;;  %740 = vadd.xlane.f32.xlu1 %v739_v7 }
 0x4f3   :  { %6788 = vpow2.f32 %v728_v48  ;;  %v722_v12 = vmul.f32 1.442695, %v710_v54  ;;  %v711_v44 = vsub.f32 %v7468_v4, %v699_v61  ;;  %v730_v3 = vsel %vm681_vm7, %v7533_v57, 0.0 }
 0x4f4   :  { %v7538_v6 = vpop.eup %6784  ;;  %731 = vadd.xlane.f32.xlu0 %v730_v3  ;;  %v986_v8 = vpop.xlane.xlu0 %985 }
 0x4f5   :  { %6790 = vpow2.f32 %v722_v12  ;;  %v724_v2 = vmul.f32 1.442695, %v711_v44  ;;  %v1004_v51 = vsub.f32 %v7486_v24, %v986_v8  ;;  %v733_v13 = vsel %vm681_vm7, %v7538_v6, 0.0 }
 0x4f6   :  { %v983_v43 = vpop.xlane.xlu1 %982  ;;  %734 = vadd.xlane.f32.xlu1 %v733_v13 }
 0x4f7   :  { %6792 = vpow2.f32 %v724_v2  ;;  %v1014_v20 = vmul.f32 1.442695, %v1004_v51  ;;  %v1003_v4 = vsub.f32 %v7482_v22, %v983_v43 }
 0x4f8   :  { %v980_v21 = vpop.xlane.xlu0 %979 }
 0x4f9   :  { %6794 = vpow2.f32 %v1014_v20  ;;  %v1012_v60 = vmul.f32 1.442695, %v1003_v4  ;;  %v1002_v17 = vsub.f32 %v7478_v18, %v980_v21 }
 0x4fb   :  { %v7545_v59 = vpop.eup %6786  ;;  %6796 = vpow2.f32 %v1012_v60  ;;  %v1010_v23 = vmul.f32 1.442695, %v1002_v17 }
 0x4fc   :  { %v989_v25 = vpop.xlane.xlu0 %988  ;;  %v748_v24 = vsel %vm681_vm7, %v7545_v59, 0.0 }
 0x4fd   :  { %v7549_v26 = vpop.eup %6788  ;;  %6798 = vpow2.f32 %v1010_v23  ;;  %v1005_v29 = vsub.f32 %v7490_v27, %v989_v25  ;;  %749 = vadd.xlane.f32.xlu0 %v748_v24 }
 0x4fe   :  { %v751_v22 = vsel %vm681_vm7, %v7549_v26, 0.0 }
 0x4ff   :  { %v7554_v38 = vpop.eup %6790  ;;  %v1016_v18 = vmul.f32 1.442695, %v1005_v29  ;;  %752 = vadd.xlane.f32.xlu1 %v751_v22 }
 0x500   :  { %v998_v30 = vpop.xlane.xlu0 %997  ;;  %v742_v46 = vsel %vm681_vm7, %v7554_v38, 0.0 }
 0x501   :  { %v7558_v31 = vpop.eup %6792  ;;  %6800 = vpow2.f32 %v1016_v18  ;;  %v1008_v41 = vsub.f32 %v7500_v45, %v998_v30  ;;  %743 = vadd.xlane.f32.xlu0 %v742_v46 }
 0x502   :  { %v745_v27 = vsel %vm681_vm7, %v7558_v31, 0.0 }
 0x503   :  { %v7563_v47 = vpop.eup %6794  ;;  %v1022_v48 = vmul.f32 1.442695, %v1008_v41  ;;  %746 = vadd.xlane.f32.xlu1 %v745_v27  ;;  %v7608_v41 = vpop.permute.xlu1 %466 }
 0x504   :  { %v992_v54 = vpop.xlane.xlu0 %991  ;;  %v1032_v7 = vsel %vm681_vm7, %v7563_v47, 0.0  ;;  %9253 = vst [vmem:[#allocation2_spill] sm:$0xff] %v7608_v41 }
 0x505   :  { %v7567_v61 = vpop.eup %6796  ;;  %6802 = vpow2.f32 %v1022_v48  ;;  %v1006_v12 = vsub.f32 %v7494_v9, %v992_v54  ;;  %1033 = vadd.xlane.f32.xlu0 %v1032_v7  ;;  %v469_v48 = vmul.f32 %v7608_v41, %v7325_v39  ;;  %v470_v54 = vmul.f32 %v7608_v41, %v7327_v40 }
 0x506   :  { %v1029_v3 = vsel %vm681_vm7, %v7567_v61, 0.0 }
 0x507   :  { %v7570_v44 = vpop.eup %6798  ;;  %v1018_v45 = vmul.f32 1.442695, %v1006_v12  ;;  %v477_v7 = vpack.c.bf16 %v470_v54, %v469_v48  ;;  %v473_v12 = vmul.f32 %v7608_v41, %v7335_v49 }
 0x508   :  { %v1026_v8 = vsel %vm681_vm7, %v7570_v44, 0.0  ;;  %v7588_v4 = vpop.permute.xlu0 %787 }
 0x509   :  { %6804 = vpow2.f32 %v1018_v45  ;;  %1030 = vadd.xlane.f32.xlu0 %v1029_v3  ;;  %1027 = vadd.xlane.f32.xlu1 %v1026_v8  ;;  %v792_v21 = vmul.f32 %v7588_v4, %v7321_v36  ;;  %v793_v60 = vmul.f32 %v7588_v4, %v7323_v37  ;;  %v794_v23 = vmul.f32 %v7588_v4, %v7335_v49 }
 0x50a   :  { %v795_v25 = vmul.f32 %v7588_v4, %v7337_v52  ;;  %v796_v29 = vmul.f32 %v7588_v4, %v7343_v55  ;;  %v797_v22 = vmul.f32 %v7588_v4, %v7339_v53  ;;  %v790_v30 = vmul.f32 %v7588_v4, %v7325_v39 }
 0x50b   :  { %v7576_v2 = vpop.eup %6800  ;;  %v799_v17 = vpack.c.bf16 %v793_v60, %v792_v21  ;;  %v791_v46 = vmul.f32 %v7588_v4, %v7327_v40  ;;  %v474_v45 = vmul.f32 %v7608_v41, %v7337_v52 }
 0x50c   :  { %v1035_v51 = vsel %vm681_vm7, %v7576_v2, 0.0  ;;  %v800_v24 = vpack.c.bf16 %v795_v25, %v794_v23  ;;  %v801_v18 = vpack.c.bf16 %v797_v22, %v796_v29  ;;  %v475_v22 = vmul.f32 %v7608_v41, %v7343_v55 }
 0x50d   :  { %1036 = vadd.xlane.f32.xlu1 %v1035_v51  ;;  %v798_v27 = vpack.c.bf16 %v791_v46, %v790_v30  ;;  %v479_v8 = vpack.c.bf16 %v474_v45, %v473_v12 }
 0x50f   :  { %v7580_v9 = vpop.eup %6802 }
 0x510   :  { %v1044_v13 = vsel %vm681_vm7, %v7580_v9, 0.0 }
 0x511   :  { %1045 = vadd.xlane.f32.xlu0 %v1044_v13 }
 0x513   :  { %v7584_v43 = vpop.eup %6804 }
 0x514   :  { %v1038_v20 = vsel %vm681_vm7, %v7584_v43, 0.0 }
 0x515   :  { %1039 = vadd.xlane.f32.xlu0 %v1038_v20 }
 0x51e   :  { %1119 = vrot.lane.b32.xlu1 %v799_v17, %s7117_s20 }
 0x522   :  { %1167 = vrot.lane.b32.xlu1 %v800_v24, %s7117_s20 }
 0x526   :  { %1215 = vrot.lane.b32.xlu1 %v801_v18, %s7117_s20  ;;  %v476_v18 = vmul.f32 %v7608_v41, %v7339_v53 }
 0x528   :  { %v480_v30 = vpack.c.bf16 %v476_v18, %v475_v22 }
 0x52b   :  { %1071 = vrot.lane.b32.xlu0 %v798_v27, %s7117_s20  ;;  %v1001_v3 = vpop.xlane.xlu1 %1000 }
 0x52c   :  { %v1009_v51 = vsub.f32 %v7504_v56, %v1001_v3  ;;  %v471_v56 = vmul.f32 %v7608_v41, %v7321_v36 }
 0x52e   :  { %v1024_v20 = vmul.f32 1.442695, %v1009_v51 }
 0x52f   :  { %1263 = vrot.lane.b32.xlu0 %v477_v7, %s7117_s20  ;;  %v995_v13 = vpop.xlane.xlu1 %994 }
 0x530   :  { %v1007_v21 = vsub.f32 %v7498_v34, %v995_v13  ;;  %6806 = vpow2.f32 %v1024_v20  ;;  %v472_v34 = vmul.f32 %v7608_v41, %v7323_v37 }
 0x532   :  { %v1020_v60 = vmul.f32 1.442695, %v1007_v21  ;;  %v478_v29 = vpack.c.bf16 %v472_v34, %v471_v56 }
 0x533   :  { %1359 = vrot.lane.b32.xlu0 %v479_v8, %s7117_s20 }
 0x534   :  { %6808 = vpow2.f32 %v1020_v60 }
 0x53a   :  { %v7624_v17 = vpop.eup %6806 }
 0x53b   :  { %v1047_v23 = vsel %vm681_vm7, %v7624_v17, 0.0 }
 0x53e   :  { %v7628_v25 = vpop.eup %6808 }
 0x53f   :  { %v1041_v24 = vsel %vm681_vm7, %v7628_v25, 0.0 }
 0x54a   :  { %1048 = vadd.xlane.f32.xlu1 %v1047_v23 }
 0x54e   :  { %1042 = vadd.xlane.f32.xlu1 %v1041_v24 }
 0x55f   :  { %1311 = vrot.lane.b32.xlu1 %v478_v29, %s7117_s20 }
 0x563   :  { %1407 = vrot.lane.b32.xlu1 %v480_v30, %s7117_s20 }
 0x57d   :  { %v738_v46 = vpop.xlane.xlu0 %737 }
 0x57f   :  { %v741_v27 = vpop.xlane.xlu1 %740 }
 0x581   :  { %v732_v48 = vpop.xlane.xlu0 %731 }
 0x583   :  { %v735_v54 = vpop.xlane.xlu1 %734 }
 0x58a   :  { %v750_v7 = vpop.xlane.xlu0 %749 }
 0x58c   :  { %v753_v12 = vpop.xlane.xlu1 %752 }
 0x58e   :  { %v7642_v45 = vpop.xlane.xlu0 %743 }
 0x590   :  { %v747_v3 = vpop.xlane.xlu1 %746 }
 0x592   :  { %v1034_v8 = vpop.xlane.xlu0 %1033 }
 0x596   :  { %v1028_v51 = vpop.xlane.xlu1 %1027  ;;  %v1031_v13 = vpop.xlane.xlu0 %1030 }
 0x597   :  { %6810 = vrcp.f32 %v1028_v51 }
 0x598   :  { %6812 = vrcp.f32 %v1031_v13 }
 0x599   :  { %6814 = vrcp.f32 %v1034_v8 }
 0x59a   :  { %v1037_v20 = vpop.xlane.xlu1 %1036 }
 0x59b   :  { %6816 = vrcp.f32 %v1037_v20 }
 0x59e   :  { %v1120_v21 = vpop.permute.xlu1 %1119  ;;  %v1046_v60 = vpop.xlane.xlu0 %1045 }
 0x59f   :  { %6210 = vmatpush3.bf16.msra.mxu0 %v1120_v21  ;;  %6818 = vrcp.f32 %v1046_v60 }
 0x5a0   :  { %6221 = vmatprep.subr.bf16.mxu0 %v9221_v5 }
 0x5a1   :  { %v6811_v23 = vpop.eup %6810 }
 0x5a2   :  { %v6813_v24 = vpop.eup %6812  ;;  %v1040_v56 = vpop.xlane.xlu0 %1039  ;;  %v1058_v29 = vmul.f32 %v6811_v23, %v7570_v44 }
 0x5a3   :  { %v6815_v34 = vpop.eup %6814  ;;  %v1059_v22 = vmul.f32 %v6813_v24, %v7567_v61  ;;  %v1168_v18 = vpop.permute.xlu1 %1167 }
 0x5a4   :  { %v1060_v51 = vmul.f32 %v6815_v34, %v7563_v47 }
 0x5a5   :  { %v6817_v30 = vpop.eup %6816  ;;  %v1066_v20 = vpack.c.bf16 %v1059_v22, %v1058_v29 }
 0x5a6   :  { %v1061_v8 = vmul.f32 %v6817_v30, %v7576_v2  ;;  %v1072_v13 = vpop.permute.xlu0 %1071 }
 0x5a7   :  { %6204 = vmatpush3.bf16.msra.mxu1 %v1072_v13  ;;  %v1216_v41 = vpop.permute.xlu1 %1215 }
 0x5a8   :  { %v1067_v21 = vpack.c.bf16 %v1061_v8, %v1060_v51  ;;  %6215 = vmatprep.subr.bf16.mxu1 %v9221_v5 }
 0x5a9   :  { %v6819_v44 = vpop.eup %6818 }
 0x5aa   :  { %6206 = vmatmul.mubr.msk.bf16.vlgmr.msra.gmra.mrb[20].mxu1 %vm681_vm7, %v1066_v20  ;;  %6212 = vmatmul.mubr.msk.bf16.vlgmr.msra.gmra.mrb[28].mxu0 %vm681_vm7, %v1067_v21 }
 0x5ab   :  { %6222 = vmatpush3.bf16.msra.mxu0 %v1216_v41  ;;  %6216 = vmatpush3.bf16.msra.mxu1 %v1168_v18  ;;  %v1064_v41 = vmul.f32 %v6819_v44, %v7580_v9 }
 0x5ac   :  { %6223 = vmatprep.mubr.msk.bf16.mxu0 %vm7115_vm2, %v9221_v5  ;;  %6233 = vmatprep.subr.bf16.mxu0 %v9221_v5 }
 0x5ad   :  { %6217 = vmatprep.mubr.msk.bf16.mxu1 %vm7115_vm2, %v9221_v5  ;;  %6227 = vmatprep.subr.bf16.mxu1 %v9221_v5 }
 0x5d7   :  { %v1049_v47 = vpop.xlane.xlu1 %1048 }
 0x5d8   :  { %6820 = vrcp.f32 %v1049_v47 }
 0x5d9   :  { %6822 = vrcp.f32 %v1040_v56 }
 0x5da   :  { %6824 = vrcp.f32 %v741_v27 }
 0x5db   :  { %v1043_v61 = vpop.xlane.xlu1 %1042 }
 0x5dc   :  { %6826 = vrcp.f32 %v1043_v61 }
 0x5dd   :  { %6828 = vrcp.f32 %v738_v46 }
 0x5de   :  { %6830 = vrcp.f32 %v735_v54 }
 0x5df   :  { %6832 = vrcp.f32 %v732_v48  ;;  %v1312_v22 = vpop.permute.xlu1 %1311 }
 0x5e0   :  { %6834 = vrcp.f32 %v753_v12 }
 0x5e1   :  { %6836 = vrcp.f32 %v750_v7 }
 0x5e2   :  { %v6821_v2 = vpop.eup %6820  ;;  %6838 = vrcp.f32 %v747_v3 }
 0x5e3   :  { %v1065_v23 = vmul.f32 %v6821_v2, %v7624_v17  ;;  %v6823_v24 = vpop.eup %6822  ;;  %6840 = vrcp.f32 %v7642_v45  ;;  %v1408_v18 = vpop.permute.xlu1 %1407 }
 0x5e4   :  { %v6825_v34 = vpop.eup %6824  ;;  %v1062_v56 = vmul.f32 %v6823_v24, %v7584_v43 }
 0x5e5   :  { %v1069_v29 = vpack.c.bf16 %v1065_v23, %v1064_v41  ;;  %v765_v9 = vmul.f32 %v6825_v34, %v7528_v42 }
 0x5e6   :  { %v6827_v60 = vpop.eup %6826 }
 0x5e7   :  { %v1063_v27 = vmul.f32 %v6827_v60, %v7628_v25  ;;  %6224 = vmatmul.mubr.msk.bf16.vlgmr.msra.gmra.mrb[32].mxu0 %vm681_vm7, %v1069_v29  ;;  %v6829_v46 = vpop.eup %6828  ;;  %v1264_v25 = vpop.permute.xlu0 %1263 }
 0x5e8   :  { %6234 = vmatpush3.bf16.msra.mxu0 %v1312_v22  ;;  %6235 = vmatprep.mubr.msk.bf16.mxu0 %vm7115_vm2, %v9221_v5  ;;  %v6831_v48 = vpop.eup %6830  ;;  %v764_v43 = vmul.f32 %v6829_v46, %v7523_v0 }
 0x5e9   :  { %v1068_v17 = vpack.c.bf16 %v1063_v27, %v1062_v56  ;;  %6245 = vmatprep.subr.bf16.mxu0 %v9221_v5  ;;  %v6833_v54 = vpop.eup %6832  ;;  %v763_v7 = vmul.f32 %v6831_v48, %v7538_v6 }
 0x5ea   :  { %v771_v12 = vpack.c.bf16 %v765_v9, %v764_v43  ;;  %v6835_v42 = vpop.eup %6834  ;;  %v762_v3 = vmul.f32 %v6833_v54, %v7533_v57 }
 0x5eb   :  { %6218 = vmatmul.mubr.msk.bf16.vlgmr.msra.gmra.mrb[24].mxu1 %vm681_vm7, %v1068_v17  ;;  %v6837_v0 = vpop.eup %6836  ;;  %v769_v6 = vmul.f32 %v6835_v42, %v7549_v26  ;;  %v1360_v51 = vpop.permute.xlu0 %1359  ;;  %v7689_v26 = vsel %vm184_vm10, 1.0, %v9221_v5 }
 0x5ec   :  { %6228 = vmatpush3.bf16.msra.mxu1 %v1264_v25  ;;  %6229 = vmatprep.mubr.msk.bf16.mxu1 %vm7115_vm2, %v9221_v5  ;;  %v770_v45 = vpack.c.bf16 %v763_v7, %v762_v3  ;;  %v6839_v30 = vpop.eup %6838  ;;  %v768_v57 = vmul.f32 %v6837_v0, %v7545_v59  ;;  %v7696_v59 = vmul.f32 0.35355338, %v7689_v26 }
 0x5ed   :  { %6239 = vmatprep.subr.bf16.mxu1 %v9221_v5  ;;  %v6841_v8 = vpop.eup %6840  ;;  %v767_v13 = vmul.f32 %v6839_v30, %v7558_v31 }
 0x5ee   :  { %v773_v20 = vpack.c.bf16 %v769_v6, %v768_v57  ;;  %v766_v21 = vmul.f32 %v6841_v8, %v7554_v38  ;;  %v1457_v31 = vmul.f32 %v7323_v37, %v7696_v59  ;;  %v1456_v38 = vmul.f32 %v7321_v36, %v7696_v59 }
 0x5ef   :  { %6236 = vmatmul.mubr.msk.bf16.vlgmr.msra.gmra.mrb[28].mxu0 %vm681_vm7, %v771_v12  ;;  %v1455_v44 = vmul.f32 %v7327_v40, %v7696_v59  ;;  %v1454_v2 = vmul.f32 %v7325_v39, %v7696_v59  ;;  %v1461_v23 = vmul.f32 %v7339_v53, %v7696_v59  ;;  %v1460_v24 = vmul.f32 %v7343_v55, %v7696_v59 }
 0x5f0   :  { %6246 = vmatpush3.bf16.msra.mxu0 %v1408_v18  ;;  %6247 = vmatprep.mubr.msk.bf16.mxu0 %vm7115_vm2, %v9221_v5  ;;  %v772_v47 = vpack.c.bf16 %v767_v13, %v766_v21  ;;  %v1463_v61 = vpack.c.bf16 %v1457_v31, %v1456_v38  ;;  %v1459_v29 = vmul.f32 %v7337_v52, %v7696_v59 }
 0x5f1   :  { %6257 = vmatprep.subr.bf16.mxu0 %v9221_v5  ;;  %v1462_v41 = vpack.c.bf16 %v1455_v44, %v1454_v2  ;;  %v1465_v34 = vpack.c.bf16 %v1461_v23, %v1460_v24  ;;  %v1458_v60 = vmul.f32 %v7335_v49, %v7696_v59 }
 0x5f3   :  { %6230 = vmatmul.mubr.msk.bf16.vlgmr.msra.gmra.mrb[20].mxu1 %vm681_vm7, %v770_v45  ;;  %v1464_v56 = vpack.c.bf16 %v1459_v29, %v1458_v60 }
 0x5f4   :  { %6240 = vmatpush3.bf16.msra.mxu1 %v1360_v51  ;;  %6241 = vmatprep.mubr.msk.bf16.mxu1 %vm7115_vm2, %v9221_v5 }
 0x5f5   :  { %6251 = vmatprep.subr.bf16.mxu1 %v9221_v5 }
 0x5f7   :  { %6248 = vmatmul.mubr.msk.bf16.vlgmr.msra.gmra.mrb[32].mxu0 %vm681_vm7, %v773_v20 }
 0x5f8   :  { %6259 = vmatprep.mubr.msk.bf16.mxu0 %vm7115_vm2, %v9221_v5 }
 0x5f9   :  { %6258 = vmatpush3.bf16.xpose.msra.mxu0 %v7356_v62 }
 0x5fa   :  { %6269 = vmatprep.subr.bf16.mxu0 %v9221_v5 }
 0x5fb   :  { %6242 = vmatmul.mubr.msk.bf16.vlgmr.msra.gmra.mrb[24].mxu1 %vm681_vm7, %v772_v47 }
 0x5fc   :  { %6253 = vmatprep.mubr.msk.bf16.mxu1 %vm7115_vm2, %v9221_v5 }
 0x5fd   :  { %6252 = vmatpush3.bf16.xpose.msra.mxu1 %v7362_v1 }
 0x5fe   :  { %6263 = vmatprep.subr.bf16.mxu1 %v9221_v5 }
 0x600   :  { %6260 = vmatmul.mubr.msk.bf16.vlgmr.msra.gmra.mrb[36].mxu0 %vm222_vm1, %v1463_v61 }
 0x601   :  { %6270 = vmatpush3.bf16.xpose.msra.mxu0 %v7392_v15  ;;  %6271 = vmatprep.mubr.msk.bf16.mxu0 %vm7115_vm2, %v9221_v5 }
 0x602   :  { %6281 = vmatprep.subr.bf16.mxu0 %v9221_v5 }
 0x604   :  { %6254 = vmatmul.mubr.msk.bf16.vlgmr.msra.gmra.mrb[28].mxu1 %vm222_vm1, %v1462_v41 }
 0x605   :  { %6264 = vmatpush3.bf16.xpose.msra.mxu1 %v7380_v10  ;;  %6265 = vmatprep.mubr.msk.bf16.mxu1 %vm7115_vm2, %v9221_v5 }
 0x606   :  { %6275 = vmatprep.subr.bf16.mxu1 %v9221_v5 }
 0x608   :  { %6272 = vmatmul.mubr.msk.bf16.vlgmr.msra.gmra.mrb[40].mxu0 %vm222_vm1, %v1465_v34 }
 0x609   :  { %6283 = vmatprep.mubr.msk.bf16.mxu0 %vm7115_vm2, %v9221_v5 }
 0x60c   :  { %6266 = vmatmul.mubr.msk.bf16.vlgmr.msra.gmra.mrb[32].mxu1 %vm222_vm1, %v1464_v56 }
 0x60d   :  { %6277 = vmatprep.mubr.msk.bf16.mxu1 %vm7115_vm2, %v9221_v5 }
 0x6d3   :  { %v1563_v27 = vpop.f32.mrb[36].mxu0 }
 0x6d4   :  { %v6261_v22 = vpop.f32.mrb[37].mxu0  ;;  %v1664_v46 = vsel %vm681_vm7, %v1563_v27, -inf }
 0x6d5   :  { %1665 = vmax.xlane.f32.xlu0 %v1664_v46  ;;  %v1566_v9 = vpop.f32.mrb[38].mxu0 }
 0x6d6   :  { %v6262_v17 = vpop.f32.mrb[39].mxu0  ;;  %v1667_v18 = vsel %vm681_vm7, %v1566_v9, -inf }
 0x6d7   :  { %v1519_v48 = vpop.f32.mrb[28].mxu1 }
 0x6d8   :  { %v6255_v43 = vpop.f32.mrb[29].mxu1  ;;  %v1658_v25 = vsel %vm681_vm7, %v1519_v48, -inf }
 0x6d9   :  { %1659 = vmax.xlane.f32.xlu0 %v1658_v25  ;;  %v1522_v54 = vpop.f32.mrb[30].mxu1 }
 0x6da   :  { %v6256_v7 = vpop.f32.mrb[31].mxu1  ;;  %v1661_v12 = vsel %vm681_vm7, %v1522_v54, -inf }
 0x6db   :  { %v1651_v42 = vpop.f32.mrb[40].mxu0  ;;  %1662 = vmax.xlane.f32.xlu1 %v1661_v12 }
 0x6dc   :  { %v6273_v3 = vpop.f32.mrb[41].mxu0  ;;  %v1676_v13 = vsel %vm681_vm7, %v1651_v42, -inf }
 0x6dd   :  { %v7741_v0 = vpop.f32.mrb[42].mxu0  ;;  %1668 = vmax.xlane.f32.xlu0 %v1667_v18 }
 0x6de   :  { %v6274_v6 = vpop.f32.mrb[43].mxu0  ;;  %v1679_v22 = vsel %vm681_vm7, %v7741_v0, -inf }
 0x6df   :  { %v1607_v45 = vpop.f32.mrb[32].mxu1 }
 0x6e0   :  { %v6267_v30 = vpop.f32.mrb[33].mxu1  ;;  %v1670_v57 = vsel %vm681_vm7, %v1607_v45, -inf }
 0x6e1   :  { %1671 = vmax.xlane.f32.xlu0 %v1670_v57  ;;  %v7744_v51 = vpop.f32.mrb[34].mxu1 }
 0x6e2   :  { %v6268_v8 = vpop.f32.mrb[35].mxu1  ;;  %v1673_v46 = vsel %vm681_vm7, %v7744_v51, -inf }
 0x6e5   :  { %1677 = vmax.xlane.f32.xlu0 %v1676_v13 }
 0x6fb   :  { %1467 = vrot.lane.b32.xlu0 %v7689_v26, %s7117_s20 }
 0x762   :  { %v1666_v20 = vpop.xlane.xlu0 %1665 }
 0x763   :  { %v1684_v7 = vsub.f32 %v1563_v27, %v1666_v20 }
 0x765   :  { %v1694_v12 = vmul.f32 1.442695, %v1684_v7 }
 0x766   :  { %v1660_v21 = vpop.xlane.xlu0 %1659 }
 0x768   :  { %v1663_v6 = vpop.xlane.xlu1 %1662 }
 0x769   :  { %v1683_v30 = vsub.f32 %v1522_v54, %v1663_v6 }
 0x76a   :  { %v1669_v47 = vpop.xlane.xlu0 %1668 }
 0x76b   :  { %v1685_v18 = vsub.f32 %v1566_v9, %v1669_v47  ;;  %v1692_v8 = vmul.f32 1.442695, %v1683_v30 }
 0x76d   :  { %v1696_v57 = vmul.f32 1.442695, %v1685_v18 }
 0x76e   :  { %v1672_v31 = vpop.xlane.xlu0 %1671 }
 0x76f   :  { %v1686_v13 = vsub.f32 %v1607_v45, %v1672_v31 }
 0x772   :  { %v1678_v38 = vpop.xlane.xlu0 %1677 }
 0x773   :  { %v1688_v61 = vsub.f32 %v1651_v42, %v1678_v38  ;;  %v1682_v42 = vsub.f32 %v1519_v48, %v1660_v21 }
 0x775   :  { %v1702_v44 = vmul.f32 1.442695, %v1688_v61  ;;  %v1690_v3 = vmul.f32 1.442695, %v1682_v42  ;;  %v1698_v61 = vmul.f32 1.442695, %v1686_v13 }
 0x776   :  { %v7749_v2 = vpop.permute.xlu0 %1467 }
 0x777   :  { %6842 = vpow2.f32 %v1702_v44  ;;  %v1470_v41 = vmul.f32 %v7749_v2, %v7325_v39  ;;  %v1471_v23 = vmul.f32 %v7749_v2, %v7327_v40  ;;  %v1476_v29 = vmul.f32 %v7749_v2, %v7343_v55 }
 0x778   :  { %v1477_v60 = vmul.f32 %v7749_v2, %v7339_v53  ;;  %v1472_v17 = vmul.f32 %v7749_v2, %v7321_v36  ;;  %v1473_v43 = vmul.f32 %v7749_v2, %v7323_v37  ;;  %6844 = vpow2.f32 %v1694_v12 }
 0x779   :  { %v1478_v24 = vpack.c.bf16 %v1471_v23, %v1470_v41  ;;  %6846 = vpow2.f32 %v1690_v3 }
 0x77a   :  { %v1481_v56 = vpack.c.bf16 %v1477_v60, %v1476_v29  ;;  %v1479_v25 = vpack.c.bf16 %v1473_v43, %v1472_v17  ;;  %6848 = vpow2.f32 %v1696_v57 }
 0x77b   :  { %1751 = vrot.lane.b32.xlu1 %v1478_v24, %s7117_s20  ;;  %6850 = vpow2.f32 %v1692_v8 }
 0x77c   :  { %6852 = vpow2.f32 %v1698_v61 }
 0x781   :  { %v7756_v26 = vpop.eup %6842 }
 0x782   :  { %v1724_v34 = vsel %vm681_vm7, %v7756_v26, 0.0  ;;  %v6845_v38 = vpop.eup %6844 }
 0x783   :  { %1725 = vadd.xlane.f32.xlu0 %v1724_v34  ;;  %v1712_v44 = vsel %vm681_vm7, %v6845_v38, 0.0  ;;  %v6847_v41 = vpop.eup %6846 }
 0x784   :  { %v1706_v27 = vsel %vm681_vm7, %v6847_v41, 0.0  ;;  %v6849_v48 = vpop.eup %6848 }
 0x785   :  { %v1715_v9 = vsel %vm681_vm7, %v6849_v48, 0.0  ;;  %v6851_v20 = vpop.eup %6850 }
 0x786   :  { %v1709_v54 = vsel %vm681_vm7, %v6851_v20, 0.0  ;;  %v7778_v21 = vpop.eup %6852 }
 0x787   :  { %v1718_v45 = vsel %vm681_vm7, %v7778_v21, 0.0 }
 0x799   :  { %1895 = vrot.lane.b32.xlu0 %v1481_v56, %s7117_s20 }
 0x79f   :  { %1680 = vmax.xlane.f32.xlu1 %v1679_v22 }
 0x7a3   :  { %1674 = vmax.xlane.f32.xlu1 %v1673_v46 }
 0x7b4   :  { %1799 = vrot.lane.b32.xlu1 %v1479_v25, %s7117_s20 }
 0x7d8   :  { %1713 = vadd.xlane.f32.xlu1 %v1712_v44 }
 0x7dc   :  { %1707 = vadd.xlane.f32.xlu1 %v1706_v27 }
 0x7e0   :  { %1716 = vadd.xlane.f32.xlu1 %v1715_v9 }
 0x7e4   :  { %1710 = vadd.xlane.f32.xlu1 %v1709_v54 }
 0x7e8   :  { %1719 = vadd.xlane.f32.xlu1 %v1718_v45 }
 0x7ed   :  { %v1752_v47 = vpop.permute.xlu1 %1751 }
 0x7ee   :  { %6276 = vmatpush3.bf16.msra.mxu1 %v1752_v47 }
 0x7ef   :  { %6287 = vmatprep.subr.bf16.mxu1 %v9221_v5 }
 0x810   :  { %v1726_v6 = vpop.xlane.xlu0 %1725 }
 0x814   :  { %v1896_v27 = vpop.permute.xlu0 %1895 }
 0x82c   :  { %v1681_v31 = vpop.xlane.xlu1 %1680 }
 0x82d   :  { %v1689_v23 = vsub.f32 %v7741_v0, %v1681_v31  ;;  %v1474_v0 = vmul.f32 %v7749_v2, %v7335_v49 }
 0x82f   :  { %v1704_v24 = vmul.f32 1.442695, %v1689_v23 }
 0x830   :  { %v1675_v34 = vpop.xlane.xlu1 %1674 }
 0x831   :  { %6854 = vpow2.f32 %v1704_v24  ;;  %v1687_v29 = vsub.f32 %v7744_v51, %v1675_v34  ;;  %v1475_v51 = vmul.f32 %v7749_v2, %v7337_v52 }
 0x833   :  { %v1700_v60 = vmul.f32 1.442695, %v1687_v29  ;;  %v1480_v25 = vpack.c.bf16 %v1475_v51, %v1474_v0  ;;  %v7805_v29 = vsel %vm190_vm13, 1.0, %v9221_v5 }
 0x834   :  { %v1800_v56 = vpop.permute.xlu1 %1799  ;;  %v7810_v58 = vmul.f32 0.35355338, %v7805_v29 }
 0x835   :  { %6856 = vpow2.f32 %v1700_v60  ;;  %6282 = vmatpush3.bf16.msra.mxu0 %v1800_v56 }
 0x836   :  { %6293 = vmatprep.subr.bf16.mxu0 %v9221_v5  ;;  %v1950_v0 = vmul.f32 %v7325_v39, %v7810_v58  ;;  %v1957_v51 = vmul.f32 %v7339_v53, %v7810_v58 }
 0x83b   :  { %v6855_v22 = vpop.eup %6854 }
 0x83c   :  { %v1727_v46 = vsel %vm681_vm7, %v6855_v22, 0.0 }
 0x83d   :  { %1728 = vadd.xlane.f32.xlu1 %v1727_v46 }
 0x83f   :  { %v6857_v17 = vpop.eup %6856 }
 0x840   :  { %v1721_v43 = vsel %vm681_vm7, %v6857_v17, 0.0 }
 0x841   :  { %1722 = vadd.xlane.f32.xlu1 %v1721_v43 }
 0x852   :  { %1847 = vrot.lane.b32.xlu1 %v1480_v25, %s7117_s20  ;;  %v1956_v25 = vmul.f32 %v7343_v55, %v7810_v58 }
 0x865   :  { %v1714_v7 = vpop.xlane.xlu1 %1713 }
 0x866   :  { %6858 = vrcp.f32 %v1714_v7  ;;  %v1955_v7 = vmul.f32 %v7337_v52, %v7810_v58 }
 0x869   :  { %v1708_v12 = vpop.xlane.xlu1 %1707 }
 0x86d   :  { %v1717_v42 = vpop.xlane.xlu1 %1716 }
 0x86e   :  { %6860 = vrcp.f32 %v1717_v42 }
 0x86f   :  { %6862 = vrcp.f32 %v1708_v12  ;;  %v1954_v12 = vmul.f32 %v7335_v49, %v7810_v58 }
 0x870   :  { %v6859_v18 = vpop.eup %6858 }
 0x871   :  { %v1711_v3 = vpop.xlane.xlu1 %1710  ;;  %v1740_v57 = vmul.f32 %v6859_v18, %v6845_v38  ;;  %v1960_v42 = vpack.c.bf16 %v1955_v7, %v1954_v12 }
 0x872   :  { %6864 = vrcp.f32 %v1711_v3 }
 0x873   :  { %6866 = vrcp.f32 %v1726_v6 }
 0x875   :  { %v1720_v38 = vpop.xlane.xlu1 %1719 }
 0x878   :  { %v6861_v30 = vpop.eup %6860 }
 0x879   :  { %v1741_v8 = vmul.f32 %v6861_v30, %v6849_v48  ;;  %v6863_v13 = vpop.eup %6862 }
 0x87a   :  { %v1738_v9 = vmul.f32 %v6863_v13, %v6847_v41 }
 0x87b   :  { %v1747_v61 = vpack.c.bf16 %v1741_v8, %v1740_v57 }
 0x87c   :  { %v6865_v44 = vpop.eup %6864 }
 0x87d   :  { %v1739_v54 = vmul.f32 %v6865_v44, %v6851_v20  ;;  %6284 = vmatmul.mubr.msk.bf16.vlgmr.msra.gmra.mrb[28].mxu0 %vm681_vm7, %v1747_v61  ;;  %v6867_v47 = vpop.eup %6866 }
 0x87e   :  { %6294 = vmatpush3.bf16.msra.mxu0 %v1896_v27  ;;  %6295 = vmatprep.mubr.msk.bf16.mxu0 %vm7115_vm2, %v9221_v5  ;;  %v1744_v23 = vmul.f32 %v6867_v47, %v7756_v26 }
 0x87f   :  { %v1746_v45 = vpack.c.bf16 %v1739_v54, %v1738_v9  ;;  %6305 = vmatprep.subr.bf16.mxu0 %v9221_v5 }
 0x881   :  { %6278 = vmatmul.mubr.msk.bf16.vlgmr.msra.gmra.mrb[20].mxu1 %vm681_vm7, %v1746_v45 }
 0x882   :  { %6289 = vmatprep.mubr.msk.bf16.mxu1 %vm7115_vm2, %v9221_v5 }
 0x8ca   :  { %v1729_v48 = vpop.xlane.xlu1 %1728 }
 0x8cb   :  { %6868 = vrcp.f32 %v1729_v48 }
 0x8cc   :  { %6870 = vrcp.f32 %v1720_v38 }
 0x8ce   :  { %v1723_v41 = vpop.xlane.xlu1 %1722 }
 0x8cf   :  { %6872 = vrcp.f32 %v1723_v41 }
 0x8d2   :  { %v1848_v20 = vpop.permute.xlu1 %1847 }
 0x8d3   :  { %6288 = vmatpush3.bf16.msra.mxu1 %v1848_v20 }
 0x8d4   :  { %6299 = vmatprep.subr.bf16.mxu1 %v9221_v5 }
 0x8d5   :  { %v6869_v31 = vpop.eup %6868 }
 0x8d6   :  { %v1745_v24 = vmul.f32 %v6869_v31, %v6855_v22  ;;  %v6871_v34 = vpop.eup %6870  ;;  %v1953_v22 = vmul.f32 %v7323_v37, %v7810_v58 }
 0x8d7   :  { %v1742_v46 = vmul.f32 %v6871_v34, %v7778_v21  ;;  %v1952_v21 = vmul.f32 %v7321_v36, %v7810_v58 }
 0x8d8   :  { %v1749_v60 = vpack.c.bf16 %v1745_v24, %v1744_v23 }
 0x8d9   :  { %v6873_v56 = vpop.eup %6872 }
 0x8da   :  { %v1743_v43 = vmul.f32 %v6873_v56, %v6857_v17  ;;  %6296 = vmatmul.mubr.msk.bf16.vlgmr.msra.gmra.mrb[32].mxu0 %vm681_vm7, %v1749_v60  ;;  %v1951_v17 = vmul.f32 %v7327_v40, %v7810_v58 }
 0x8db   :  { %6306 = vmatpush3.bf16.xpose.msra.mxu0 %v7356_v62  ;;  %6307 = vmatprep.mubr.msk.bf16.mxu0 %vm7115_vm2, %v9221_v5  ;;  %v1959_v62 = vpack.c.bf16 %v1953_v22, %v1952_v21 }
 0x8dc   :  { %v1748_v26 = vpack.c.bf16 %v1743_v43, %v1742_v46  ;;  %6317 = vmatprep.subr.bf16.mxu0 %v9221_v5 }
 0x8de   :  { %6290 = vmatmul.mubr.msk.bf16.vlgmr.msra.gmra.mrb[24].mxu1 %vm681_vm7, %v1748_v26 }
 0x8df   :  { %6300 = vmatpush3.bf16.xpose.msra.mxu1 %v7362_v1  ;;  %6301 = vmatprep.mubr.msk.bf16.mxu1 %vm7115_vm2, %v9221_v5  ;;  %v1958_v1 = vpack.c.bf16 %v1951_v17, %v1950_v0 }
 0x8e0   :  { %6311 = vmatprep.subr.bf16.mxu1 %v9221_v5 }
 0x8e2   :  { %6308 = vmatmul.mubr.msk.bf16.vlgmr.msra.gmra.mrb[44].mxu0 %vm222_vm1, %v1959_v62 }
 0x8e3   :  { %6318 = vmatpush3.bf16.xpose.msra.mxu0 %v7392_v15  ;;  %6319 = vmatprep.mubr.msk.bf16.mxu0 %vm7115_vm2, %v9221_v5  ;;  %v1961_v15 = vpack.c.bf16 %v1957_v51, %v1956_v25 }
 0x8e4   :  { %6329 = vmatprep.subr.bf16.mxu0 %v9221_v5 }
 0x8e6   :  { %6302 = vmatmul.mubr.msk.bf16.vlgmr.msra.gmra.mrb[36].mxu1 %vm222_vm1, %v1958_v1 }
 0x8e7   :  { %6312 = vmatpush3.bf16.xpose.msra.mxu1 %v7380_v10  ;;  %6313 = vmatprep.mubr.msk.bf16.mxu1 %vm7115_vm2, %v9221_v5 }
 0x8e8   :  { %6323 = vmatprep.subr.bf16.mxu1 %v9221_v5 }
 0x8ea   :  { %6320 = vmatmul.mubr.msk.bf16.vlgmr.msra.gmra.mrb[48].mxu0 %vm222_vm1, %v1961_v15 }
 0x8eb   :  { %6331 = vmatprep.mubr.msk.bf16.mxu0 %vm7115_vm2, %v9221_v5 }
 0x8ee   :  { %6314 = vmatmul.mubr.msk.bf16.vlgmr.msra.gmra.mrb[40].mxu1 %vm222_vm1, %v1960_v42 }
 0x8ef   :  { %6325 = vmatprep.mubr.msk.bf16.mxu1 %vm7115_vm2, %v9221_v5 }
 0x9b5   :  { %v2059_v10 = vpop.f32.mrb[44].mxu0 }
 0x9b6   :  { %v6309_v3 = vpop.f32.mrb[45].mxu0  ;;  %v2160_v54 = vsel %vm681_vm7, %v2059_v10, -inf }
 0x9b7   :  { %v7853_v18 = vpop.f32.mrb[46].mxu0 }
 0x9b8   :  { %v6310_v6 = vpop.f32.mrb[47].mxu0  ;;  %v2163_v47 = vsel %vm681_vm7, %v7853_v18, -inf }
 0x9b9   :  { %v2015_v30 = vpop.f32.mrb[36].mxu1 }
 0x9ba   :  { %v6303_v57 = vpop.f32.mrb[37].mxu1  ;;  %v2154_v8 = vsel %vm681_vm7, %v2015_v30, -inf }
 0x9bb   :  { %2155 = vmax.xlane.f32.xlu1 %v2154_v8  ;;  %v2018_v13 = vpop.f32.mrb[38].mxu1 }
 0x9bc   :  { %v6304_v61 = vpop.f32.mrb[39].mxu1  ;;  %v2157_v44 = vsel %vm681_vm7, %v2018_v13, -inf }
 0x9bd   :  { %2158 = vmax.xlane.f32.xlu0 %v2157_v44  ;;  %v2147_v27 = vpop.f32.mrb[48].mxu0 }
 0x9be   :  { %v6321_v9 = vpop.f32.mrb[49].mxu0  ;;  %v2172_v60 = vsel %vm681_vm7, %v2147_v27, -inf }
 0x9bf   :  { %2161 = vmax.xlane.f32.xlu1 %v2160_v54  ;;  %v7858_v45 = vpop.f32.mrb[50].mxu0 }
 0x9c0   :  { %v6322_v38 = vpop.f32.mrb[51].mxu0  ;;  %v2175_v48 = vsel %vm681_vm7, %v7858_v45, -inf }
 0x9c1   :  { %v2103_v41 = vpop.f32.mrb[40].mxu1  ;;  %2176 = vmax.xlane.f32.xlu0 %v2175_v48 }
 0x9c2   :  { %v6315_v20 = vpop.f32.mrb[41].mxu1  ;;  %v2166_v24 = vsel %vm681_vm7, %v2103_v41, -inf }
 0x9c3   :  { %v2106_v31 = vpop.f32.mrb[42].mxu1  ;;  %2164 = vmax.xlane.f32.xlu1 %v2163_v47 }
 0x9c4   :  { %v6316_v23 = vpop.f32.mrb[43].mxu1  ;;  %v2169_v34 = vsel %vm681_vm7, %v2106_v31, -inf }
 0x9c7   :  { %2167 = vmax.xlane.f32.xlu1 %v2166_v24 }
 0x9cb   :  { %2170 = vmax.xlane.f32.xlu1 %v2169_v34 }
 0x9cf   :  { %2173 = vmax.xlane.f32.xlu1 %v2172_v60 }
 0x9e0   :  { %1963 = vrot.lane.b32.xlu1 %v7805_v29, %s7117_s20 }
 0xa48   :  { %v2156_v56 = vpop.xlane.xlu1 %2155 }
 0xa49   :  { %v2178_v3 = vsub.f32 %v2015_v30, %v2156_v56 }
 0xa4a   :  { %v2159_v61 = vpop.xlane.xlu0 %2158 }
 0xa4b   :  { %v2186_v57 = vmul.f32 1.442695, %v2178_v3  ;;  %v2179_v44 = vsub.f32 %v2018_v13, %v2159_v61 }
 0xa4c   :  { %v2162_v46 = vpop.xlane.xlu1 %2161 }
 0xa4e   :  { %v2177_v30 = vpop.xlane.xlu0 %2176 }
 0xa50   :  { %v2165_v43 = vpop.xlane.xlu1 %2164 }
 0xa51   :  { %v2181_v8 = vsub.f32 %v7853_v18, %v2165_v43  ;;  %v2185_v18 = vsub.f32 %v7858_v45, %v2177_v30 }
 0xa53   :  { %v2192_v9 = vmul.f32 1.442695, %v2181_v8  ;;  %v2200_v23 = vmul.f32 1.442695, %v2185_v18 }
 0xa54   :  { %v2168_v26 = vpop.xlane.xlu1 %2167 }
 0xa55   :  { %v2182_v38 = vsub.f32 %v2103_v41, %v2168_v26 }
 0xa57   :  { %v2194_v47 = vmul.f32 1.442695, %v2182_v38 }
 0xa58   :  { %v2171_v22 = vpop.xlane.xlu1 %2170 }
 0xa59   :  { %v2183_v21 = vsub.f32 %v2106_v31, %v2171_v22 }
 0xa5b   :  { %v2196_v62 = vmul.f32 1.442695, %v2183_v21 }
 0xa5c   :  { %v2174_v17 = vpop.xlane.xlu1 %2173 }
 0xa5d   :  { %6874 = vpow2.f32 %v2196_v62  ;;  %v2184_v54 = vsub.f32 %v2147_v27, %v2174_v17 }
 0xa60   :  { %v7869_v0 = vpop.permute.xlu1 %1963 }
 0xa61   :  { %v1966_v1 = vmul.f32 %v7869_v0, %v7325_v39  ;;  %v1967_v51 = vmul.f32 %v7869_v0, %v7327_v40  ;;  %v1968_v29 = vmul.f32 %v7869_v0, %v7321_v36  ;;  %v1969_v15 = vmul.f32 %v7869_v0, %v7323_v37 }
 0xa62   :  { %v2180_v39 = vsub.f32 %v2059_v10, %v2162_v46  ;;  %v1970_v40 = vmul.f32 %v7869_v0, %v7335_v49  ;;  %v1971_v36 = vmul.f32 %v7869_v0, %v7337_v52  ;;  %v2188_v10 = vmul.f32 1.442695, %v2179_v44 }
 0xa63   :  { %v1974_v25 = vpack.c.bf16 %v1967_v51, %v1966_v1  ;;  %v1975_v12 = vpack.c.bf16 %v1969_v15, %v1968_v29  ;;  %v2198_v52 = vmul.f32 1.442695, %v2184_v54  ;;  %v1972_v26 = vmul.f32 %v7869_v0, %v7343_v55 }
 0xa64   :  { %v2190_v37 = vmul.f32 1.442695, %v2180_v39  ;;  %v1976_v6 = vpack.c.bf16 %v1971_v36, %v1970_v40  ;;  %v1973_v22 = vmul.f32 %v7869_v0, %v7339_v53 }
 0xa65   :  { %2247 = vrot.lane.b32.xlu0 %v1974_v25, %s7117_s20 }
 0xa66   :  { %6876 = vpow2.f32 %v2190_v37  ;;  %v1977_v21 = vpack.c.bf16 %v1973_v22, %v1972_v26 }
 0xa67   :  { %v7880_v7 = vpop.eup %6874  ;;  %6878 = vpow2.f32 %v2186_v57 }
 0xa68   :  { %v2217_v42 = vsel %vm681_vm7, %v7880_v7, 0.0  ;;  %6880 = vpow2.f32 %v2192_v9 }
 0xa69   :  { %2218 = vadd.xlane.f32.xlu1 %v2217_v42  ;;  %2295 = vrot.lane.b32.xlu0 %v1975_v12, %s7117_s20  ;;  %6882 = vpow2.f32 %v2188_v10 }
 0xa6a   :  { %6884 = vpow2.f32 %v2198_v52 }
 0xa6b   :  { %6886 = vpow2.f32 %v2194_v47 }
 0xa6c   :  { %6888 = vpow2.f32 %v2200_v23 }
 0xa70   :  { %v6877_v49 = vpop.eup %6876 }
 0xa71   :  { %v2208_v48 = vsel %vm681_vm7, %v6877_v49, 0.0  ;;  %v6879_v20 = vpop.eup %6878 }
 0xa72   :  { %v2202_v31 = vsel %vm681_vm7, %v6879_v20, 0.0  ;;  %v6881_v13 = vpop.eup %6880 }
 0xa73   :  { %v2211_v27 = vsel %vm681_vm7, %v6881_v13, 0.0  ;;  %v6883_v24 = vpop.eup %6882 }
 0xa74   :  { %v2205_v41 = vsel %vm681_vm7, %v6883_v24, 0.0  ;;  %v6885_v34 = vpop.eup %6884 }
 0xa75   :  { %v2220_v60 = vsel %vm681_vm7, %v6885_v34, 0.0  ;;  %v6887_v45 = vpop.eup %6886 }
 0xa76   :  { %v2214_v56 = vsel %vm681_vm7, %v6887_v45, 0.0  ;;  %v6889_v46 = vpop.eup %6888 }
 0xa77   :  { %v2223_v43 = vsel %vm681_vm7, %v6889_v46, 0.0 }
 0xa7a   :  { %2343 = vrot.lane.b32.xlu1 %v1976_v6, %s7117_s20 }
 0xa88   :  { %2209 = vadd.xlane.f32.xlu0 %v2208_v48 }
 0xa8c   :  { %2203 = vadd.xlane.f32.xlu0 %v2202_v31  ;;  %v6744_v31 = vld [vmem:[%s9215_s4] sm:$0xff]  }
 0xa90   :  { %2212 = vadd.xlane.f32.xlu0 %v2211_v27 }
 0xa94   :  { %2206 = vadd.xlane.f32.xlu0 %v2205_v41 }
 0xa98   :  { %2221 = vadd.xlane.f32.xlu0 %v2220_v60 }
 0xa9c   :  { %2215 = vadd.xlane.f32.xlu0 %v2214_v56 }
 0xaa0   :  { %2224 = vadd.xlane.f32.xlu0 %v2223_v43 }
 0xab6   :  { %2391 = vrot.lane.b32.xlu0 %v1977_v21, %s7117_s20 }
 0xad7   :  { %v2248_v62 = vpop.permute.xlu0 %2247 }
 0xad8   :  { %6324 = vmatpush3.bf16.msra.mxu1 %v2248_v62 }
 0xad9   :  { %6335 = vmatprep.subr.bf16.mxu1 %v9221_v5 }
 0xadb   :  { %v2296_v17 = vpop.permute.xlu0 %2295 }
 0xadc   :  { %6330 = vmatpush3.bf16.msra.mxu0 %v2296_v17 }
 0xadd   :  { %6341 = vmatprep.subr.bf16.mxu0 %v9221_v5 }
 0xaf6   :  { %v2219_v53 = vpop.xlane.xlu1 %2218 }
 0xafa   :  { %v2344_v44 = vpop.permute.xlu1 %2343 }
 0xb15   :  { %v2210_v1 = vpop.xlane.xlu0 %2209 }
 0xb16   :  { %6890 = vrcp.f32 %v2210_v1 }
 0xb19   :  { %v2204_v51 = vpop.xlane.xlu0 %2203 }
 0xb1d   :  { %v2213_v25 = vpop.xlane.xlu0 %2212 }
 0xb1e   :  { %6892 = vrcp.f32 %v2213_v25 }
 0xb1f   :  { %6894 = vrcp.f32 %v2204_v51 }
 0xb20   :  { %v6891_v15 = vpop.eup %6890 }
 0xb21   :  { %v2207_v55 = vpop.xlane.xlu0 %2206  ;;  %v2236_v42 = vmul.f32 %v6891_v15, %v6877_v49 }
 0xb22   :  { %6896 = vrcp.f32 %v2207_v55 }
 0xb23   :  { %6898 = vrcp.f32 %v2219_v53 }
 0xb25   :  { %v2222_v29 = vpop.xlane.xlu0 %2221 }
 0xb28   :  { %v6893_v12 = vpop.eup %6892 }
 0xb29   :  { %v2237_v39 = vmul.f32 %v6893_v12, %v6881_v13  ;;  %v2216_v40 = vpop.xlane.xlu0 %2215  ;;  %v6895_v36 = vpop.eup %6894 }
 0xb2a   :  { %6900 = vrcp.f32 %v2216_v40  ;;  %v2234_v6 = vmul.f32 %v6895_v36, %v6879_v20 }
 0xb2b   :  { %v2243_v3 = vpack.c.bf16 %v2237_v39, %v2236_v42  ;;  %6902 = vrcp.f32 %v2222_v29  ;;  %v5829_v29 = vld [vmem:[%s9214_s7 + $0x3] ss:$0 sm:$0xff] }
 0xb2c   :  { %v6897_v37 = vpop.eup %6896 }
 0xb2d   :  { %v2235_v57 = vmul.f32 %v6897_v37, %v6883_v24  ;;  %6332 = vmatmul.mubr.msk.bf16.vlgmr.msra.gmra.mrb[28].mxu0 %vm681_vm7, %v2243_v3  ;;  %v2225_v8 = vpop.xlane.xlu0 %2224  ;;  %v6899_v10 = vpop.eup %6898 }
 0xb2e   :  { %6904 = vrcp.f32 %v2225_v8  ;;  %6343 = vmatprep.mubr.msk.bf16.mxu0 %vm7115_vm2, %v9221_v5  ;;  %v2239_v49 = vmul.f32 %v6899_v10, %v7880_v7  ;;  %v6745_v7 = vld [vmem:[%s9215_s4 + $0x8] sm:$0xff]  }
 0xb2f   :  { %v2242_v61 = vpack.c.bf16 %v2235_v57, %v2234_v6 }
 0xb31   :  { %6326 = vmatmul.mubr.msk.bf16.vlgmr.msra.gmra.mrb[20].mxu1 %vm681_vm7, %v2242_v61  ;;  %v2392_v9 = vpop.permute.xlu0 %2391 }
 0xb32   :  { %6336 = vmatpush3.bf16.msra.mxu1 %v2344_v44  ;;  %6342 = vmatpush3.bf16.msra.mxu0 %v2392_v9 }
 0xb33   :  { %6337 = vmatprep.mubr.msk.bf16.mxu1 %vm7115_vm2, %v9221_v5  ;;  %6347 = vmatprep.subr.bf16.mxu1 %v6744_v31 }
 0xb34   :  { %v6901_v54 = vpop.eup %6900 }
 0xb35   :  { %v2238_v38 = vmul.f32 %v6901_v54, %v6887_v45  ;;  %v6903_v52 = vpop.eup %6902 }
 0xb36   :  { %v2240_v20 = vmul.f32 %v6903_v52, %v6885_v34 }
 0xb37   :  { %v2244_v30 = vpack.c.bf16 %v2239_v49, %v2238_v38 }
 0xb38   :  { %v6905_v48 = vpop.eup %6904 }
 0xb39   :  { %v2241_v18 = vmul.f32 %v6905_v48, %v6889_v46  ;;  %6338 = vmatmul.mubr.msk.bf16.vlgmr.msra.gmra.mrb[24].mxu1 %vm681_vm7, %v2244_v30 }
 0xb3a   :  { %6348 = vmatpush3.bf16.msra.mxu1 %v6744_v31 }
 0xb3b   :  { %v2245_v47 = vpack.c.bf16 %v2241_v18, %v2240_v20  ;;  %6349 = vmatprep.subr.bf16.mxu1 %v6745_v7 }
 0xb3d   :  { %6344 = vmatmul.mubr.msk.bf16.vlgmr.msra.gmra.mrb[32].mxu0 %vm681_vm7, %v2245_v47 }
 0xb3e   :  { %6350 = vmatpush3.bf16.msra.mxu1 %v6745_v7 }
 0xc00   :  { %v2335_v13 = vpop.f32.mrb[28].mxu0 }
 0xc01   :  { %v6333_v23 = vpop.f32.mrb[29].mxu0 }
 0xc02   :  { %v2338_v27 = vpop.f32.mrb[30].mxu0 }
 0xc03   :  { %v2447_v24 = vpack.c.bf16 %v2338_v27, %v2335_v13  ;;  %v6334_v41 = vpop.f32.mrb[31].mxu0 }
 0xc04   :  { %v2287_v34 = vpop.f32.mrb[20].mxu1 }
 0xc05   :  { %v6327_v60 = vpop.f32.mrb[21].mxu1 }
 0xc06   :  { %v2290_v45 = vpop.f32.mrb[22].mxu1 }
 0xc07   :  { %v2446_v56 = vpack.c.bf16 %v2290_v45, %v2287_v34  ;;  %v6328_v46 = vpop.f32.mrb[23].mxu1 }
 0xc09   :  { %6351 = vmatprep.mubr.msk.bf16.mxu1 %vm222_vm1, %v2446_v56 }
 0xc0a   :  { %6352 = vmatmul.mubr.msk.bf16.vlgmr.msra.gmra.mrb[44].mxu1 %vm222_vm1, %v2447_v24 }
 0xc0c   :  { %v2383_v43 = vpop.f32.mrb[24].mxu1 }
 0xc0d   :  { %v6339_v26 = vpop.f32.mrb[25].mxu1 }
 0xc0e   :  { %v2386_v22 = vpop.f32.mrb[26].mxu1 }
 0xc0f   :  { %v2448_v21 = vpack.c.bf16 %v2386_v22, %v2383_v43  ;;  %v6340_v62 = vpop.f32.mrb[27].mxu1 }
 0xc10   :  { %v2431_v17 = vpop.f32.mrb[32].mxu0 }
 0xc11   :  { %v6345_v1 = vpop.f32.mrb[33].mxu0  ;;  %6355 = vmatprep.mubr.msk.bf16.mxu1 %vm222_vm1, %v2448_v21 }
 0xc12   :  { %v2434_v51 = vpop.f32.mrb[34].mxu0 }
 0xc13   :  { %v2449_v25 = vpack.c.bf16 %v2434_v51, %v2431_v17  ;;  %v6346_v55 = vpop.f32.mrb[35].mxu0 }
 0xc15   :  { %6356 = vmatmul.mubr.msk.bf16.gmra.mrb[48].mxu1 %vm222_vm1, %v2449_v25 }
 0xcdd   :  { %v6353_v53 = vpop.f32.mrb[44].mxu1 }
 0xcde   :  { %v2508_v15 = vpop.f32.mrb[45].mxu1  ;;  %v2541_v12 = vadd.f32 %v6353_v53, %v7193_v11 }
 0xcdf   :  { %v2539_v42 = vadd.f32 %v2508_v15, %v7198_v14  ;;  %v6354_v39 = vpop.f32.mrb[46].mxu1 }
 0xce0   :  { %v2511_v40 = vpop.f32.mrb[47].mxu1  ;;  %v7933_v37 = vadd.f32 %v5829_v29, %v2541_v12  ;;  %v2542_v6 = vadd.f32 %v6354_v39, %v7200_v16 }
 0xce1   :  { %v7930_v36 = vadd.f32 %v5829_v29, %v2539_v42  ;;  %v2540_v3 = vadd.f32 %v2511_v40, %v7204_v19 }
 0xce2   :  { %v7942_v14 = vadd.f32 %v5829_v29, %v2542_v6  ;;  %v2565_v61 = vsel %vm222_vm1, %v7933_v37, 0.0 }
 0xce3   :  { %v7936_v57 = vadd.f32 %v5829_v29, %v2540_v3  ;;  %v2559_v8 = vsel %vm222_vm1, %v7930_v36, 0.0 }
 0xce4   :  { %2560 = vadd.xlane.f32.xlu0 %v2559_v8  ;;  %v2568_v49 = vsel %vm222_vm1, %v7942_v14, 0.0 }
 0xce5   :  { %v2562_v11 = vsel %vm222_vm1, %v7936_v57, 0.0 }
 0xce6   :  { %2563 = vadd.xlane.f32.xlu1 %v2562_v11 }
 0xce8   :  { %2566 = vadd.xlane.f32.xlu0 %v2565_v61  ;;  %v6357_v19 = vpop.f32.mrb[48].mxu1 }
 0xce9   :  { %v2524_v44 = vpop.f32.mrb[49].mxu1  ;;  %v2545_v20 = vadd.f32 %v6357_v19, %v7226_v32 }
 0xcea   :  { %v2543_v16 = vadd.f32 %v2524_v44, %v7221_v28  ;;  %v6358_v9 = vpop.f32.mrb[50].mxu1 }
 0xceb   :  { %v2546_v10 = vadd.f32 %v6358_v9, %v7232_v35  ;;  %v2527_v54 = vpop.f32.mrb[51].mxu1  ;;  %v7962_v18 = vadd.f32 %v5829_v29, %v2545_v20 }
 0xcec   :  { %v7950_v38 = vadd.f32 %v5829_v29, %v2543_v16  ;;  %v2544_v52 = vadd.f32 %v2527_v54, %v7228_v33  ;;  %2569 = vadd.xlane.f32.xlu0 %v2568_v49  ;;  %v6746_v54 = vld [vmem:[%s9216_s5] sm:$0xff]   ;;  %v6747_v49 = vld [vmem:[%s9216_s5 + $0x8] sm:$0xff]  }
 0xced   :  { %v7953_v30 = vadd.f32 %v5829_v29, %v2546_v10  ;;  %v2577_v47 = vsel %vm222_vm1, %v7962_v18, 0.0  ;;  %6359 = vmatprep.subr.bf16.mxu0 %v6746_v54 }
 0xcee   :  { %v2571_v48 = vsel %vm222_vm1, %v7950_v38, 0.0  ;;  %v7958_v28 = vadd.f32 %v5829_v29, %v2544_v52  ;;  %6360 = vmatpush3.bf16.msra.mxu0 %v6746_v54 }
 0xcef   :  { %v2580_v35 = vsel %vm222_vm1, %v7953_v30, 0.0  ;;  %6361 = vmatprep.subr.bf16.mxu0 %v6747_v49 }
 0xcf0   :  { %2572 = vadd.xlane.f32.xlu0 %v2571_v48  ;;  %2581 = vadd.xlane.f32.xlu1 %v2580_v35  ;;  %v2574_v33 = vsel %vm222_vm1, %v7958_v28, 0.0 }
 0xcf2   :  { %6362 = vmatpush3.bf16.msra.mxu0 %v6747_v49 }
 0xcf4   :  { %2575 = vadd.xlane.f32.xlu0 %v2574_v33 }
 0xcf8   :  { %2578 = vadd.xlane.f32.xlu0 %v2577_v47 }
 0xd71   :  { %v2561_v31 = vpop.xlane.xlu0 %2560 }
 0xd72   :  { %v2583_v7 = vmul.f32 0.03125, %v2561_v31 }
 0xd73   :  { %v2564_v32 = vpop.xlane.xlu1 %2563 }
 0xd74   :  { %v7969_v13 = vsub.f32 %v7930_v36, %v2583_v7  ;;  %v2584_v23 = vmul.f32 0.03125, %v2564_v32 }
 0xd75   :  { %v2567_v27 = vpop.xlane.xlu0 %2566 }
 0xd76   :  { %v7972_v24 = vsub.f32 %v7936_v57, %v2584_v23  ;;  %v2585_v41 = vmul.f32 0.03125, %v2567_v27  ;;  %v2599_v34 = vmul.f32 %v7969_v13, %v7969_v13 }
 0xd78   :  { %v7977_v60 = vsub.f32 %v7933_v37, %v2585_v41  ;;  %v2607_v45 = vsel %vm222_vm1, %v2599_v34, 0.0  ;;  %v2600_v56 = vmul.f32 %v7972_v24, %v7972_v24 }
 0xd79   :  { %2608 = vadd.xlane.f32.xlu0 %v2607_v45  ;;  %v2570_v46 = vpop.xlane.xlu0 %2569 }
 0xd7a   :  { %v2586_v43 = vmul.f32 0.03125, %v2570_v46  ;;  %v2610_v26 = vsel %vm222_vm1, %v2600_v56, 0.0  ;;  %v2601_v22 = vmul.f32 %v7977_v60, %v7977_v60  ;;  %v5830_v46 = vld [vmem:[%s9214_s7 + $0x4] ss:$0 sm:$0xff] }
 0xd7b   :  { %2611 = vadd.xlane.f32.xlu1 %v2610_v26 }
 0xd7c   :  { %v7986_v21 = vsub.f32 %v7942_v14, %v2586_v43  ;;  %v2613_v62 = vsel %vm222_vm1, %v2601_v22, 0.0 }
 0xd7d   :  { %v2582_v17 = vpop.xlane.xlu1 %2581  ;;  %2614 = vadd.xlane.f32.xlu0 %v2613_v62  ;;  %v2573_v1 = vpop.xlane.xlu0 %2572 }
 0xd7e   :  { %v2587_v51 = vmul.f32 0.03125, %v2573_v1  ;;  %v2602_v25 = vmul.f32 %v7986_v21, %v7986_v21  ;;  %v2590_v55 = vmul.f32 0.03125, %v2582_v17 }
 0xd80   :  { %v7992_v53 = vsub.f32 %v7950_v38, %v2587_v51  ;;  %v2616_v29 = vsel %vm222_vm1, %v2602_v25, 0.0  ;;  %v7998_v39 = vsub.f32 %v7953_v30, %v2590_v55 }
 0xd81   :  { %2617 = vadd.xlane.f32.xlu1 %v2616_v29  ;;  %v2576_v15 = vpop.xlane.xlu0 %2575  ;;  %v5831_v29 = vld [vmem:[%s9214_s7 + $0x5] ss:$0 sm:$0xff] }
 0xd82   :  { %v2588_v12 = vmul.f32 0.03125, %v2576_v15  ;;  %v2603_v42 = vmul.f32 %v7992_v53, %v7992_v53  ;;  %v2606_v44 = vmul.f32 %v7998_v39, %v7998_v39 }
 0xd84   :  { %v8001_v40 = vsub.f32 %v7958_v28, %v2588_v12  ;;  %v2619_v3 = vsel %vm222_vm1, %v2603_v42, 0.0  ;;  %v2628_v9 = vsel %vm222_vm1, %v2606_v44, 0.0 }
 0xd85   :  { %2620 = vadd.xlane.f32.xlu0 %v2619_v3  ;;  %v2579_v6 = vpop.xlane.xlu0 %2578 }
 0xd86   :  { %v2589_v8 = vmul.f32 0.03125, %v2579_v6  ;;  %v2604_v11 = vmul.f32 %v8001_v40, %v8001_v40 }
 0xd88   :  { %v8007_v61 = vsub.f32 %v7962_v18, %v2589_v8  ;;  %v2622_v19 = vsel %vm222_vm1, %v2604_v11, 0.0 }
 0xd89   :  { %2623 = vadd.xlane.f32.xlu1 %v2622_v19 }
 0xd8a   :  { %v2605_v16 = vmul.f32 %v8007_v61, %v8007_v61 }
 0xd8c   :  { %v2625_v10 = vsel %vm222_vm1, %v2605_v16, 0.0 }
 0xd8d   :  { %2629 = vadd.xlane.f32.xlu1 %v2628_v9  ;;  %2626 = vadd.xlane.f32.xlu0 %v2625_v10 }
 0xe06   :  { %v2609_v52 = vpop.xlane.xlu0 %2608 }
 0xe07   :  { %v2631_v48 = vmul.f32 0.03125, %v2609_v52 }
 0xe08   :  { %v2612_v20 = vpop.xlane.xlu1 %2611 }
 0xe09   :  { %v2639_v35 = vadd.f32 1e-06, %v2631_v48  ;;  %v2632_v33 = vmul.f32 0.03125, %v2612_v20 }
 0xe0a   :  { %v2615_v47 = vpop.xlane.xlu0 %2614 }
 0xe0b   :  { %6906 = vrsqrt.f32 %v2639_v35  ;;  %v2640_v31 = vadd.f32 1e-06, %v2632_v33  ;;  %v2633_v7 = vmul.f32 0.03125, %v2615_v47 }
 0xe0d   :  { %6908 = vrsqrt.f32 %v2640_v31  ;;  %v2641_v32 = vadd.f32 1e-06, %v2633_v7 }
 0xe0e   :  { %v2618_v23 = vpop.xlane.xlu1 %2617 }
 0xe0f   :  { %6910 = vrsqrt.f32 %v2641_v32  ;;  %v2634_v27 = vmul.f32 0.03125, %v2618_v23 }
 0xe11   :  { %v2642_v41 = vadd.f32 1e-06, %v2634_v27 }
 0xe12   :  { %v2621_v34 = vpop.xlane.xlu0 %2620 }
 0xe13   :  { %6912 = vrsqrt.f32 %v2642_v41  ;;  %v2635_v45 = vmul.f32 0.03125, %v2621_v34 }
 0xe15   :  { %v6907_v56 = vpop.eup %6906  ;;  %v2643_v43 = vadd.f32 1e-06, %v2635_v45 }
 0xe16   :  { %v2624_v26 = vpop.xlane.xlu1 %2623  ;;  %v2655_v22 = vmul.f32 %v6907_v56, %v7969_v13 }
 0xe17   :  { %v6909_v62 = vpop.eup %6908  ;;  %6914 = vrsqrt.f32 %v2643_v43  ;;  %v2636_v17 = vmul.f32 0.03125, %v2624_v26 }
 0xe18   :  { %v2656_v1 = vmul.f32 %v6909_v62, %v7972_v24  ;;  %v2667_v51 = vmul.f32 %v5830_v46, %v2655_v22  ;;  %v5832_v22 = vld [vmem:[%s9214_s7 + $0x6] ss:$0 sm:$0xff] }
 0xe19   :  { %v6911_v25 = vpop.eup %6910  ;;  %v2644_v55 = vadd.f32 1e-06, %v2636_v17 }
 0xe1a   :  { %v2657_v15 = vmul.f32 %v6911_v25, %v7977_v60  ;;  %v2630_v12 = vpop.xlane.xlu1 %2629  ;;  %v2627_v42 = vpop.xlane.xlu0 %2626  ;;  %v2668_v3 = vmul.f32 %v5830_v46, %v2656_v1  ;;  %v2679_v8 = vadd.f32 %v5831_v29, %v2667_v51 }
 0xe1b   :  { %6916 = vrsqrt.f32 %v2644_v55  ;;  %v2638_v6 = vmul.f32 0.03125, %v2630_v12  ;;  %v2637_v13 = vmul.f32 0.03125, %v2627_v42 }
 0xe1c   :  { %v2680_v11 = vadd.f32 %v5831_v29, %v2668_v3  ;;  %v2669_v16 = vmul.f32 %v5830_v46, %v2657_v15 }
 0xe1d   :  { %v6913_v19 = vpop.eup %6912  ;;  %v2646_v44 = vadd.f32 1e-06, %v2638_v6  ;;  %v2645_v24 = vadd.f32 1e-06, %v2637_v13 }
 0xe1e   :  { %v2658_v9 = vmul.f32 %v6913_v19, %v7986_v21  ;;  %v2687_v10 = vpack.c.bf16 %v2680_v11, %v2679_v8  ;;  %v2681_v49 = vadd.f32 %v5831_v29, %v2669_v16 }
 0xe1f   :  { %6918 = vrsqrt.f32 %v2646_v44 }
 0xe20   :  { %v2670_v54 = vmul.f32 %v5830_v46, %v2658_v9  ;;  %6920 = vrsqrt.f32 %v2645_v24  ;;  %6363 = vmatprep.mubr.msk.bf16.mxu0 %vm222_vm1, %v2687_v10 }
 0xe21   :  { %v6915_v60 = vpop.eup %6914 }
 0xe22   :  { %v2682_v52 = vadd.f32 %v5831_v29, %v2670_v54  ;;  %v2659_v48 = vmul.f32 %v6915_v60, %v7992_v53 }
 0xe24   :  { %v2688_v20 = vpack.c.bf16 %v2682_v52, %v2681_v49  ;;  %v2671_v47 = vmul.f32 %v5830_v46, %v2659_v48 }
 0xe25   :  { %v6917_v35 = vpop.eup %6916 }
 0xe26   :  { %6364 = vmatmul.mubr.msk.bf16.vlgmr.msra.gmra.mrb[52].mxu0 %vm222_vm1, %v2688_v20  ;;  %v2660_v33 = vmul.f32 %v6917_v35, %v8001_v40  ;;  %v2683_v32 = vadd.f32 %v5831_v29, %v2671_v47  ;;  %v6748_v40 = vld [vmem:[%s9217_s6] sm:$0xff]  }
 0xe27   :  { %6371 = vmatprep.subr.bf16.mxu1 %v6748_v40 }
 0xe28   :  { %v2672_v31 = vmul.f32 %v5830_v46, %v2660_v33  ;;  %6372 = vmatpush3.bf16.msra.mxu1 %v6748_v40 }
 0xe29   :  { %v6919_v21 = vpop.eup %6918 }
 0xe2a   :  { %v6921_v7 = vpop.eup %6920  ;;  %v2684_v23 = vadd.f32 %v5831_v29, %v2672_v31  ;;  %v2662_v27 = vmul.f32 %v6919_v21, %v7998_v39  ;;  %v6749_v39 = vld [vmem:[%s9217_s6 + $0x8] sm:$0xff]  }
 0xe2b   :  { %v2661_v41 = vmul.f32 %v6921_v7, %v8007_v61  ;;  %6373 = vmatprep.subr.bf16.mxu1 %v6749_v39  ;;  %v6750_v61 = vld [vmem:[%s9217_s6 + $0x10] sm:$0xff]  }
 0xe2c   :  { %v2689_v34 = vpack.c.bf16 %v2684_v23, %v2683_v32  ;;  %v2674_v45 = vmul.f32 %v5830_v46, %v2662_v27  ;;  %6374 = vmatpush3.bf16.msra.mxu1 %v6749_v39 }
 0xe2d   :  { %v2673_v56 = vmul.f32 %v5830_v46, %v2661_v41  ;;  %6375 = vmatprep.subr.bf16.mxu1 %v6750_v61  ;;  %v6751_v46 = vld [vmem:[%s9217_s6 + $0x18] sm:$0xff]  }
 0xe2e   :  { %6367 = vmatprep.mubr.msk.bf16.mxu0 %vm222_vm1, %v2689_v34  ;;  %v2686_v53 = vadd.f32 %v5831_v29, %v2674_v45 }
 0xe2f   :  { %v2685_v43 = vadd.f32 %v5831_v29, %v2673_v56 }
 0xe30   :  { %6376 = vmatpush3.bf16.msra.mxu1 %v6750_v61 }
 0xe31   :  { %v2690_v26 = vpack.c.bf16 %v2686_v53, %v2685_v43  ;;  %6377 = vmatprep.subr.bf16.mxu1 %v6751_v46 }
 0xe33   :  { %6368 = vmatmul.mubr.msk.bf16.gmra.mrb[56].mxu0 %vm222_vm1, %v2690_v26 }
 0xe34   :  { %6378 = vmatpush3.bf16.msra.mxu1 %v6751_v46 }
 0xe35   :  { %6399 = vmatprep.subr.bf16.mxu1 %v9221_v5 }
 0xef9   :  { %v6365_v62 = vpop.f32.mrb[52].mxu0 }
 0xefa   :  { %v8056_v17 = vadd.f32 %v6365_v62, %v5832_v22  ;;  %v2753_v1 = vpop.f32.mrb[53].mxu0 }
 0xefb   :  { %v8058_v51 = vadd.f32 %v5832_v22, %v2753_v1  ;;  %v6366_v25 = vpop.f32.mrb[54].mxu0 }
 0xefc   :  { %v2786_v55 = vmul.f32 %v8056_v17, %v8056_v17  ;;  %v8062_v29 = vadd.f32 %v6366_v25, %v5832_v22  ;;  %v2756_v15 = vpop.f32.mrb[55].mxu0 }
 0xefd   :  { %v2784_v12 = vmul.f32 %v8058_v51, %v8058_v51  ;;  %v8066_v42 = vadd.f32 %v5832_v22, %v2756_v15 }
 0xefe   :  { %v2794_v3 = vmul.f32 %v2786_v55, %v8056_v17  ;;  %v2787_v6 = vmul.f32 %v8062_v29, %v8062_v29 }
 0xeff   :  { %v2792_v13 = vmul.f32 %v2784_v12, %v8058_v51  ;;  %v2785_v8 = vmul.f32 %v8066_v42, %v8066_v42 }
 0xf00   :  { %v2802_v11 = vmul.f32 0.044715, %v2794_v3  ;;  %v2795_v19 = vmul.f32 %v2787_v6, %v8062_v29 }
 0xf01   :  { %v2800_v44 = vmul.f32 0.044715, %v2792_v13  ;;  %v2793_v24 = vmul.f32 %v2785_v8, %v8066_v42 }
 0xf02   :  { %v2810_v16 = vadd.f32 %v2802_v11, %v8056_v17  ;;  %v2803_v9 = vmul.f32 0.044715, %v2795_v19 }
 0xf03   :  { %v2808_v10 = vadd.f32 %v2800_v44, %v8058_v51  ;;  %v2801_v54 = vmul.f32 0.044715, %v2793_v24 }
 0xf04   :  { %v2818_v60 = vmul.f32 0.7978846, %v2810_v16  ;;  %v2811_v49 = vadd.f32 %v2803_v9, %v8062_v29 }
 0xf05   :  { %v2816_v52 = vmul.f32 0.7978846, %v2808_v10  ;;  %v2809_v48 = vadd.f32 %v2801_v54, %v8066_v42 }
 0xf06   :  { %6922 = vtanh.f32 %v2818_v60  ;;  %v2819_v20 = vmul.f32 0.7978846, %v2811_v49  ;;  %v6369_v35 = vpop.f32.mrb[56].mxu0 }
 0xf07   :  { %6924 = vtanh.f32 %v2816_v52  ;;  %v2817_v33 = vmul.f32 0.7978846, %v2809_v48  ;;  %v8080_v47 = vadd.f32 %v6369_v35, %v5832_v22  ;;  %v2769_v31 = vpop.f32.mrb[57].mxu0 }
 0xf08   :  { %6926 = vtanh.f32 %v2819_v20  ;;  %v8082_v21 = vadd.f32 %v5832_v22, %v2769_v31  ;;  %v6370_v7 = vpop.f32.mrb[58].mxu0 }
 0xf09   :  { %6928 = vtanh.f32 %v2817_v33  ;;  %v2790_v32 = vmul.f32 %v8080_v47, %v8080_v47  ;;  %v2781_v23 = vadd.f32 %v6370_v7, %v5832_v22  ;;  %v2772_v27 = vpop.f32.mrb[59].mxu0 }
 0xf0a   :  { %v2788_v41 = vmul.f32 %v8082_v21, %v8082_v21  ;;  %v2773_v34 = vadd.f32 %v5832_v22, %v2772_v27 }
 0xf0b   :  { %v2798_v45 = vmul.f32 %v2790_v32, %v8080_v47  ;;  %v2791_v56 = vmul.f32 %v2781_v23, %v2781_v23 }
 0xf0c   :  { %v2796_v53 = vmul.f32 %v2788_v41, %v8082_v21  ;;  %v2789_v43 = vmul.f32 %v2773_v34, %v2773_v34 }
 0xf0d   :  { %v2806_v26 = vmul.f32 0.044715, %v2798_v45  ;;  %v2799_v40 = vmul.f32 %v2791_v56, %v2781_v23 }
 0xf0e   :  { %v2804_v39 = vmul.f32 0.044715, %v2796_v53  ;;  %v2797_v61 = vmul.f32 %v2789_v43, %v2773_v34 }
 0xf0f   :  { %v2814_v46 = vadd.f32 %v2806_v26, %v8080_v47  ;;  %v2807_v62 = vmul.f32 0.044715, %v2799_v40 }
 0xf10   :  { %v6923_v1 = vpop.eup %6922  ;;  %v2812_v25 = vadd.f32 %v2804_v39, %v8082_v21  ;;  %v2805_v55 = vmul.f32 0.044715, %v2797_v61 }
 0xf11   :  { %v6925_v15 = vpop.eup %6924  ;;  %v2834_v12 = vadd.f32 1.0, %v6923_v1  ;;  %v2822_v22 = vmul.f32 0.7978846, %v2814_v46  ;;  %v2815_v3 = vadd.f32 %v2807_v62, %v2781_v23 }
 0xf12   :  { %v6927_v6 = vpop.eup %6926  ;;  %v2832_v13 = vadd.f32 1.0, %v6925_v15  ;;  %v2820_v8 = vmul.f32 0.7978846, %v2812_v25  ;;  %v2813_v11 = vadd.f32 %v2805_v55, %v2773_v34  ;;  %v5847_v25 = vld [vmem:[%s9214_s7 + $0x7] ss:$0 sm:$0xff] }
 0xf13   :  { %v6929_v19 = vpop.eup %6928  ;;  %v2842_v44 = vmul.f32 0.5, %v2834_v12  ;;  %v2835_v24 = vadd.f32 1.0, %v6927_v6  ;;  %6930 = vtanh.f32 %v2822_v22  ;;  %v2823_v16 = vmul.f32 0.7978846, %v2815_v3 }
 0xf14   :  { %v2840_v9 = vmul.f32 0.5, %v2832_v13  ;;  %v2833_v10 = vadd.f32 1.0, %v6929_v19  ;;  %6932 = vtanh.f32 %v2820_v8  ;;  %v2821_v54 = vmul.f32 0.7978846, %v2813_v11 }
 0xf15   :  { %v2843_v60 = vmul.f32 0.5, %v2835_v24  ;;  %6934 = vtanh.f32 %v2823_v16  ;;  %v2850_v52 = vmul.f32 %v2842_v44, %v8056_v17 }
 0xf16   :  { %v2841_v49 = vmul.f32 0.5, %v2833_v10  ;;  %6936 = vtanh.f32 %v2821_v54  ;;  %v2848_v20 = vmul.f32 %v2840_v9, %v8058_v51 }
 0xf17   :  { %v2851_v48 = vmul.f32 %v2843_v60, %v8062_v29 }
 0xf18   :  { %v2849_v35 = vmul.f32 %v2841_v49, %v8066_v42 }
 0xf19   :  { %v2857_v33 = vpack.c.bf16 %v2851_v48, %v2850_v52 }
 0xf1a   :  { %v2856_v31 = vpack.c.bf16 %v2849_v35, %v2848_v20 }
 0xf1c   :  { %6379 = vmatprep.mubr.msk.bf16.mxu1 %vm2884_vm14, %v2856_v31 }
 0xf1d   :  { %v6931_v7 = vpop.eup %6930  ;;  %6380 = vmatmul.mubr.msk.bf16.vlgmr.msra.gmra.mrb[52].mxu1 %vm2884_vm14, %v2857_v33 }
 0xf1e   :  { %v6933_v32 = vpop.eup %6932  ;;  %v2838_v27 = vadd.f32 1.0, %v6931_v7 }
 0xf1f   :  { %v6935_v41 = vpop.eup %6934  ;;  %v2836_v45 = vadd.f32 1.0, %v6933_v32 }
 0xf20   :  { %v6937_v56 = vpop.eup %6936  ;;  %v2846_v17 = vmul.f32 0.5, %v2838_v27  ;;  %v2839_v53 = vadd.f32 1.0, %v6935_v41 }
 0xf21   :  { %v2844_v29 = vmul.f32 0.5, %v2836_v45  ;;  %v2837_v43 = vadd.f32 1.0, %v6937_v56 }
 0xf22   :  { %v2847_v51 = vmul.f32 0.5, %v2839_v53  ;;  %v2854_v42 = vmul.f32 %v2846_v17, %v8080_v47 }
 0xf23   :  { %v2845_v26 = vmul.f32 0.5, %v2837_v43  ;;  %v2852_v39 = vmul.f32 %v2844_v29, %v8082_v21 }
 0xf24   :  { %v2855_v40 = vmul.f32 %v2847_v51, %v2781_v23 }
 0xf25   :  { %v2853_v61 = vmul.f32 %v2845_v26, %v2773_v34 }
 0xf26   :  { %v2859_v46 = vpack.c.bf16 %v2855_v40, %v2854_v42 }
 0xf27   :  { %v2858_v62 = vpack.c.bf16 %v2853_v61, %v2852_v39 }
 0xf29   :  { %6383 = vmatprep.mubr.msk.bf16.mxu1 %vm2884_vm14, %v2858_v62 }
 0xf2a   :  { %6384 = vmatmul.mubr.msk.bf16.gmra.mrb[56].mxu1 %vm2884_vm14, %v2859_v46 }
 0xf2b   :  { %6401 = vmatprep.mubr.msk.bf16.mxu1 %vm7115_vm2, %v9221_v5 }
 0xff0   :  { %v6381_v1 = vpop.f32.mrb[52].mxu1 }
 0xff1   :  { %v2931_v55 = vpop.f32.mrb[53].mxu1  ;;  %v2964_v47 = vadd.f32 %v6381_v1, %v7933_v37 }
 0xff2   :  { %v2962_v21 = vadd.f32 %v2931_v55, %v7930_v36  ;;  %v6382_v23 = vpop.f32.mrb[54].mxu1 }
 0xff3   :  { %v2934_v34 = vpop.f32.mrb[55].mxu1  ;;  %v2965_v12 = vadd.f32 %v6382_v23, %v7942_v14  ;;  %v8113_v3 = vadd.f32 %v5847_v25, %v2964_v47 }
 0xff4   :  { %v8109_v15 = vadd.f32 %v5847_v25, %v2962_v21  ;;  %v2963_v22 = vadd.f32 %v2934_v34, %v7936_v57 }
 0xff5   :  { %9255 = vst [vmem:[#allocation4_spill] sm:$0xff] %v8113_v3  ;;  %v8119_v8 = vadd.f32 %v5847_v25, %v2965_v12  ;;  %v3021_v37 = vsel %vm222_vm1, %v8113_v3, 0.0 }
 0xff6   :  { %9254 = vst [vmem:[#allocation3_spill] sm:$0xff] %v8109_v15  ;;  %v8115_v6 = vadd.f32 %v5847_v25, %v2963_v22  ;;  %v3015_v13 = vsel %vm222_vm1, %v8109_v15, 0.0 }
 0xff7   :  { %3016 = vadd.xlane.f32.xlu0 %v3015_v13  ;;  %9257 = vst [vmem:[#allocation6_spill] sm:$0xff] %v8119_v8  ;;  %v3024_v57 = vsel %vm222_vm1, %v8119_v8, 0.0 }
 0xff8   :  { %9256 = vst [vmem:[#allocation5_spill] sm:$0xff] %v8115_v6  ;;  %v3018_v36 = vsel %vm222_vm1, %v8115_v6, 0.0 }
 0xff9   :  { %3019 = vadd.xlane.f32.xlu1 %v3018_v36 }
 0xffb   :  { %3022 = vadd.xlane.f32.xlu0 %v3021_v37 }
 0xffd   :  { %v6385_v14 = vpop.f32.mrb[56].mxu1  ;;  %3025 = vadd.xlane.f32.xlu1 %v3024_v57 }
 0xffe   :  { %v2947_v11 = vpop.f32.mrb[57].mxu1  ;;  %v2968_v19 = vadd.f32 %v6385_v14, %v7962_v18 }
 0xfff   :  { %v2966_v44 = vadd.f32 %v2947_v11, %v7950_v38  ;;  %v6386_v24 = vpop.f32.mrb[58].mxu1 }
0x1000   :  { %v2950_v16 = vpop.f32.mrb[59].mxu1  ;;  %v2969_v10 = vadd.f32 %v6386_v24, %v7953_v30  ;;  %v8133_v60 = vadd.f32 %v5847_v25, %v2968_v19  ;;  %v6752_v24 = vld [vmem:[%s9213_s3 + $0x10] sm:$0xff]  }
0x1001   :  { %v8129_v9 = vadd.f32 %v5847_v25, %v2966_v44  ;;  %v2967_v54 = vadd.f32 %v2950_v16, %v7958_v28  ;;  %v6753_v16 = vld [vmem:[%s9213_s3 + $0x18] sm:$0xff]   ;;  %6387 = vmatprep.subr.bf16.mxu0 %v6752_v24 }
0x1002   :  { %9259 = vst [vmem:[#allocation8_spill] sm:$0xff] %v8133_v60  ;;  %v8139_v48 = vadd.f32 %v5847_v25, %v2969_v10  ;;  %v3033_v18 = vsel %vm222_vm1, %v8133_v60, 0.0  ;;  %6388 = vmatpush3.bf16.msra.mxu0 %v6752_v24 }
0x1003   :  { %9258 = vst [vmem:[#allocation7_spill] sm:$0xff] %v8129_v9  ;;  %v8135_v49 = vadd.f32 %v5847_v25, %v2967_v54  ;;  %v3027_v52 = vsel %vm222_vm1, %v8129_v9, 0.0  ;;  %6389 = vmatprep.subr.bf16.mxu0 %v6753_v16 }
0x1004   :  { %3028 = vadd.xlane.f32.xlu0 %v3027_v52  ;;  %9261 = vst [vmem:[#allocation10_spill] sm:$0xff] %v8139_v48  ;;  %v3036_v30 = vsel %vm222_vm1, %v8139_v48, 0.0 }
0x1005   :  { %9260 = vst [vmem:[#allocation9_spill] sm:$0xff] %v8135_v49  ;;  %v3030_v38 = vsel %vm222_vm1, %v8135_v49, 0.0 }
0x1006   :  { %3031 = vadd.xlane.f32.xlu1 %v3030_v38  ;;  %6390 = vmatpush3.bf16.msra.mxu0 %v6753_v16 }
0x1007   :  { %6405 = vmatprep.subr.bf16.mxu0 %v9221_v5 }
0x1008   :  { %3034 = vadd.xlane.f32.xlu0 %v3033_v18 }
0x100a   :  { %3037 = vadd.xlane.f32.xlu1 %v3036_v30 }
0x1084   :  { %v3017_v28 = vpop.xlane.xlu0 %3016 }
0x1085   :  { %v3039_v20 = vmul.f32 0.03125, %v3017_v28 }
0x1086   :  { %v3020_v35 = vpop.xlane.xlu1 %3019 }
0x1087   :  { %v8148_v33 = vsub.f32 %v8109_v15, %v3039_v20  ;;  %v3040_v31 = vmul.f32 0.03125, %v3020_v35 }
0x1088   :  { %v3023_v7 = vpop.xlane.xlu0 %3022 }
0x1089   :  { %v8151_v32 = vsub.f32 %v8115_v6, %v3040_v31  ;;  %v3041_v27 = vmul.f32 0.03125, %v3023_v7  ;;  %v3055_v41 = vmul.f32 %v8148_v33, %v8148_v33 }
0x108a   :  { %v3026_v45 = vpop.xlane.xlu1 %3025 }
0x108b   :  { %v8156_v56 = vsub.f32 %v8113_v3, %v3041_v27  ;;  %v3042_v17 = vmul.f32 0.03125, %v3026_v45  ;;  %v3063_v53 = vsel %vm222_vm1, %v3055_v41, 0.0  ;;  %v3056_v29 = vmul.f32 %v8151_v32, %v8151_v32 }
0x108c   :  { %3064 = vadd.xlane.f32.xlu0 %v3063_v53 }
0x108d   :  { %v8162_v43 = vsub.f32 %v8119_v8, %v3042_v17  ;;  %v3066_v51 = vsel %vm222_vm1, %v3056_v29, 0.0  ;;  %v3057_v26 = vmul.f32 %v8156_v56, %v8156_v56  ;;  %v5876_v29 = vld [vmem:[%s9214_s7 + $0x8] ss:$0 sm:$0xff] }
0x108e   :  { %3067 = vadd.xlane.f32.xlu1 %v3066_v51 }
0x108f   :  { %v3069_v42 = vsel %vm222_vm1, %v3057_v26, 0.0  ;;  %v3058_v40 = vmul.f32 %v8162_v43, %v8162_v43 }
0x1090   :  { %3070 = vadd.xlane.f32.xlu0 %v3069_v42 }
0x1091   :  { %v3029_v39 = vpop.xlane.xlu0 %3028  ;;  %v3072_v61 = vsel %vm222_vm1, %v3058_v40, 0.0 }
0x1092   :  { %v3043_v46 = vmul.f32 0.03125, %v3029_v39  ;;  %3073 = vadd.xlane.f32.xlu1 %v3072_v61 }
0x1093   :  { %v3032_v62 = vpop.xlane.xlu1 %3031 }
0x1094   :  { %v8172_v1 = vsub.f32 %v8129_v9, %v3043_v46  ;;  %v3044_v25 = vmul.f32 0.03125, %v3032_v62 }
0x1095   :  { %v3035_v55 = vpop.xlane.xlu0 %3034 }
0x1096   :  { %v8175_v47 = vsub.f32 %v8135_v49, %v3044_v25  ;;  %v3045_v21 = vmul.f32 0.03125, %v3035_v55  ;;  %v3059_v23 = vmul.f32 %v8172_v1, %v8172_v1 }
0x1097   :  { %v3038_v34 = vpop.xlane.xlu1 %3037 }
0x1098   :  { %v8180_v12 = vsub.f32 %v8133_v60, %v3045_v21  ;;  %v3046_v22 = vmul.f32 0.03125, %v3038_v34  ;;  %v3075_v13 = vsel %vm222_vm1, %v3059_v23, 0.0  ;;  %v3060_v36 = vmul.f32 %v8175_v47, %v8175_v47  ;;  %v5877_v23 = vld [vmem:[%s9214_s7 + $0x9] ss:$0 sm:$0xff] }
0x1099   :  { %3076 = vadd.xlane.f32.xlu0 %v3075_v13 }
0x109a   :  { %v8186_v37 = vsub.f32 %v8139_v48, %v3046_v22  ;;  %v3078_v57 = vsel %vm222_vm1, %v3060_v36, 0.0  ;;  %v3061_v14 = vmul.f32 %v8180_v12, %v8180_v12 }
0x109b   :  { %3079 = vadd.xlane.f32.xlu1 %v3078_v57 }
0x109c   :  { %v3081_v11 = vsel %vm222_vm1, %v3061_v14, 0.0  ;;  %v3062_v19 = vmul.f32 %v8186_v37, %v8186_v37 }
0x109d   :  { %3082 = vadd.xlane.f32.xlu0 %v3081_v11 }
0x109e   :  { %v3084_v44 = vsel %vm222_vm1, %v3062_v19, 0.0 }
0x109f   :  { %3085 = vadd.xlane.f32.xlu1 %v3084_v44 }
0x1119   :  { %v3065_v10 = vpop.xlane.xlu0 %3064 }
0x111a   :  { %v3087_v54 = vmul.f32 0.03125, %v3065_v10 }
0x111b   :  { %v3068_v52 = vpop.xlane.xlu1 %3067 }
0x111c   :  { %v3095_v38 = vadd.f32 1e-06, %v3087_v54  ;;  %v3088_v18 = vmul.f32 0.03125, %v3068_v52 }
0x111d   :  { %v3071_v30 = vpop.xlane.xlu0 %3070 }
0x111e   :  { %6938 = vrsqrt.f32 %v3095_v38  ;;  %v3096_v28 = vadd.f32 1e-06, %v3088_v18  ;;  %v3089_v20 = vmul.f32 0.03125, %v3071_v30 }
0x111f   :  { %v3074_v35 = vpop.xlane.xlu1 %3073 }
0x1120   :  { %6940 = vrsqrt.f32 %v3096_v28  ;;  %v3097_v31 = vadd.f32 1e-06, %v3089_v20  ;;  %v3090_v7 = vmul.f32 0.03125, %v3074_v35 }
0x1122   :  { %6942 = vrsqrt.f32 %v3097_v31  ;;  %v3098_v27 = vadd.f32 1e-06, %v3090_v7 }
0x1124   :  { %6944 = vrsqrt.f32 %v3098_v27 }
0x1126   :  { %v3077_v41 = vpop.xlane.xlu0 %3076 }
0x1127   :  { %v3091_v45 = vmul.f32 0.03125, %v3077_v41 }
0x1128   :  { %v6939_v17 = vpop.eup %6938  ;;  %v3080_v53 = vpop.xlane.xlu1 %3079 }
0x1129   :  { %v3099_v51 = vadd.f32 1e-06, %v3091_v45  ;;  %v3092_v26 = vmul.f32 0.03125, %v3080_v53  ;;  %v3111_v42 = vmul.f32 %v6939_v17, %v8148_v33 }
0x112a   :  { %v6941_v40 = vpop.eup %6940  ;;  %v3083_v39 = vpop.xlane.xlu0 %3082 }
0x112b   :  { %6946 = vrsqrt.f32 %v3099_v51  ;;  %v3100_v61 = vadd.f32 1e-06, %v3092_v26  ;;  %v3093_v46 = vmul.f32 0.03125, %v3083_v39  ;;  %v3112_v62 = vmul.f32 %v6941_v40, %v8151_v32 }
0x112c   :  { %v6943_v25 = vpop.eup %6942  ;;  %v3086_v55 = vpop.xlane.xlu1 %3085  ;;  %v3123_v21 = vmul.f32 %v5876_v29, %v3111_v42 }
0x112d   :  { %v3113_v34 = vmul.f32 %v6943_v25, %v8156_v56  ;;  %6948 = vrsqrt.f32 %v3100_v61  ;;  %v3101_v22 = vadd.f32 1e-06, %v3093_v46  ;;  %v3094_v13 = vmul.f32 0.03125, %v3086_v55 }
0x112e   :  { %v6945_v33 = vpop.eup %6944  ;;  %v3124_v36 = vmul.f32 %v5876_v29, %v3112_v62  ;;  %v3135_v32 = vadd.f32 %v5877_v23, %v3123_v21 }
0x112f   :  { %v3125_v57 = vmul.f32 %v5876_v29, %v3113_v34  ;;  %v3114_v14 = vmul.f32 %v6945_v33, %v8162_v43  ;;  %6950 = vrsqrt.f32 %v3101_v22  ;;  %v3102_v11 = vadd.f32 1e-06, %v3094_v13 }
0x1130   :  { %v3136_v19 = vadd.f32 %v5877_v23, %v3124_v36 }
0x1131   :  { %v3126_v44 = vmul.f32 %v5876_v29, %v3114_v14  ;;  %6952 = vrsqrt.f32 %v3102_v11  ;;  %v3137_v16 = vadd.f32 %v5877_v23, %v3125_v57 }
0x1132   :  { %v3143_v24 = vpack.c.bf16 %v3136_v19, %v3135_v32 }
0x1133   :  { %v3138_v10 = vadd.f32 %v5877_v23, %v3126_v44 }
0x1134   :  { %6391 = vmatprep.mubr.msk.bf16.mxu0 %vm222_vm1, %v3143_v24  ;;  %v9262_v24 = vld [vmem:[#allocation2_spill] sm:$0xff] }
0x1135   :  { %v6947_v56 = vpop.eup %6946  ;;  %v3144_v54 = vpack.c.bf16 %v3138_v10, %v3137_v16 }
0x1136   :  { %v3115_v52 = vmul.f32 %v6947_v56, %v8172_v1 }
0x1137   :  { %v6949_v38 = vpop.eup %6948  ;;  %6392 = vmatmul.mubr.msk.bf16.vlgmr.msra.gmra.mrb[60].mxu0 %vm222_vm1, %v3144_v54 }
0x1138   :  { %v3116_v43 = vmul.f32 %v6949_v38, %v8175_v47  ;;  %v3127_v18 = vmul.f32 %v5876_v29, %v3115_v52  ;;  %v8225_v47 = vld [vmem:[%s9214_s7 + $0xa] ss:$0 sm:$0xff] }
0x1139   :  { %v6951_v30 = vpop.eup %6950 }
0x113a   :  { %v3128_v28 = vmul.f32 %v5876_v29, %v3116_v43  ;;  %v3117_v20 = vmul.f32 %v6951_v30, %v8180_v12  ;;  %v3139_v31 = vadd.f32 %v5877_v23, %v3127_v18 }
0x113b   :  { %v6953_v35 = vpop.eup %6952 }
0x113c   :  { %v3140_v7 = vadd.f32 %v5877_v23, %v3128_v28  ;;  %v3118_v27 = vmul.f32 %v6953_v35, %v8186_v37  ;;  %v3129_v41 = vmul.f32 %v5876_v29, %v3117_v20 }
0x113e   :  { %v3145_v45 = vpack.c.bf16 %v3140_v7, %v3139_v31  ;;  %v3130_v17 = vmul.f32 %v5876_v29, %v3118_v27  ;;  %v3141_v1 = vadd.f32 %v5877_v23, %v3129_v41 }
0x1140   :  { %6395 = vmatprep.mubr.msk.bf16.mxu0 %vm222_vm1, %v3145_v45  ;;  %v3142_v53 = vadd.f32 %v5877_v23, %v3130_v17 }
0x1142   :  { %v3146_v51 = vpack.c.bf16 %v3142_v53, %v3141_v1 }
0x1144   :  { %6396 = vmatmul.mubr.msk.bf16.gmra.mrb[64].mxu0 %vm222_vm1, %v3146_v51 }
0x1145   :  { %6407 = vmatprep.mubr.msk.bf16.mxu0 %vm7115_vm2, %v9221_v5 }
0x120a   :  { %v6393_v12 = vpop.f32.mrb[60].mxu0 }
0x120b   :  { %v3218_v37 = vadd.f32 %v6393_v12, %v8225_v47  ;;  %v3209_v26 = vpop.f32.mrb[61].mxu0 }
0x120c   :  { %v3210_v29 = vadd.f32 %v8225_v47, %v3209_v26  ;;  %v6394_v42 = vpop.f32.mrb[62].mxu0 }
0x120d   :  { %v3221_v40 = vadd.f32 %v6394_v42, %v8225_v47  ;;  %v3212_v39 = vpop.f32.mrb[63].mxu0  ;;  %v8231_v61 = vmul.f32 %v3218_v37, %v7359_v63  ;;  %v8234_v46 = vmul.f32 %v3218_v37, %v7407_v50  ;;  %v8237_v62 = vmul.f32 %v3218_v37, %v7588_v4 }
0x120e   :  { %v3213_v25 = vadd.f32 %v8225_v47, %v3212_v39  ;;  %v8241_v55 = vmul.f32 %v3210_v29, %v7359_v63  ;;  %v8244_v21 = vmul.f32 %v3210_v29, %v7407_v50  ;;  %v8247_v23 = vmul.f32 %v3210_v29, %v7588_v4 }
0x120f   :  { %v3241_v34 = vpack.c.bf16 %v3221_v40, %v3218_v37  ;;  %v8250_v22 = vmul.f32 %v3221_v40, %v7359_v63  ;;  %v8253_v13 = vmul.f32 %v3221_v40, %v7407_v50  ;;  %v8256_v33 = vmul.f32 %v3221_v40, %v7588_v4 }
0x1210   :  { %v3240_v36 = vpack.c.bf16 %v3213_v25, %v3210_v29  ;;  %v8259_v57 = vmul.f32 %v3213_v25, %v7359_v63  ;;  %v8262_v14 = vmul.f32 %v3213_v25, %v7407_v50  ;;  %v8265_v11 = vmul.f32 %v3213_v25, %v7588_v4 }
0x1211   :  { %3319 = vrot.lane.b32.xlu1 %v3241_v34, %s7116_s19  ;;  %v8275_v16 = vmul.f32 %v3210_v29, %v9262_v24  ;;  %v8285_v52 = vmul.f32 %v3213_v25, %v9262_v24  ;;  %v8288_v38 = vmul.f32 %v3218_v37, %v9262_v24  ;;  %v8291_v43 = vmul.f32 %v3221_v40, %v9262_v24 }
0x1212   :  { %3269 = vrot.lane.b32.xlu0 %v3240_v36, %s7116_s19  ;;  %v8294_v18 = vmul.f32 %v3218_v37, %v7696_v59  ;;  %v8297_v30 = vmul.f32 %v3221_v40, %v7696_v59  ;;  %v8302_v20 = vmul.f32 %v3210_v29, %v7696_v59  ;;  %v8305_v35 = vmul.f32 %v3213_v25, %v7696_v59 }
0x1213   :  { %v8308_v31 = vmul.f32 %v3218_v37, %v7749_v2  ;;  %v8315_v41 = vmul.f32 %v3221_v40, %v7749_v2  ;;  %v8318_v45 = vmul.f32 %v3210_v29, %v7749_v2  ;;  %v8323_v1 = vmul.f32 %v3213_v25, %v7749_v2 }
0x1214   :  { %v8326_v53 = vmul.f32 %v3218_v37, %v7810_v58  ;;  %v8329_v51 = vmul.f32 %v3221_v40, %v7810_v58  ;;  %v8334_v42 = vmul.f32 %v3210_v29, %v7810_v58  ;;  %v8337_v39 = vmul.f32 %v3213_v25, %v7810_v58 }
0x1215   :  { %9263 = vst [vmem:[#allocation2_spill] sm:$0xff] %v8318_v45  ;;  %9264 = vst [vmem:[#allocation11_spill] sm:$0xff] %v8323_v1  ;;  %v8340_v34 = vmul.f32 %v3218_v37, %v7869_v0  ;;  %v8350_v26 = vmul.f32 %v3221_v40, %v7869_v0  ;;  %v8356_v44 = vmul.f32 %v3210_v29, %v7869_v0 }
0x1216   :  { %9265 = vst [vmem:[#allocation12_spill] sm:$0xff] %v8326_v53  ;;  %9266 = vst [vmem:[#allocation13_spill] sm:$0xff] %v8329_v51 }
0x1217   :  { %v6397_v12 = vpop.f32.mrb[64].mxu0  ;;  %9267 = vst [vmem:[#allocation14_spill] sm:$0xff] %v8334_v42  ;;  %9268 = vst [vmem:[#allocation15_spill] sm:$0xff] %v8337_v39 }
0x1218   :  { %9269 = vst [vmem:[#allocation16_spill] sm:$0xff] %v8340_v34  ;;  %v8343_v36 = vadd.f32 %v6397_v12, %v8225_v47  ;;  %v3225_v17 = vpop.f32.mrb[65].mxu0  ;;  %9270 = vst [vmem:[#allocation17_spill] sm:$0xff] %v8350_v26  ;;  %v8359_v12 = vmul.f32 %v3213_v25, %v7869_v0 }
0x1219   :  { %v3226_v28 = vadd.f32 %v8225_v47, %v3225_v17  ;;  %v6398_v54 = vpop.f32.mrb[66].mxu0  ;;  %9271 = vst [vmem:[#allocation18_spill] sm:$0xff] %v8356_v44 }
0x121a   :  { %9272 = vst [vmem:[#allocation19_spill] sm:$0xff] %v8359_v12  ;;  %v3237_v27 = vadd.f32 %v6398_v54, %v8225_v47  ;;  %v3228_v19 = vpop.f32.mrb[67].mxu0  ;;  %v8364_v7 = vmul.f32 %v8343_v36, %v7359_v63  ;;  %v8368_v40 = vmul.f32 %v8343_v36, %v7407_v50  ;;  %v8372_v17 = vmul.f32 %v8343_v36, %v7588_v4 }
0x121b   :  { %v3229_v29 = vadd.f32 %v8225_v47, %v3228_v19  ;;  %v8376_v25 = vmul.f32 %v3226_v28, %v7359_v63  ;;  %v8379_v54 = vmul.f32 %v3226_v28, %v7407_v50  ;;  %v8382_v37 = vmul.f32 %v3226_v28, %v7588_v4 }
0x121c   :  { %v3243_v56 = vpack.c.bf16 %v3237_v27, %v8343_v36  ;;  %v8386_v10 = vmul.f32 %v3237_v27, %v7359_v63  ;;  %v8389_v32 = vmul.f32 %v3237_v27, %v7407_v50  ;;  %v8392_v5 = vmul.f32 %v3237_v27, %v7588_v4 }
0x121d   :  { %v3242_v47 = vpack.c.bf16 %v3229_v29, %v3226_v28  ;;  %v8395_v19 = vmul.f32 %v3229_v29, %v7359_v63  ;;  %v8398_v49 = vmul.f32 %v3229_v29, %v7407_v50  ;;  %v8401_v48 = vmul.f32 %v3229_v29, %v7588_v4 }
0x121e   :  { %v8410_v6 = vmul.f32 %v3226_v28, %v9262_v24  ;;  %v8420_v9 = vmul.f32 %v3229_v29, %v9262_v24  ;;  %v8424_v8 = vmul.f32 %v8343_v36, %v9262_v24  ;;  %v8427_v60 = vmul.f32 %v3237_v27, %v9262_v24 }
0x121f   :  { %3369 = vrot.lane.b32.xlu1 %v3242_v47, %s7116_s19  ;;  %v3254_v63 = vpack.c.bf16 %v8395_v19, %v8376_v25  ;;  %v8431_v47 = vmul.f32 %v8343_v36, %v7696_v59  ;;  %v8434_v25 = vmul.f32 %v3237_v27, %v7696_v59  ;;  %v8439_v4 = vmul.f32 %v3226_v28, %v7696_v59 }
0x1220   :  { %v8442_v50 = vmul.f32 %v3229_v29, %v7696_v59  ;;  %v8445_v15 = vmul.f32 %v3226_v28, %v7749_v2  ;;  %v8452_v42 = vmul.f32 %v3229_v29, %v7749_v2  ;;  %v8456_v19 = vmul.f32 %v8343_v36, %v7749_v2 }
0x1221   :  { %v8462_v39 = vmul.f32 %v3237_v27, %v7749_v2  ;;  %v8466_v24 = vmul.f32 %v8343_v36, %v7810_v58  ;;  %v8469_v3 = vmul.f32 %v3237_v27, %v7810_v58  ;;  %v8474_v51 = vmul.f32 %v3226_v28, %v7810_v58 }
0x1222   :  { %9273 = vst [vmem:[#allocation20_spill] sm:$0xff] %v8445_v15  ;;  %9274 = vst [vmem:[#allocation21_spill] sm:$0xff] %v8452_v42  ;;  %v8486_v1 = vmul.f32 %v3226_v28, %v7869_v0  ;;  %v8489_v53 = vmul.f32 %v3229_v29, %v7869_v0  ;;  %v8497_v2 = vmul.f32 %v8343_v36, %v7869_v0 }
0x1223   :  { %9275 = vst [vmem:[#allocation22_spill] sm:$0xff] %v8456_v19  ;;  %3419 = vrot.lane.b32.xlu1 %v3243_v56, %s7116_s19  ;;  %9276 = vst [vmem:[#allocation23_spill] sm:$0xff] %v8462_v39  ;;  %v8477_v56 = vmul.f32 %v3229_v29, %v7810_v58  ;;  %v8500_v59 = vmul.f32 %v3237_v27, %v7869_v0  ;;  %v9285_v0 = vmov 0.0   ;;  %v9286_v27 = vpack.c.bf16 %v8250_v22, %v8231_v61 }
0x1224   :  { %9277 = vst [vmem:[#allocation24_spill] sm:$0xff] %v8466_v24  ;;  %9278 = vst [vmem:[#allocation25_spill] sm:$0xff] %v8469_v3 }
0x1225   :  { %9279 = vst [vmem:[#allocation26_spill] sm:$0xff] %v8474_v51  ;;  %9280 = vst [vmem:[#allocation27_spill] sm:$0xff] %v8477_v56 }
0x1226   :  { %9281 = vst [vmem:[#allocation28_spill] sm:$0xff] %v8486_v1  ;;  %9282 = vst [vmem:[#allocation29_spill] sm:$0xff] %v8489_v53 }
0x1227   :  { %9283 = vst [vmem:[#allocation30_spill] sm:$0xff] %v8497_v2  ;;  %9284 = vst [vmem:[#allocation31_spill] sm:$0xff] %v8500_v59 }
0x1283   :  { %v3320_v45 = vpop.permute.xlu1 %3319 }
0x1284   :  { %v8507_v34 = vsel %vm222_vm1, %v3320_v45, 0  ;;  %v3270_v15 = vpop.permute.xlu0 %3269  ;;  %v9287_v45 = vpack.c.bf16 %v8259_v57, %v8241_v55  ;;  %v9288_v55 = vpack.c.bf16 %v8386_v10, %v8364_v7  ;;  %v9289_v57 = vpack.c.bf16 %v8262_v14, %v8244_v21 }
0x1285   :  { %v8510_v58 = vsel %vm222_vm1, %v3270_v15, 0  ;;  %6406 = vmatpush3.bf16.xpose.msra.mxu0 %v8507_v34  ;;  %v9290_v10 = vpack.c.bf16 %v8253_v13, %v8234_v46  ;;  %v9291_v21 = vpack.c.bf16 %v8398_v49, %v8379_v54  ;;  %v9292_v46 = vpack.c.bf16 %v8389_v32, %v8368_v40 }
0x1286   :  { %6400 = vmatpush3.bf16.xpose.msra.mxu1 %v8510_v58  ;;  %6417 = vmatprep.subr.bf16.mxu0 %v9285_v0 }
0x1287   :  { %6411 = vmatprep.subr.bf16.mxu1 %v9285_v0 }
0x128c   :  { %6408 = vmatmul.mubr.msk.bf16.vlgmr.msra.gmra.mrb[68].mxu0 %vm222_vm1, %v9286_v27 }
0x128d   :  { %6402 = vmatmul.mubr.msk.bf16.vlgmr.msra.gmra.mrb[60].mxu1 %vm222_vm1, %v9287_v45  ;;  %6419 = vmatprep.mubr.msk.bf16.mxu0 %vm7115_vm2, %v9285_v0 }
0x128e   :  { %6413 = vmatprep.mubr.msk.bf16.mxu1 %vm7115_vm2, %v9285_v0 }
0x1291   :  { %v3370_v15 = vpop.permute.xlu1 %3369 }
0x1292   :  { %v8529_v36 = vsel %vm222_vm1, %v3370_v15, 0 }
0x1293   :  { %6412 = vmatpush3.bf16.xpose.msra.mxu1 %v8529_v36 }
0x1294   :  { %6423 = vmatprep.subr.bf16.mxu1 %v9285_v0 }
0x1295   :  { %v3420_v61 = vpop.permute.xlu1 %3419 }
0x1296   :  { %v8534_v22 = vsel %vm222_vm1, %v3420_v61, 0 }
0x1297   :  { %6418 = vmatpush3.bf16.xpose.msra.mxu0 %v8534_v22 }
0x1298   :  { %6429 = vmatprep.subr.bf16.mxu0 %v9285_v0 }
0x129a   :  { %6414 = vmatmul.mubr.msk.bf16.vlgmr.msra.gmra.mrb[64].mxu1 %vm222_vm1, %v3254_v63 }
0x129b   :  { %6424 = vmatpush3.bf16.xpose.msra.mxu1 %v8510_v58  ;;  %6425 = vmatprep.mubr.msk.bf16.mxu1 %vm7115_vm2, %v9285_v0 }
0x129c   :  { %6435 = vmatprep.subr.bf16.mxu1 %v9285_v0 }
0x129e   :  { %6420 = vmatmul.mubr.msk.bf16.vlgmr.msra.gmra.mrb[72].mxu0 %vm222_vm1, %v9288_v55 }
0x129f   :  { %6430 = vmatpush3.bf16.xpose.msra.mxu0 %v8507_v34  ;;  %6431 = vmatprep.mubr.msk.bf16.mxu0 %vm7115_vm2, %v9285_v0 }
0x12a0   :  { %6441 = vmatprep.subr.bf16.mxu0 %v9285_v0 }
0x12a2   :  { %6426 = vmatmul.mubr.msk.bf16.vlgmr.msra.gmra.mrb[68].mxu1 %vm222_vm1, %v9289_v57 }
0x12a3   :  { %6436 = vmatpush3.bf16.xpose.msra.mxu1 %v8529_v36  ;;  %6437 = vmatprep.mubr.msk.bf16.mxu1 %vm7115_vm2, %v9285_v0 }
0x12a4   :  { %6447 = vmatprep.subr.bf16.mxu1 %v9285_v0 }
0x12a6   :  { %6432 = vmatmul.mubr.msk.bf16.vlgmr.msra.gmra.mrb[76].mxu0 %vm222_vm1, %v9290_v10 }
0x12a7   :  { %6442 = vmatpush3.bf16.xpose.msra.mxu0 %v8534_v22  ;;  %6443 = vmatprep.mubr.msk.bf16.mxu0 %vm7115_vm2, %v9285_v0 }
0x12a8   :  { %6453 = vmatprep.subr.bf16.mxu0 %v9285_v0 }
0x12aa   :  { %6438 = vmatmul.mubr.msk.bf16.vlgmr.msra.gmra.mrb[72].mxu1 %vm222_vm1, %v9291_v21 }
0x12ab   :  { %6449 = vmatprep.mubr.msk.bf16.mxu1 %vm7115_vm2, %v9285_v0 }
0x12ae   :  { %6444 = vmatmul.mubr.msk.bf16.vlgmr.msra.gmra.mrb[80].mxu0 %vm222_vm1, %v9292_v46 }
0x12af   :  { %6455 = vmatprep.mubr.msk.bf16.mxu0 %vm7115_vm2, %v9285_v0 }
0x135f   :  { %v8579_v13 = vpop.f32.mrb[68].mxu0 }
0x1360   :  { %v8581_v14 = vpop.f32.mrb[60].mxu1  ;;  %v6409_v7 = vpop.f32.mrb[69].mxu0 }
0x1361   :  { %v6403_v63 = vpop.f32.mrb[61].mxu1  ;;  %v8583_v49 = vpop.f32.mrb[70].mxu0 }
0x1362   :  { %v8585_v54 = vpop.f32.mrb[62].mxu1  ;;  %v6410_v27 = vpop.f32.mrb[71].mxu0 }
0x1363   :  { %v6404_v45 = vpop.f32.mrb[63].mxu1 }
0x136d   :  { %v8587_v15 = vpop.f32.mrb[64].mxu1 }
0x136e   :  { %v6415_v32 = vpop.f32.mrb[65].mxu1 }
0x136f   :  { %v8589_v40 = vpop.f32.mrb[66].mxu1 }
0x1370   :  { %v6416_v61 = vpop.f32.mrb[67].mxu1 }
0x1371   :  { %v8591_v55 = vpop.f32.mrb[72].mxu0 }
0x1372   :  { %v6421_v57 = vpop.f32.mrb[73].mxu0 }
0x1373   :  { %v8593_v10 = vpop.f32.mrb[74].mxu0 }
0x1374   :  { %v6422_v21 = vpop.f32.mrb[75].mxu0  ;;  %v3489_v12 = vsel %vm681_vm7, %v8593_v10, -inf }
0x1375   :  { %v8595_v46 = vpop.f32.mrb[68].mxu1 }
0x1376   :  { %v6427_v7 = vpop.f32.mrb[69].mxu1  ;;  %v3760_v2 = vsel %vm681_vm7, %v8595_v46, -inf }
0x1377   :  { %v8597_v63 = vpop.f32.mrb[70].mxu1  ;;  %v3471_v7 = vsel %vm681_vm7, %v8585_v54, -inf }
0x1378   :  { %v6428_v29 = vpop.f32.mrb[71].mxu1  ;;  %v3763_v27 = vsel %vm681_vm7, %v8597_v63, -inf }
0x1379   :  { %v8601_v45 = vpop.f32.mrb[76].mxu0  ;;  %3764 = vmax.xlane.f32.xlu1 %v3763_v27 }
0x137a   :  { %v6433_v32 = vpop.f32.mrb[77].mxu0  ;;  %v3766_v61 = vsel %vm681_vm7, %v8601_v45, -inf }
0x137b   :  { %3767 = vmax.xlane.f32.xlu0 %v3766_v61  ;;  %v8605_v57 = vpop.f32.mrb[78].mxu0  ;;  %v3477_v61 = vsel %vm681_vm7, %v8583_v49, -inf }
0x137c   :  { %v6434_v21 = vpop.f32.mrb[79].mxu0 }
0x137d   :  { %3472 = vmax.xlane.f32.xlu1 %v3471_v7  ;;  %v8609_v28 = vpop.f32.mrb[72].mxu1  ;;  %v3769_v7 = vsel %vm681_vm7, %v8605_v57, -inf }
0x137e   :  { %v6439_v29 = vpop.f32.mrb[73].mxu1 }
0x137f   :  { %3761 = vmax.xlane.f32.xlu0 %v3760_v2  ;;  %v8613_v27 = vpop.f32.mrb[74].mxu1  ;;  %v3483_v2 = vsel %vm681_vm7, %v8589_v40, -inf }
0x1380   :  { %v6440_v32 = vpop.f32.mrb[75].mxu1 }
0x1381   :  { %v8617_v59 = vpop.f32.mrb[80].mxu0  ;;  %3478 = vmax.xlane.f32.xlu1 %v3477_v61  ;;  %v3772_v32 = vsel %vm681_vm7, %v8609_v28, -inf }
0x1382   :  { %v6445_v21 = vpop.f32.mrb[81].mxu0  ;;  %v3778_v61 = vsel %vm681_vm7, %v8617_v59, -inf }
0x1383   :  { %v8621_v44 = vpop.f32.mrb[82].mxu0  ;;  %3770 = vmax.xlane.f32.xlu0 %v3769_v7  ;;  %v3468_v7 = vsel %vm681_vm7, %v8581_v14, -inf }
0x1384   :  { %v6446_v29 = vpop.f32.mrb[83].mxu0  ;;  %v3781_v21 = vsel %vm681_vm7, %v8621_v44, -inf }
0x1385   :  { %3484 = vmax.xlane.f32.xlu1 %v3483_v2  ;;  %v3775_v29 = vsel %vm681_vm7, %v8613_v27, -inf  ;;  %v3474_v2 = vsel %vm681_vm7, %v8579_v13, -inf }
0x1387   :  { %3773 = vmax.xlane.f32.xlu0 %v3772_v32  ;;  %v3486_v32 = vsel %vm681_vm7, %v8591_v55, -inf }
0x1389   :  { %3490 = vmax.xlane.f32.xlu1 %v3489_v12  ;;  %v3480_v12 = vsel %vm681_vm7, %v8587_v15, -inf }
0x138b   :  { %3779 = vmax.xlane.f32.xlu0 %v3778_v61 }
0x138d   :  { %3782 = vmax.xlane.f32.xlu1 %v3781_v21 }
0x138f   :  { %3469 = vmax.xlane.f32.xlu0 %v3468_v7 }
0x1391   :  { %3776 = vmax.xlane.f32.xlu1 %v3775_v29 }
0x1393   :  { %3475 = vmax.xlane.f32.xlu0 %v3474_v2 }
0x1397   :  { %3481 = vmax.xlane.f32.xlu0 %v3480_v12 }
0x139b   :  { %3487 = vmax.xlane.f32.xlu0 %v3486_v32 }
0x1406   :  { %v3765_v61 = vpop.xlane.xlu1 %3764 }
0x1408   :  { %v3768_v21 = vpop.xlane.xlu0 %3767 }
0x140a   :  { %v3473_v1 = vpop.xlane.xlu1 %3472 }
0x140b   :  { %v3493_v53 = vsub.f32 %v8585_v54, %v3473_v1 }
0x140c   :  { %v8643_v7 = vpop.xlane.xlu0 %3761 }
0x140d   :  { %v3502_v2 = vmul.f32 1.442695, %v3493_v53 }
0x140e   :  { %v3479_v29 = vpop.xlane.xlu1 %3478 }
0x140f   :  { %v3495_v26 = vsub.f32 %v8583_v49, %v3479_v29  ;;  %v3785_v49 = vsub.f32 %v8597_v63, %v3765_v61 }
0x1410   :  { %v3771_v51 = vpop.xlane.xlu0 %3770 }
0x1411   :  { %v3506_v56 = vmul.f32 1.442695, %v3495_v26  ;;  %v3787_v42 = vsub.f32 %v8605_v57, %v3771_v51 }
0x1412   :  { %v3485_v24 = vpop.xlane.xlu1 %3484 }
0x1413   :  { %6954 = vpow2.f32 %v3506_v56  ;;  %v3497_v32 = vsub.f32 %v8589_v40, %v3485_v24  ;;  %v3798_v56 = vmul.f32 1.442695, %v3787_v42  ;;  %v3794_v40 = vmul.f32 1.442695, %v3785_v49 }
0x1414   :  { %v8647_v12 = vpop.xlane.xlu0 %3773  ;;  %6956 = vpow2.f32 %v3502_v2 }
0x1415   :  { %v3510_v1 = vmul.f32 1.442695, %v3497_v32 }
0x1416   :  { %v3491_v3 = vpop.xlane.xlu1 %3490 }
0x1417   :  { %v3499_v19 = vsub.f32 %v8593_v10, %v3491_v3 }
0x1418   :  { %v3780_v39 = vpop.xlane.xlu0 %3779 }
0x1419   :  { %v3514_v54 = vmul.f32 1.442695, %v3499_v19 }
0x141b   :  { %6958 = vpow2.f32 %v3514_v54 }
0x141c   :  { %v3470_v53 = vpop.xlane.xlu0 %3469  ;;  %6960 = vpow2.f32 %v3510_v1 }
0x141d   :  { %v8653_v26 = vpop.eup %6954  ;;  %v3492_v3 = vsub.f32 %v8581_v14, %v3470_v53  ;;  %6962 = vpow2.f32 %v3798_v56  ;;  %v3786_v53 = vsub.f32 %v8601_v45, %v3768_v21 }
0x141e   :  { %v3525_v29 = vsel %vm681_vm7, %v8653_v26, 0.0  ;;  %v8657_v24 = vpop.eup %6956  ;;  %6964 = vpow2.f32 %v3794_v40 }
0x141f   :  { %3526 = vadd.xlane.f32.xlu1 %v3525_v29  ;;  %v3519_v10 = vsel %vm681_vm7, %v8657_v24, 0.0  ;;  %v3500_v63 = vmul.f32 1.442695, %v3492_v3 }
0x1420   :  { %v3476_v51 = vpop.xlane.xlu0 %3475 }
0x1421   :  { %v3494_v19 = vsub.f32 %v8579_v13, %v3476_v51  ;;  %v3796_v51 = vmul.f32 1.442695, %v3786_v53 }
0x1423   :  { %v3504_v57 = vmul.f32 1.442695, %v3494_v19  ;;  %3520 = vadd.xlane.f32.xlu1 %v3519_v10 }
0x1424   :  { %v3482_v42 = vpop.xlane.xlu0 %3481 }
0x1425   :  { %v8663_v61 = vpop.eup %6958  ;;  %6966 = vpow2.f32 %v3504_v57  ;;  %v3496_v32 = vsub.f32 %v8587_v15, %v3482_v42 }
0x1426   :  { %v3537_v14 = vsel %vm681_vm7, %v8663_v61, 0.0  ;;  %v8667_v2 = vpop.eup %6960  ;;  %6968 = vpow2.f32 %v3500_v63  ;;  %v3790_v63 = vsub.f32 %v8617_v59, %v3780_v39 }
0x1427   :  { %3538 = vadd.xlane.f32.xlu1 %v3537_v14  ;;  %v3531_v54 = vsel %vm681_vm7, %v8667_v2, 0.0  ;;  %v8673_v49 = vpop.eup %6962  ;;  %v3508_v56 = vmul.f32 1.442695, %v3496_v32 }
0x1428   :  { %v3488_v13 = vpop.xlane.xlu0 %3487  ;;  %v8676_v3 = vpop.eup %6964  ;;  %v3817_v15 = vsel %vm681_vm7, %v8673_v49, 0.0  ;;  %v3804_v42 = vmul.f32 1.442695, %v3790_v63 }
0x1429   :  { %v3498_v1 = vsub.f32 %v8591_v55, %v3488_v13  ;;  %v3784_v55 = vsub.f32 %v8595_v46, %v8643_v7  ;;  %v3811_v19 = vsel %vm681_vm7, %v8676_v3, 0.0  ;;  %v3788_v7 = vsub.f32 %v8609_v28, %v8647_v12 }
0x142a   :  { %v9293_v12 = vpack.c.bf16 %v8256_v33, %v8237_v62  ;;  %v9295_v62 = vpack.c.bf16 %v8392_v5, %v8372_v17  ;;  %v9297_v5 = vpack.c.bf16 %v8285_v52, %v8275_v16 }
0x142b   :  { %v3512_v29 = vmul.f32 1.442695, %v3498_v1  ;;  %3532 = vadd.xlane.f32.xlu1 %v3531_v54  ;;  %v3792_v10 = vmul.f32 1.442695, %v3784_v55  ;;  %v3800_v13 = vmul.f32 1.442695, %v3788_v7 }
0x142d   :  { %6970 = vpow2.f32 %v3512_v29 }
0x142e   :  { %6972 = vpow2.f32 %v3508_v56  ;;  %v9294_v56 = vpack.c.bf16 %v8401_v48, %v8382_v37 }
0x142f   :  { %v8680_v40 = vpop.eup %6966  ;;  %3818 = vadd.xlane.f32.xlu1 %v3817_v15  ;;  %6974 = vpow2.f32 %v3796_v51  ;;  %v3783_v51 = vpop.xlane.xlu1 %3782 }
0x1430   :  { %v3522_v45 = vsel %vm681_vm7, %v8680_v40, 0.0  ;;  %v8686_v21 = vpop.eup %6968  ;;  %6976 = vpow2.f32 %v3792_v10  ;;  %v3791_v55 = vsub.f32 %v8621_v44, %v3783_v51  ;;  %v9296_v10 = vpack.c.bf16 %v8265_v11, %v8247_v23 }
0x1431   :  { %3523 = vadd.xlane.f32.xlu0 %v3522_v45  ;;  %v3516_v57 = vsel %vm681_vm7, %v8686_v21, 0.0  ;;  %6978 = vpow2.f32 %v3804_v42  ;;  %v9298_v44 = vpack.c.bf16 %v8420_v9, %v8410_v6  ;;  %v9299_v11 = vpack.c.bf16 %v8291_v43, %v8288_v38 }
0x1432   :  { %6980 = vpow2.f32 %v3800_v13  ;;  %v3806_v37 = vmul.f32 1.442695, %v3791_v55  ;;  %v9300_v6 = vpack.c.bf16 %v8427_v60, %v8424_v8 }
0x1433   :  { %3812 = vadd.xlane.f32.xlu1 %v3811_v19  ;;  %v3777_v48 = vpop.xlane.xlu1 %3776 }
0x1434   :  { %v3789_v45 = vsub.f32 %v8613_v27, %v3777_v48  ;;  %6982 = vpow2.f32 %v3806_v37 }
0x1435   :  { %3517 = vadd.xlane.f32.xlu0 %v3516_v57 }
0x1436   :  { %v3802_v19 = vmul.f32 1.442695, %v3789_v45 }
0x1437   :  { %v8693_v46 = vpop.eup %6970 }
0x1438   :  { %v3534_v14 = vsel %vm681_vm7, %v8693_v46, 0.0  ;;  %v8699_v32 = vpop.eup %6972  ;;  %6984 = vpow2.f32 %v3802_v19 }
0x1439   :  { %3535 = vadd.xlane.f32.xlu0 %v3534_v14  ;;  %v3528_v39 = vsel %vm681_vm7, %v8699_v32, 0.0  ;;  %v8703_v59 = vpop.eup %6974 }
0x143a   :  { %v3814_v1 = vsel %vm681_vm7, %v8703_v59, 0.0  ;;  %v8707_v28 = vpop.eup %6976 }
0x143b   :  { %v3808_v54 = vsel %vm681_vm7, %v8707_v28, 0.0  ;;  %v8715_v53 = vpop.eup %6978 }
0x143c   :  { %v3826_v29 = vsel %vm681_vm7, %v8715_v53, 0.0  ;;  %v8723_v15 = vpop.eup %6980 }
0x143d   :  { %3529 = vadd.xlane.f32.xlu0 %v3528_v39  ;;  %v3820_v33 = vsel %vm681_vm7, %v8723_v15, 0.0 }
0x143e   :  { %v8745_v17 = vpop.eup %6982 }
0x143f   :  { %v3829_v27 = vsel %vm681_vm7, %v8745_v17, 0.0 }
0x1441   :  { %3815 = vadd.xlane.f32.xlu0 %v3814_v1 }
0x1442   :  { %v8749_v63 = vpop.eup %6984 }
0x1443   :  { %v3823_v23 = vsel %vm681_vm7, %v8749_v63, 0.0 }
0x1444   :  { %3901 = vrot.lane.b32.xlu1 %v9293_v12, %s7117_s20 }
0x1445   :  { %3809 = vadd.xlane.f32.xlu0 %v3808_v54 }
0x1448   :  { %3949 = vrot.lane.b32.xlu1 %v9294_v56, %s7117_s20 }
0x1449   :  { %3827 = vadd.xlane.f32.xlu0 %v3826_v29 }
0x144c   :  { %3997 = vrot.lane.b32.xlu1 %v9295_v62, %s7117_s20 }
0x144d   :  { %3821 = vadd.xlane.f32.xlu0 %v3820_v33 }
0x1463   :  { %3853 = vrot.lane.b32.xlu0 %v9296_v10, %s7117_s20 }
0x1467   :  { %4045 = vrot.lane.b32.xlu0 %v9297_v5, %s7117_s20 }
0x146b   :  { %4141 = vrot.lane.b32.xlu0 %v9298_v44, %s7117_s20 }
0x1470   :  { %3830 = vadd.xlane.f32.xlu1 %v3829_v27 }
0x1474   :  { %3824 = vadd.xlane.f32.xlu1 %v3823_v23 }
0x1485   :  { %4093 = vrot.lane.b32.xlu1 %v9299_v11, %s7117_s20 }
0x1489   :  { %4189 = vrot.lane.b32.xlu1 %v9300_v6, %s7117_s20 }
0x14ac   :  { %v3527_v9 = vpop.xlane.xlu1 %3526 }
0x14ad   :  { %6986 = vrcp.f32 %v3527_v9 }
0x14b0   :  { %v3521_v16 = vpop.xlane.xlu1 %3520 }
0x14b4   :  { %v3539_v52 = vpop.xlane.xlu1 %3538 }
0x14b7   :  { %v6987_v8 = vpop.eup %6986 }
0x14b8   :  { %v3533_v57 = vpop.xlane.xlu1 %3532  ;;  %v8763_v43 = vmul.f32 %v6987_v8, %v8653_v26 }
0x14bc   :  { %v3819_v7 = vpop.xlane.xlu1 %3818 }
0x14be   :  { %v3524_v42 = vpop.xlane.xlu0 %3523 }
0x14bf   :  { %6988 = vrcp.f32 %v3524_v42 }
0x14c0   :  { %v3813_v14 = vpop.xlane.xlu1 %3812  ;;  %6990 = vrcp.f32 %v3521_v16 }
0x14c2   :  { %v3518_v13 = vpop.xlane.xlu0 %3517 }
0x14c3   :  { %6992 = vrcp.f32 %v3518_v13 }
0x14c4   :  { %v3902_v39 = vpop.permute.xlu1 %3901  ;;  %6994 = vrcp.f32 %v3539_v52 }
0x14c5   :  { %6454 = vmatpush3.bf16.msra.mxu0 %v3902_v39 }
0x14c6   :  { %v3536_v38 = vpop.xlane.xlu0 %3535  ;;  %6465 = vmatprep.subr.bf16.mxu0 %v9285_v0 }
0x14c7   :  { %6996 = vrcp.f32 %v3536_v38 }
0x14c8   :  { %6998 = vrcp.f32 %v3533_v57 }
0x14c9   :  { %v6989_v60 = vpop.eup %6988 }
0x14ca   :  { %v8766_v1 = vmul.f32 %v6989_v60, %v8680_v40  ;;  %v3530_v12 = vpop.xlane.xlu0 %3529  ;;  %v6991_v54 = vpop.eup %6990 }
0x14cb   :  { %7000 = vrcp.f32 %v3530_v12  ;;  %v8771_v62 = vmul.f32 %v6991_v54, %v8657_v24 }
0x14cc   :  { %v3557_v56 = vpack.c.bf16 %v8763_v43, %v8766_v1  ;;  %7002 = vrcp.f32 %v3819_v7  ;;  %v9302_v43 = vpack.c.bf16 %v8305_v35, %v8302_v20 }
0x14cd   :  { %v6993_v29 = vpop.eup %6992 }
0x14ce   :  { %v8774_v33 = vmul.f32 %v6993_v29, %v8686_v21  ;;  %v3816_v51 = vpop.xlane.xlu0 %3815  ;;  %v6995_v26 = vpop.eup %6994 }
0x14cf   :  { %7004 = vrcp.f32 %v3816_v51  ;;  %v8779_v48 = vmul.f32 %v6995_v26, %v8663_v61  ;;  %v3950_v61 = vpop.permute.xlu1 %3949 }
0x14d0   :  { %v3556_v40 = vpack.c.bf16 %v8771_v62, %v8774_v33  ;;  %7006 = vrcp.f32 %v3813_v14 }
0x14d1   :  { %v6997_v55 = vpop.eup %6996 }
0x14d2   :  { %v8782_v37 = vmul.f32 %v6997_v55, %v8693_v46  ;;  %v3810_v45 = vpop.xlane.xlu0 %3809  ;;  %v6999_v24 = vpop.eup %6998 }
0x14d3   :  { %7008 = vrcp.f32 %v3810_v45  ;;  %v8787_v10 = vmul.f32 %v6999_v24, %v8667_v2  ;;  %v3998_v7 = vpop.permute.xlu1 %3997 }
0x14d4   :  { %v3559_v21 = vpack.c.bf16 %v8779_v48, %v8782_v37 }
0x14d5   :  { %v7001_v19 = vpop.eup %7000 }
0x14d6   :  { %v8790_v5 = vmul.f32 %v7001_v19, %v8699_v32  ;;  %v3828_v44 = vpop.xlane.xlu0 %3827  ;;  %v7003_v27 = vpop.eup %7002 }
0x14d7   :  { %v3843_v11 = vmul.f32 %v7003_v27, %v8673_v49  ;;  %7010 = vrcp.f32 %v3828_v44 }
0x14d8   :  { %v3558_v46 = vpack.c.bf16 %v8787_v10, %v8790_v5 }
0x14d9   :  { %v7005_v23 = vpop.eup %7004 }
0x14da   :  { %v3842_v6 = vmul.f32 %v7005_v23, %v8703_v59  ;;  %v3822_v9 = vpop.xlane.xlu0 %3821  ;;  %v7007_v16 = vpop.eup %7006 }
0x14db   :  { %v3841_v2 = vmul.f32 %v7007_v16, %v8676_v3 }
0x14dc   :  { %v3849_v52 = vpack.c.bf16 %v3843_v11, %v3842_v6 }
0x14dd   :  { %v7009_v57 = vpop.eup %7008 }
0x14de   :  { %v3840_v32 = vmul.f32 %v7009_v57, %v8707_v28  ;;  %6456 = vmatmul.mubr.msk.bf16.vlgmr.msra.gmra.mrb[84].mxu0 %vm681_vm7, %v3849_v52  ;;  %v3854_v42 = vpop.permute.xlu0 %3853 }
0x14df   :  { %6466 = vmatpush3.bf16.msra.mxu0 %v3998_v7  ;;  %6448 = vmatpush3.bf16.msra.mxu1 %v3854_v42 }
0x14e0   :  { %v3848_v14 = vpack.c.bf16 %v3841_v2, %v3840_v32  ;;  %6459 = vmatprep.subr.bf16.mxu1 %v9285_v0  ;;  %6467 = vmatprep.mubr.msk.bf16.mxu0 %vm7115_vm2, %v9285_v0 }
0x14e1   :  { %6477 = vmatprep.subr.bf16.mxu0 %v9285_v0  ;;  %v7011_v59 = vpop.eup %7010 }
0x14e2   :  { %6450 = vmatmul.mubr.msk.bf16.vlgmr.msra.gmra.mrb[76].mxu1 %vm681_vm7, %v3848_v14  ;;  %v3846_v13 = vmul.f32 %v7011_v59, %v8715_v53  ;;  %v4046_v53 = vpop.permute.xlu0 %4045 }
0x14e3   :  { %6460 = vmatpush3.bf16.msra.mxu1 %v3950_v61  ;;  %6461 = vmatprep.mubr.msk.bf16.mxu1 %vm7115_vm2, %v9285_v0 }
0x14e4   :  { %6471 = vmatprep.subr.bf16.mxu1 %v9285_v0 }
0x14fd   :  { %v3831_v49 = vpop.xlane.xlu1 %3830 }
0x14fe   :  { %7012 = vrcp.f32 %v3831_v49 }
0x14ff   :  { %7014 = vrcp.f32 %v3822_v9 }
0x1501   :  { %v3825_v3 = vpop.xlane.xlu1 %3824 }
0x1502   :  { %7016 = vrcp.f32 %v3825_v3 }
0x1505   :  { %v4094_v29 = vpop.permute.xlu1 %4093 }
0x1508   :  { %v7013_v28 = vpop.eup %7012 }
0x1509   :  { %v3847_v39 = vmul.f32 %v7013_v28, %v8745_v17  ;;  %v7015_v38 = vpop.eup %7014  ;;  %v4142_v17 = vpop.permute.xlu0 %4141 }
0x150a   :  { %v3844_v12 = vmul.f32 %v7015_v38, %v8723_v15  ;;  %v4190_v15 = vpop.permute.xlu1 %4189 }
0x150b   :  { %v3851_v8 = vpack.c.bf16 %v3847_v39, %v3846_v13 }
0x150c   :  { %v7017_v60 = vpop.eup %7016 }
0x150d   :  { %v3845_v54 = vmul.f32 %v7017_v60, %v8749_v63  ;;  %6468 = vmatmul.mubr.msk.bf16.vlgmr.msra.gmra.mrb[88].mxu0 %vm681_vm7, %v3851_v8  ;;  %v9301_v63 = vpack.c.bf16 %v8297_v30, %v8294_v18  ;;  %v9303_v18 = vpack.c.bf16 %v8434_v25, %v8431_v47  ;;  %v9304_v30 = vpack.c.bf16 %v8442_v50, %v8439_v4 }
0x150e   :  { %6478 = vmatpush3.bf16.msra.mxu0 %v4094_v29  ;;  %6479 = vmatprep.mubr.msk.bf16.mxu0 %vm7115_vm2, %v9285_v0 }
0x150f   :  { %v3850_v51 = vpack.c.bf16 %v3845_v54, %v3844_v12  ;;  %6489 = vmatprep.subr.bf16.mxu0 %v9285_v0 }
0x1511   :  { %6462 = vmatmul.mubr.msk.bf16.vlgmr.msra.gmra.mrb[80].mxu1 %vm681_vm7, %v3850_v51 }
0x1512   :  { %6472 = vmatpush3.bf16.msra.mxu1 %v4046_v53  ;;  %6473 = vmatprep.mubr.msk.bf16.mxu1 %vm7115_vm2, %v9285_v0 }
0x1513   :  { %6483 = vmatprep.subr.bf16.mxu1 %v9285_v0 }
0x1515   :  { %6480 = vmatmul.mubr.msk.bf16.vlgmr.msra.gmra.mrb[84].mxu0 %vm681_vm7, %v3557_v56 }
0x1516   :  { %6490 = vmatpush3.bf16.msra.mxu0 %v4190_v15  ;;  %6491 = vmatprep.mubr.msk.bf16.mxu0 %vm7115_vm2, %v9285_v0 }
0x1517   :  { %6501 = vmatprep.subr.bf16.mxu0 %v9285_v0 }
0x1519   :  { %6474 = vmatmul.mubr.msk.bf16.vlgmr.msra.gmra.mrb[76].mxu1 %vm681_vm7, %v3556_v40 }
0x151a   :  { %6484 = vmatpush3.bf16.msra.mxu1 %v4142_v17  ;;  %6485 = vmatprep.mubr.msk.bf16.mxu1 %vm7115_vm2, %v9285_v0 }
0x151b   :  { %6495 = vmatprep.subr.bf16.mxu1 %v9285_v0 }
0x151d   :  { %6492 = vmatmul.mubr.msk.bf16.vlgmr.msra.gmra.mrb[88].mxu0 %vm681_vm7, %v3559_v21 }
0x151e   :  { %6503 = vmatprep.mubr.msk.bf16.mxu0 %vm7115_vm2, %v9285_v0 }
0x151f   :  { %6502 = vmatpush3.bf16.xpose.msra.mxu0 %v8507_v34 }
0x1520   :  { %6513 = vmatprep.subr.bf16.mxu0 %v9285_v0 }
0x1521   :  { %6486 = vmatmul.mubr.msk.bf16.vlgmr.msra.gmra.mrb[80].mxu1 %vm681_vm7, %v3558_v46 }
0x1522   :  { %6497 = vmatprep.mubr.msk.bf16.mxu1 %vm7115_vm2, %v9285_v0 }
0x1523   :  { %6496 = vmatpush3.bf16.xpose.msra.mxu1 %v8510_v58 }
0x1524   :  { %6507 = vmatprep.subr.bf16.mxu1 %v9285_v0 }
0x1526   :  { %6504 = vmatmul.mubr.msk.bf16.vlgmr.msra.gmra.mrb[92].mxu0 %vm222_vm1, %v9301_v63 }
0x1527   :  { %6514 = vmatpush3.bf16.xpose.msra.mxu0 %v8534_v22  ;;  %6515 = vmatprep.mubr.msk.bf16.mxu0 %vm7115_vm2, %v9285_v0 }
0x1528   :  { %6525 = vmatprep.subr.bf16.mxu0 %v9285_v0 }
0x152a   :  { %6498 = vmatmul.mubr.msk.bf16.vlgmr.msra.gmra.mrb[84].mxu1 %vm222_vm1, %v9302_v43  ;;  %v9305_v43 = vpack.c.bf16 %v8315_v41, %v8308_v31 }
0x152b   :  { %6508 = vmatpush3.bf16.xpose.msra.mxu1 %v8529_v36  ;;  %6509 = vmatprep.mubr.msk.bf16.mxu1 %vm7115_vm2, %v9285_v0 }
0x152c   :  { %6519 = vmatprep.subr.bf16.mxu1 %v9285_v0 }
0x152e   :  { %6516 = vmatmul.mubr.msk.bf16.vlgmr.msra.gmra.mrb[96].mxu0 %vm222_vm1, %v9303_v18  ;;  %v9306_v18 = vld [vmem:[#allocation21_spill] sm:$0xff] }
0x152f   :  { %6527 = vmatprep.mubr.msk.bf16.mxu0 %vm7115_vm2, %v9285_v0 }
0x1532   :  { %6510 = vmatmul.mubr.msk.bf16.vlgmr.msra.gmra.mrb[88].mxu1 %vm222_vm1, %v9304_v30  ;;  %v9307_v30 = vld [vmem:[#allocation20_spill] sm:$0xff] }
0x1533   :  { %6521 = vmatprep.mubr.msk.bf16.mxu1 %vm7115_vm2, %v9285_v0 }
0x15f9   :  { %v4341_v20 = vpop.f32.mrb[92].mxu0 }
0x15fa   :  { %v6505_v35 = vpop.f32.mrb[93].mxu0  ;;  %v4442_v4 = vsel %vm681_vm7, %v4341_v20, -inf }
0x15fb   :  { %v4344_v1 = vpop.f32.mrb[94].mxu0 }
0x15fc   :  { %v6506_v56 = vpop.f32.mrb[95].mxu0  ;;  %v4445_v21 = vsel %vm681_vm7, %v4344_v1, -inf }
0x15fd   :  { %v4297_v62 = vpop.f32.mrb[84].mxu1  ;;  %v9310_v56 = vld [vmem:[#allocation2_spill] sm:$0xff] }
0x15fe   :  { %v6499_v33 = vpop.f32.mrb[85].mxu1  ;;  %v4436_v47 = vsel %vm681_vm7, %v4297_v62, -inf }
0x15ff   :  { %4437 = vmax.xlane.f32.xlu0 %v4436_v47  ;;  %v4300_v25 = vpop.f32.mrb[86].mxu1 }
0x1600   :  { %v6500_v26 = vpop.f32.mrb[87].mxu1  ;;  %v4439_v40 = vsel %vm681_vm7, %v4300_v25, -inf }
0x1601   :  { %v4429_v55 = vpop.f32.mrb[96].mxu0  ;;  %4440 = vmax.xlane.f32.xlu1 %v4439_v40 }
0x1602   :  { %v6517_v50 = vpop.f32.mrb[97].mxu0  ;;  %v4454_v61 = vsel %vm681_vm7, %v4429_v55, -inf }
0x1603   :  { %v8880_v48 = vpop.f32.mrb[98].mxu0  ;;  %4443 = vmax.xlane.f32.xlu0 %v4442_v4  ;;  %v9312_v4 = vld [vmem:[#allocation23_spill] sm:$0xff] }
0x1604   :  { %v6518_v37 = vpop.f32.mrb[99].mxu0  ;;  %v4457_v27 = vsel %vm681_vm7, %v8880_v48, -inf }
0x1605   :  { %v4385_v45 = vpop.f32.mrb[88].mxu1  ;;  %v9313_v37 = vld [vmem:[#allocation22_spill] sm:$0xff] }
0x1606   :  { %v6511_v24 = vpop.f32.mrb[89].mxu1  ;;  %v4448_v44 = vsel %vm681_vm7, %v4385_v45, -inf }
0x1607   :  { %4446 = vmax.xlane.f32.xlu0 %v4445_v21  ;;  %v4388_v19 = vpop.f32.mrb[90].mxu1 }
0x1608   :  { %v6512_v10 = vpop.f32.mrb[91].mxu1  ;;  %v4451_v5 = vsel %vm681_vm7, %v4388_v19, -inf }
0x1609   :  { %4452 = vmax.xlane.f32.xlu1 %v4451_v5 }
0x160b   :  { %4449 = vmax.xlane.f32.xlu0 %v4448_v44 }
0x160d   :  { %4458 = vmax.xlane.f32.xlu1 %v4457_v27 }
0x160f   :  { %4455 = vmax.xlane.f32.xlu0 %v4454_v61 }
0x168c   :  { %v4438_v46 = vpop.xlane.xlu0 %4437 }
0x168d   :  { %v4460_v23 = vsub.f32 %v4297_v62, %v4438_v46 }
0x168e   :  { %v4441_v11 = vpop.xlane.xlu1 %4440 }
0x168f   :  { %v4468_v16 = vmul.f32 1.442695, %v4460_v23  ;;  %v4461_v52 = vsub.f32 %v4300_v25, %v4441_v11 }
0x1690   :  { %v4444_v6 = vpop.xlane.xlu0 %4443 }
0x1691   :  { %v4462_v9 = vsub.f32 %v4341_v20, %v4444_v6  ;;  %v4470_v32 = vmul.f32 1.442695, %v4461_v52  ;;  %v9308_v20 = vpack.c.bf16 %v9306_v18, %v9307_v30 }
0x1693   :  { %v4472_v57 = vmul.f32 1.442695, %v4462_v9 }
0x1694   :  { %v4447_v2 = vpop.xlane.xlu0 %4446 }
0x1695   :  { %7018 = vpow2.f32 %v4472_v57  ;;  %v4463_v7 = vsub.f32 %v4344_v1, %v4447_v2  ;;  %v9309_v1 = vld [vmem:[#allocation11_spill] sm:$0xff] }
0x1696   :  { %7020 = vpow2.f32 %v4468_v16  ;;  %v4453_v35 = vpop.xlane.xlu1 %4452  ;;  %v9311_v62 = vpack.c.bf16 %v9309_v1, %v9310_v56 }
0x1697   :  { %v4474_v42 = vmul.f32 1.442695, %v4463_v7  ;;  %v4465_v25 = vsub.f32 %v4388_v19, %v4453_v35 }
0x1698   :  { %v4450_v14 = vpop.xlane.xlu0 %4449 }
0x1699   :  { %7022 = vpow2.f32 %v4474_v42  ;;  %v4464_v49 = vsub.f32 %v4385_v45, %v4450_v14  ;;  %v4478_v40 = vmul.f32 1.442695, %v4465_v25  ;;  %v9314_v45 = vpack.c.bf16 %v9312_v4, %v9313_v37 }
0x169a   :  { %7024 = vpow2.f32 %v4470_v32  ;;  %v4459_v33 = vpop.xlane.xlu1 %4458 }
0x169b   :  { %v4476_v13 = vmul.f32 1.442695, %v4464_v49  ;;  %v4467_v47 = vsub.f32 %v8880_v48, %v4459_v33 }
0x169c   :  { %v4456_v3 = vpop.xlane.xlu0 %4455 }
0x169d   :  { %v4466_v59 = vsub.f32 %v4429_v55, %v4456_v3  ;;  %v4482_v26 = vmul.f32 1.442695, %v4467_v47 }
0x169f   :  { %v7019_v28 = vpop.eup %7018  ;;  %v4480_v39 = vmul.f32 1.442695, %v4466_v59 }
0x16a0   :  { %v4490_v38 = vsel %vm681_vm7, %v7019_v28, 0.0  ;;  %v7021_v8 = vpop.eup %7020 }
0x16a1   :  { %7026 = vpow2.f32 %v4480_v39  ;;  %4491 = vadd.xlane.f32.xlu0 %v4490_v38  ;;  %v4484_v12 = vsel %vm681_vm7, %v7021_v8, 0.0 }
0x16a2   :  { %7028 = vpow2.f32 %v4476_v13 }
0x16a3   :  { %v7023_v60 = vpop.eup %7022  ;;  %7030 = vpow2.f32 %v4482_v26 }
0x16a4   :  { %v4493_v54 = vsel %vm681_vm7, %v7023_v60, 0.0  ;;  %v7025_v29 = vpop.eup %7024  ;;  %7032 = vpow2.f32 %v4478_v40 }
0x16a5   :  { %4485 = vadd.xlane.f32.xlu0 %v4484_v12  ;;  %4494 = vadd.xlane.f32.xlu1 %v4493_v54  ;;  %v4487_v51 = vsel %vm681_vm7, %v7025_v29, 0.0  ;;  %v9315_v54 = vld [vmem:[#allocation13_spill] sm:$0xff] }
0x16a9   :  { %4488 = vadd.xlane.f32.xlu1 %v4487_v51 }
0x16ab   :  { %v8892_v53 = vpop.eup %7026 }
0x16ac   :  { %v4502_v15 = vsel %vm681_vm7, %v8892_v53, 0.0  ;;  %v8896_v17 = vpop.eup %7028 }
0x16ad   :  { %4503 = vadd.xlane.f32.xlu0 %v4502_v15  ;;  %v4496_v63 = vsel %vm681_vm7, %v8896_v17, 0.0  ;;  %v7031_v31 = vpop.eup %7030  ;;  %v9321_v15 = vld [vmem:[#allocation25_spill] sm:$0xff] }
0x16ae   :  { %v4505_v41 = vsel %vm681_vm7, %v7031_v31, 0.0  ;;  %v7033_v55 = vpop.eup %7032 }
0x16af   :  { %v4499_v50 = vsel %vm681_vm7, %v7033_v55, 0.0 }
0x16b1   :  { %4497 = vadd.xlane.f32.xlu0 %v4496_v63  ;;  %v9324_v63 = vld [vmem:[#allocation27_spill] sm:$0xff] }
0x16ba   :  { %4577 = vrot.lane.b32.xlu1 %v9305_v43, %s7117_s20  ;;  %v9325_v43 = vld [vmem:[#allocation26_spill] sm:$0xff] }
0x16bb   :  { %v9326_v18 = vpack.c.bf16 %v9324_v63, %v9325_v43  ;;  %v9333_v43 = vld [vmem:[#allocation19_spill] sm:$0xff] }
0x16be   :  { %4625 = vrot.lane.b32.xlu1 %v9308_v20, %s7117_s20 }
0x16c7   :  { %4529 = vrot.lane.b32.xlu0 %v9311_v62, %s7117_s20 }
0x16e2   :  { %4506 = vadd.xlane.f32.xlu1 %v4505_v41 }
0x16e6   :  { %4500 = vadd.xlane.f32.xlu1 %v4499_v50 }
0x16f7   :  { %4673 = vrot.lane.b32.xlu1 %v9314_v45, %s7117_s20 }
0x172e   :  { %v4492_v24 = vpop.xlane.xlu0 %4491 }
0x172f   :  { %7034 = vrcp.f32 %v4492_v24 }
0x1732   :  { %v4486_v48 = vpop.xlane.xlu0 %4485  ;;  %v4495_v21 = vpop.xlane.xlu1 %4494 }
0x1733   :  { %7036 = vrcp.f32 %v4495_v21 }
0x1734   :  { %7038 = vrcp.f32 %v4486_v48 }
0x1736   :  { %v4489_v19 = vpop.xlane.xlu1 %4488 }
0x1737   :  { %7040 = vrcp.f32 %v4489_v19 }
0x1739   :  { %v7035_v44 = vpop.eup %7034 }
0x173a   :  { %v4504_v10 = vpop.xlane.xlu0 %4503  ;;  %v4578_v5 = vpop.permute.xlu1 %4577  ;;  %v4518_v23 = vmul.f32 %v7035_v44, %v7019_v28 }
0x173b   :  { %6526 = vmatpush3.bf16.msra.mxu0 %v4578_v5  ;;  %7042 = vrcp.f32 %v4504_v10 }
0x173c   :  { %6537 = vmatprep.subr.bf16.mxu0 %v9285_v0 }
0x173d   :  { %v7037_v27 = vpop.eup %7036 }
0x173e   :  { %v4498_v61 = vpop.xlane.xlu0 %4497  ;;  %v7039_v46 = vpop.eup %7038  ;;  %v4519_v11 = vmul.f32 %v7037_v27, %v7023_v60 }
0x173f   :  { %v4516_v16 = vmul.f32 %v7039_v46, %v7021_v8  ;;  %v4626_v7 = vpop.permute.xlu1 %4625 }
0x1740   :  { %v4525_v9 = vpack.c.bf16 %v4519_v11, %v4518_v23 }
0x1741   :  { %v7041_v6 = vpop.eup %7040 }
0x1742   :  { %v4517_v52 = vmul.f32 %v7041_v6, %v7025_v29  ;;  %v4530_v57 = vpop.permute.xlu0 %4529  ;;  %6528 = vmatmul.mubr.msk.bf16.vlgmr.msra.gmra.mrb[84].mxu0 %vm681_vm7, %v4525_v9  ;;  %v9316_v29 = vld [vmem:[#allocation12_spill] sm:$0xff] }
0x1743   :  { %6520 = vmatpush3.bf16.msra.mxu1 %v4530_v57  ;;  %6539 = vmatprep.mubr.msk.bf16.mxu0 %vm7115_vm2, %v9285_v0  ;;  %v9317_v51 = vpack.c.bf16 %v9315_v54, %v9316_v29 }
0x1744   :  { %v4524_v2 = vpack.c.bf16 %v4517_v52, %v4516_v16  ;;  %6531 = vmatprep.subr.bf16.mxu1 %v9285_v0 }
0x1745   :  { %v7043_v49 = vpop.eup %7042 }
0x1746   :  { %6522 = vmatmul.mubr.msk.bf16.vlgmr.msra.gmra.mrb[76].mxu1 %vm681_vm7, %v4524_v2  ;;  %v4522_v59 = vmul.f32 %v7043_v49, %v8892_v53  ;;  %v9319_v53 = vld [vmem:[#allocation14_spill] sm:$0xff] }
0x1747   :  { %6532 = vmatpush3.bf16.msra.mxu1 %v4626_v7  ;;  %6533 = vmatprep.mubr.msk.bf16.mxu1 %vm7115_vm2, %v9285_v0 }
0x1748   :  { %6543 = vmatprep.subr.bf16.mxu1 %v9285_v0 }
0x176f   :  { %v4507_v32 = vpop.xlane.xlu1 %4506 }
0x1770   :  { %7044 = vrcp.f32 %v4507_v32 }
0x1771   :  { %7046 = vrcp.f32 %v4498_v61 }
0x1773   :  { %v4501_v42 = vpop.xlane.xlu1 %4500 }
0x1774   :  { %7048 = vrcp.f32 %v4501_v42 }
0x1777   :  { %v4674_v14 = vpop.permute.xlu1 %4673 }
0x1778   :  { %6538 = vmatpush3.bf16.msra.mxu0 %v4674_v14 }
0x1779   :  { %6549 = vmatprep.subr.bf16.mxu0 %v9285_v0 }
0x177a   :  { %v7045_v3 = vpop.eup %7044 }
0x177b   :  { %v4523_v28 = vmul.f32 %v7045_v3, %v7031_v31  ;;  %v7047_v13 = vpop.eup %7046 }
0x177c   :  { %v4520_v8 = vmul.f32 %v7047_v13, %v8896_v17  ;;  %v9322_v17 = vld [vmem:[#allocation24_spill] sm:$0xff] }
0x177d   :  { %v4527_v39 = vpack.c.bf16 %v4523_v28, %v4522_v59 }
0x177e   :  { %v7049_v38 = vpop.eup %7048 }
0x177f   :  { %v4521_v60 = vmul.f32 %v7049_v38, %v7033_v55  ;;  %6540 = vmatmul.mubr.msk.bf16.vlgmr.msra.gmra.mrb[88].mxu0 %vm681_vm7, %v4527_v39 }
0x1780   :  { %6551 = vmatprep.mubr.msk.bf16.mxu0 %vm7115_vm2, %v9285_v0 }
0x1781   :  { %6550 = vmatpush3.bf16.xpose.msra.mxu0 %v8507_v34  ;;  %v4526_v12 = vpack.c.bf16 %v4521_v60, %v4520_v8  ;;  %v9318_v34 = vld [vmem:[#allocation15_spill] sm:$0xff] }
0x1782   :  { %6561 = vmatprep.subr.bf16.mxu0 %v9285_v0 }
0x1783   :  { %6534 = vmatmul.mubr.msk.bf16.vlgmr.msra.gmra.mrb[80].mxu1 %vm681_vm7, %v4526_v12 }
0x1784   :  { %6544 = vmatpush3.bf16.xpose.msra.mxu1 %v8510_v58  ;;  %6545 = vmatprep.mubr.msk.bf16.mxu1 %vm7115_vm2, %v9285_v0  ;;  %v9320_v58 = vpack.c.bf16 %v9318_v34, %v9319_v53  ;;  %v9327_v34 = vld [vmem:[#allocation17_spill] sm:$0xff]  ;;  %v9328_v53 = vld [vmem:[#allocation16_spill] sm:$0xff] }
0x1785   :  { %6555 = vmatprep.subr.bf16.mxu1 %v9285_v0 }
0x1788   :  { %6552 = vmatmul.mubr.msk.bf16.vlgmr.msra.gmra.mrb[100].mxu0 %vm222_vm1, %v9317_v51 }
0x1789   :  { %6562 = vmatpush3.bf16.xpose.msra.mxu0 %v8534_v22  ;;  %6563 = vmatprep.mubr.msk.bf16.mxu0 %vm7115_vm2, %v9285_v0  ;;  %v9323_v22 = vpack.c.bf16 %v9321_v15, %v9322_v17  ;;  %v9330_v15 = vld [vmem:[#allocation29_spill] sm:$0xff]  ;;  %v9331_v17 = vld [vmem:[#allocation28_spill] sm:$0xff] }
0x178a   :  { %6573 = vmatprep.subr.bf16.mxu0 %v9285_v0 }
0x178b   :  { %6546 = vmatmul.mubr.msk.bf16.vlgmr.msra.gmra.mrb[92].mxu1 %vm222_vm1, %v9320_v58  ;;  %v9329_v58 = vpack.c.bf16 %v9327_v34, %v9328_v53 }
0x178c   :  { %6556 = vmatpush3.bf16.xpose.msra.mxu1 %v8529_v36  ;;  %6557 = vmatprep.mubr.msk.bf16.mxu1 %vm7115_vm2, %v9285_v0 }
0x178d   :  { %6567 = vmatprep.subr.bf16.mxu1 %v9285_v0 }
0x1790   :  { %6564 = vmatmul.mubr.msk.bf16.vlgmr.msra.gmra.mrb[104].mxu0 %vm222_vm1, %v9323_v22  ;;  %v9332_v22 = vpack.c.bf16 %v9330_v15, %v9331_v17 }
0x1791   :  { %6575 = vmatprep.mubr.msk.bf16.mxu0 %vm7115_vm2, %v9285_v0 }
0x1793   :  { %6558 = vmatmul.mubr.msk.bf16.vlgmr.msra.gmra.mrb[96].mxu1 %vm222_vm1, %v9326_v18  ;;  %v9334_v18 = vld [vmem:[#allocation18_spill] sm:$0xff] }
0x1794   :  { %6569 = vmatprep.mubr.msk.bf16.mxu1 %vm7115_vm2, %v9285_v0 }
0x185b   :  { %v4833_v36 = vpop.f32.mrb[100].mxu0 }
0x185c   :  { %v6553_v30 = vpop.f32.mrb[101].mxu0  ;;  %v4934_v40 = vsel %vm681_vm7, %v4833_v36, -inf }
0x185d   :  { %v4836_v20 = vpop.f32.mrb[102].mxu0 }
0x185e   :  { %v4789_v35 = vpop.f32.mrb[92].mxu1  ;;  %v6554_v1 = vpop.f32.mrb[103].mxu0  ;;  %v4937_v37 = vsel %vm681_vm7, %v4836_v20, -inf }
0x185f   :  { %v6547_v56 = vpop.f32.mrb[93].mxu1  ;;  %v4928_v62 = vsel %vm681_vm7, %v4789_v35, -inf }
0x1860   :  { %4929 = vmax.xlane.f32.xlu0 %v4928_v62  ;;  %v4792_v33 = vpop.f32.mrb[94].mxu1 }
0x1861   :  { %v6548_v47 = vpop.f32.mrb[95].mxu1  ;;  %v4931_v25 = vsel %vm681_vm7, %v4792_v33, -inf }
0x1862   :  { %4932 = vmax.xlane.f32.xlu1 %v4931_v25 }
0x1863   :  { %v4921_v26 = vpop.f32.mrb[104].mxu0 }
0x1864   :  { %v6565_v31 = vpop.f32.mrb[105].mxu0  ;;  %4935 = vmax.xlane.f32.xlu0 %v4934_v40  ;;  %v4946_v10 = vsel %vm681_vm7, %v4921_v26, -inf  ;;  %v9337_v40 = vld [vmem:[#allocation30_spill] sm:$0xff] }
0x1865   :  { %v8972_v41 = vpop.f32.mrb[106].mxu0 }
0x1866   :  { %v4877_v55 = vpop.f32.mrb[96].mxu1  ;;  %v6566_v50 = vpop.f32.mrb[107].mxu0  ;;  %v4949_v19 = vsel %vm681_vm7, %v8972_v41, -inf }
0x1867   :  { %v6559_v4 = vpop.f32.mrb[97].mxu1  ;;  %v4940_v21 = vsel %vm681_vm7, %v4877_v55, -inf }
0x1868   :  { %4938 = vmax.xlane.f32.xlu0 %v4937_v37  ;;  %v4880_v45 = vpop.f32.mrb[98].mxu1 }
0x1869   :  { %v6560_v24 = vpop.f32.mrb[99].mxu1  ;;  %v4943_v48 = vsel %vm681_vm7, %v4880_v45, -inf }
0x186a   :  { %4944 = vmax.xlane.f32.xlu1 %v4943_v48 }
0x186c   :  { %4941 = vmax.xlane.f32.xlu0 %v4940_v21 }
0x186e   :  { %4950 = vmax.xlane.f32.xlu1 %v4949_v19 }
0x1870   :  { %4947 = vmax.xlane.f32.xlu0 %v4946_v10 }
0x18ed   :  { %v4930_v5 = vpop.xlane.xlu0 %4929 }
0x18ee   :  { %v4952_v44 = vsub.f32 %v4789_v35, %v4930_v5 }
0x18ef   :  { %v4933_v27 = vpop.xlane.xlu1 %4932 }
0x18f0   :  { %v4960_v23 = vmul.f32 1.442695, %v4952_v44  ;;  %v4953_v11 = vsub.f32 %v4792_v33, %v4933_v27 }
0x18f1   :  { %v4936_v61 = vpop.xlane.xlu0 %4935 }
0x18f2   :  { %v4954_v46 = vsub.f32 %v4833_v36, %v4936_v61  ;;  %v4962_v52 = vmul.f32 1.442695, %v4953_v11  ;;  %v9335_v36 = vpack.c.bf16 %v9333_v43, %v9334_v18 }
0x18f4   :  { %v4964_v6 = vmul.f32 1.442695, %v4954_v46 }
0x18f5   :  { %v4939_v9 = vpop.xlane.xlu0 %4938 }
0x18f6   :  { %7050 = vpow2.f32 %v4964_v6  ;;  %v4955_v16 = vsub.f32 %v4836_v20, %v4939_v9 }
0x18f7   :  { %7052 = vpow2.f32 %v4960_v23  ;;  %v4945_v63 = vpop.xlane.xlu1 %4944 }
0x18f8   :  { %v4966_v57 = vmul.f32 1.442695, %v4955_v16  ;;  %v4957_v35 = vsub.f32 %v4880_v45, %v4945_v63 }
0x18f9   :  { %v4942_v2 = vpop.xlane.xlu0 %4941 }
0x18fa   :  { %7054 = vpow2.f32 %v4966_v57  ;;  %v4956_v7 = vsub.f32 %v4877_v55, %v4942_v2  ;;  %v4970_v56 = vmul.f32 1.442695, %v4957_v35 }
0x18fb   :  { %7056 = vpow2.f32 %v4962_v52  ;;  %v4951_v30 = vpop.xlane.xlu1 %4950 }
0x18fc   :  { %v4968_v49 = vmul.f32 1.442695, %v4956_v7  ;;  %v4959_v20 = vsub.f32 %v8972_v41, %v4951_v30 }
0x18fd   :  { %v4948_v32 = vpop.xlane.xlu0 %4947 }
0x18fe   :  { %v4958_v42 = vsub.f32 %v4921_v26, %v4948_v32  ;;  %v4974_v1 = vmul.f32 1.442695, %v4959_v20  ;;  %v9336_v26 = vld [vmem:[#allocation31_spill] sm:$0xff] }
0x18ff   :  { %v9338_v31 = vpack.c.bf16 %v9336_v26, %v9337_v40 }
0x1900   :  { %v7051_v14 = vpop.eup %7050  ;;  %v4972_v3 = vmul.f32 1.442695, %v4958_v42 }
0x1901   :  { %v4982_v59 = vsel %vm681_vm7, %v7051_v14, 0.0  ;;  %v7053_v28 = vpop.eup %7052 }
0x1902   :  { %7058 = vpow2.f32 %v4972_v3  ;;  %4983 = vadd.xlane.f32.xlu0 %v4982_v59  ;;  %v4976_v39 = vsel %vm681_vm7, %v7053_v28, 0.0 }
0x1903   :  { %7060 = vpow2.f32 %v4968_v49 }
0x1904   :  { %v7055_v13 = vpop.eup %7054  ;;  %7062 = vpow2.f32 %v4974_v1  ;;  %v5923_v1 = vld [vmem:[%s9214_s7 + $0xb] ss:$0 sm:$0xff] }
0x1905   :  { %v4985_v38 = vsel %vm681_vm7, %v7055_v13, 0.0  ;;  %v7057_v8 = vpop.eup %7056  ;;  %7064 = vpow2.f32 %v4970_v56 }
0x1906   :  { %4977 = vadd.xlane.f32.xlu0 %v4976_v39  ;;  %4986 = vadd.xlane.f32.xlu1 %v4985_v38  ;;  %v4979_v60 = vsel %vm681_vm7, %v7057_v8, 0.0 }
0x190a   :  { %4980 = vadd.xlane.f32.xlu1 %v4979_v60 }
0x190c   :  { %v8984_v12 = vpop.eup %7058 }
0x190d   :  { %v4994_v54 = vsel %vm681_vm7, %v8984_v12, 0.0  ;;  %v8988_v29 = vpop.eup %7060 }
0x190e   :  { %4995 = vadd.xlane.f32.xlu0 %v4994_v54  ;;  %v4988_v51 = vsel %vm681_vm7, %v8988_v29, 0.0  ;;  %v7063_v62 = vpop.eup %7062 }
0x190f   :  { %v4997_v33 = vsel %vm681_vm7, %v7063_v62, 0.0  ;;  %v7065_v47 = vpop.eup %7064 }
0x1910   :  { %v4991_v25 = vsel %vm681_vm7, %v7065_v47, 0.0 }
0x1912   :  { %4989 = vadd.xlane.f32.xlu0 %v4988_v51 }
0x191b   :  { %5069 = vrot.lane.b32.xlu1 %v9329_v58, %s7117_s20 }
0x191f   :  { %5117 = vrot.lane.b32.xlu1 %v9332_v22, %s7117_s20 }
0x1928   :  { %5021 = vrot.lane.b32.xlu0 %v9335_v36, %s7117_s20 }
0x1943   :  { %4998 = vadd.xlane.f32.xlu1 %v4997_v33 }
0x1947   :  { %4992 = vadd.xlane.f32.xlu1 %v4991_v25 }
0x1958   :  { %5165 = vrot.lane.b32.xlu1 %v9338_v31, %s7117_s20 }
0x198f   :  { %v4984_v55 = vpop.xlane.xlu0 %4983 }
0x1990   :  { %7066 = vrcp.f32 %v4984_v55  ;;  %v9341_v55 = vld [vmem:[#allocation5_spill] sm:$0xff] }
0x1993   :  { %v4978_v41 = vpop.xlane.xlu0 %4977  ;;  %v4987_v50 = vpop.xlane.xlu1 %4986 }
0x1994   :  { %7068 = vrcp.f32 %v4987_v50 }
0x1995   :  { %7070 = vrcp.f32 %v4978_v41 }
0x1997   :  { %v4981_v4 = vpop.xlane.xlu1 %4980 }
0x1998   :  { %7072 = vrcp.f32 %v4981_v4  ;;  %v9342_v4 = vld [vmem:[#allocation6_spill] sm:$0xff] }
0x199a   :  { %v7067_v24 = vpop.eup %7066 }
0x199b   :  { %v4996_v37 = vpop.xlane.xlu0 %4995  ;;  %v5070_v45 = vpop.permute.xlu1 %5069  ;;  %v5010_v10 = vmul.f32 %v7067_v24, %v7051_v14 }
0x199c   :  { %6574 = vmatpush3.bf16.msra.mxu0 %v5070_v45  ;;  %7074 = vrcp.f32 %v4996_v37 }
0x199d   :  { %6585 = vmatprep.subr.bf16.mxu0 %v9285_v0 }
0x199e   :  { %v7069_v48 = vpop.eup %7068 }
0x199f   :  { %v4990_v21 = vpop.xlane.xlu0 %4989  ;;  %v7071_v19 = vpop.eup %7070  ;;  %v5011_v5 = vmul.f32 %v7069_v48, %v7055_v13  ;;  %v6755_v13 = vld [vmem:[%s9215_s4 + $0x18] sm:$0xff]  }
0x19a0   :  { %v5008_v61 = vmul.f32 %v7071_v19, %v7053_v28  ;;  %v5118_v6 = vpop.permute.xlu1 %5117  ;;  %v6754_v28 = vld [vmem:[%s9215_s4 + $0x10] sm:$0xff]  }
0x19a1   :  { %v5017_v27 = vpack.c.bf16 %v5011_v5, %v5010_v10 }
0x19a2   :  { %v7073_v44 = vpop.eup %7072 }
0x19a3   :  { %v5009_v46 = vmul.f32 %v7073_v44, %v7057_v8  ;;  %v5022_v23 = vpop.permute.xlu0 %5021  ;;  %6576 = vmatmul.mubr.msk.bf16.vlgmr.msra.gmra.mrb[84].mxu0 %vm681_vm7, %v5017_v27  ;;  %v9343_v44 = vld [vmem:[#allocation8_spill] sm:$0xff] }
0x19a4   :  { %6568 = vmatpush3.bf16.msra.mxu1 %v5022_v23  ;;  %6587 = vmatprep.mubr.msk.bf16.mxu0 %vm7115_vm2, %v9285_v0 }
0x19a5   :  { %v5016_v11 = vpack.c.bf16 %v5009_v46, %v5008_v61  ;;  %6579 = vmatprep.subr.bf16.mxu1 %v9285_v0  ;;  %v9344_v46 = vld [vmem:[#allocation7_spill] sm:$0xff] }
0x19a6   :  { %v7075_v57 = vpop.eup %7074 }
0x19a7   :  { %6570 = vmatmul.mubr.msk.bf16.vlgmr.msra.gmra.mrb[76].mxu1 %vm681_vm7, %v5016_v11  ;;  %v5014_v7 = vmul.f32 %v7075_v57, %v8984_v12 }
0x19a8   :  { %6580 = vmatpush3.bf16.msra.mxu1 %v5118_v6  ;;  %6581 = vmatprep.mubr.msk.bf16.mxu1 %vm7115_vm2, %v9285_v0 }
0x19a9   :  { %6591 = vmatprep.subr.bf16.mxu1 %v6754_v28 }
0x19d0   :  { %v4999_v9 = vpop.xlane.xlu1 %4998 }
0x19d1   :  { %7076 = vrcp.f32 %v4999_v9  ;;  %v9345_v9 = vld [vmem:[#allocation10_spill] sm:$0xff] }
0x19d2   :  { %7078 = vrcp.f32 %v4990_v21 }
0x19d4   :  { %v4993_v16 = vpop.xlane.xlu1 %4992 }
0x19d5   :  { %7080 = vrcp.f32 %v4993_v16 }
0x19d8   :  { %v5166_v52 = vpop.permute.xlu1 %5165 }
0x19d9   :  { %6586 = vmatpush3.bf16.msra.mxu0 %v5166_v52 }
0x19db   :  { %v7077_v2 = vpop.eup %7076 }
0x19dc   :  { %v5015_v32 = vmul.f32 %v7077_v2, %v7063_v62  ;;  %v7079_v42 = vpop.eup %7078  ;;  %v9339_v62 = vld [vmem:[#allocation4_spill] sm:$0xff]  ;;  %v9346_v2 = vld [vmem:[#allocation9_spill] sm:$0xff] }
0x19dd   :  { %v5012_v3 = vmul.f32 %v7079_v42, %v8988_v29 }
0x19de   :  { %v5019_v14 = vpack.c.bf16 %v5015_v32, %v5014_v7 }
0x19df   :  { %v7081_v49 = vpop.eup %7080 }
0x19e0   :  { %v5013_v59 = vmul.f32 %v7081_v49, %v7065_v47  ;;  %6588 = vmatmul.mubr.msk.bf16.vlgmr.msra.gmra.mrb[88].mxu0 %vm681_vm7, %v5019_v14  ;;  %v9340_v47 = vld [vmem:[#allocation3_spill] sm:$0xff] }
0x19e2   :  { %v5018_v0 = vpack.c.bf16 %v5013_v59, %v5012_v3 }
0x19e4   :  { %6582 = vmatmul.mubr.msk.bf16.vlgmr.msra.gmra.mrb[80].mxu1 %vm681_vm7, %v5018_v0 }
0x19e5   :  { %6592 = vmatpush3.bf16.msra.mxu1 %v6754_v28 }
0x19e6   :  { %6593 = vmatprep.subr.bf16.mxu1 %v6755_v13 }
0x19e9   :  { %6594 = vmatpush3.bf16.msra.mxu1 %v6755_v13 }
0x1a76   :  { %v5109_v39 = vpop.f32.mrb[84].mxu0 }
0x1a77   :  { %v6577_v38 = vpop.f32.mrb[85].mxu0 }
0x1a78   :  { %v5112_v8 = vpop.f32.mrb[86].mxu0 }
0x1a79   :  { %v5221_v60 = vpack.c.bf16 %v5112_v8, %v5109_v39  ;;  %v6578_v12 = vpop.f32.mrb[87].mxu0 }
0x1a7a   :  { %v5061_v54 = vpop.f32.mrb[76].mxu1 }
0x1a7b   :  { %v6571_v29 = vpop.f32.mrb[77].mxu1 }
0x1a7c   :  { %v5064_v51 = vpop.f32.mrb[78].mxu1 }
0x1a7d   :  { %v5220_v34 = vpack.c.bf16 %v5064_v51, %v5061_v54  ;;  %v6572_v53 = vpop.f32.mrb[79].mxu1 }
0x1a7f   :  { %6595 = vmatprep.mubr.msk.bf16.mxu1 %vm222_vm1, %v5220_v34 }
0x1a80   :  { %6596 = vmatmul.mubr.msk.bf16.vlgmr.msra.gmra.mrb[100].mxu1 %vm222_vm1, %v5221_v60 }
0x1ab3   :  { %v5205_v58 = vpop.f32.mrb[88].mxu0 }
0x1ab4   :  { %v6589_v15 = vpop.f32.mrb[89].mxu0 }
0x1ab5   :  { %v5208_v17 = vpop.f32.mrb[90].mxu0 }
0x1ab6   :  { %v5223_v22 = vpack.c.bf16 %v5208_v17, %v5205_v58  ;;  %v6590_v63 = vpop.f32.mrb[91].mxu0 }
0x1ab7   :  { %v5157_v43 = vpop.f32.mrb[80].mxu1 }
0x1ab8   :  { %v6583_v18 = vpop.f32.mrb[81].mxu1 }
0x1ab9   :  { %v5160_v36 = vpop.f32.mrb[82].mxu1 }
0x1aba   :  { %v5222_v30 = vpack.c.bf16 %v5160_v36, %v5157_v43  ;;  %v6584_v20 = vpop.f32.mrb[83].mxu1  ;;  %v6756_v36 = vld [vmem:[%s9216_s5 + $0x10] sm:$0xff]  }
0x1abb   :  { %6603 = vmatprep.subr.bf16.mxu0 %v6756_v36 }
0x1abc   :  { %6599 = vmatprep.mubr.msk.bf16.mxu1 %vm222_vm1, %v5222_v30  ;;  %v6757_v30 = vld [vmem:[%s9216_s5 + $0x18] sm:$0xff]   ;;  %6604 = vmatpush3.bf16.msra.mxu0 %v6756_v36 }
0x1abd   :  { %6600 = vmatmul.mubr.msk.bf16.gmra.mrb[104].mxu1 %vm222_vm1, %v5223_v22  ;;  %6605 = vmatprep.subr.bf16.mxu0 %v6757_v30 }
0x1ac0   :  { %6606 = vmatpush3.bf16.msra.mxu0 %v6757_v30 }
0x1b53   :  { %v6597_v35 = vpop.f32.mrb[100].mxu1 }
0x1b54   :  { %v5282_v56 = vpop.f32.mrb[101].mxu1  ;;  %v5315_v33 = vadd.f32 %v6597_v35, %v9339_v62 }
0x1b55   :  { %v5313_v25 = vadd.f32 %v5282_v56, %v9340_v47  ;;  %v6598_v26 = vpop.f32.mrb[102].mxu1 }
0x1b56   :  { %v5285_v40 = vpop.f32.mrb[103].mxu1  ;;  %v9041_v50 = vadd.f32 %v5923_v1, %v5315_v33  ;;  %v5316_v37 = vadd.f32 %v6598_v26, %v9342_v4 }
0x1b57   :  { %v9038_v31 = vadd.f32 %v5923_v1, %v5313_v25  ;;  %v5314_v41 = vadd.f32 %v5285_v40, %v9341_v55 }
0x1b58   :  { %v9050_v21 = vadd.f32 %v5923_v1, %v5316_v37  ;;  %v5339_v19 = vsel %vm222_vm1, %v9041_v50, 0.0 }
0x1b59   :  { %v9044_v45 = vadd.f32 %v5923_v1, %v5314_v41  ;;  %v5333_v24 = vsel %vm222_vm1, %v9038_v31, 0.0 }
0x1b5a   :  { %5334 = vadd.xlane.f32.xlu0 %v5333_v24  ;;  %v5342_v10 = vsel %vm222_vm1, %v9050_v21, 0.0 }
0x1b5b   :  { %v5336_v48 = vsel %vm222_vm1, %v9044_v45, 0.0 }
0x1b5c   :  { %5337 = vadd.xlane.f32.xlu1 %v5336_v48 }
0x1b5e   :  { %5340 = vadd.xlane.f32.xlu0 %v5339_v19 }
0x1b62   :  { %5343 = vadd.xlane.f32.xlu0 %v5342_v10 }
0x1b90   :  { %v6601_v5 = vpop.f32.mrb[104].mxu1 }
0x1b91   :  { %v5319_v27 = vadd.f32 %v6601_v5, %v9343_v44  ;;  %v5298_v61 = vpop.f32.mrb[105].mxu1 }
0x1b92   :  { %v5317_v23 = vadd.f32 %v5298_v61, %v9344_v46  ;;  %v6602_v11 = vpop.f32.mrb[106].mxu1 }
0x1b93   :  { %v9058_v6 = vadd.f32 %v5923_v1, %v5319_v27  ;;  %v5320_v16 = vadd.f32 %v6602_v11, %v9345_v9  ;;  %v5301_v52 = vpop.f32.mrb[107].mxu1 }
0x1b94   :  { %v9061_v57 = vadd.f32 %v5923_v1, %v5317_v23  ;;  %v5318_v7 = vadd.f32 %v5301_v52, %v9346_v2 }
0x1b95   :  { %v9064_v32 = vadd.f32 %v5923_v1, %v5320_v16  ;;  %v5351_v3 = vsel %vm222_vm1, %v9058_v6, 0.0 }
0x1b96   :  { %v9066_v42 = vadd.f32 %v5923_v1, %v5318_v7  ;;  %v5345_v14 = vsel %vm222_vm1, %v9061_v57, 0.0 }
0x1b97   :  { %5346 = vadd.xlane.f32.xlu0 %v5345_v14  ;;  %v5354_v59 = vsel %vm222_vm1, %v9064_v32, 0.0 }
0x1b98   :  { %v5348_v49 = vsel %vm222_vm1, %v9066_v42, 0.0 }
0x1b99   :  { %5349 = vadd.xlane.f32.xlu1 %v5348_v49 }
0x1b9b   :  { %5352 = vadd.xlane.f32.xlu0 %v5351_v3 }
0x1b9d   :  { %5355 = vadd.xlane.f32.xlu1 %v5354_v59  ;;  %v5924_v59 = vld [vmem:[%s9214_s7 + $0xc] ss:$0 sm:$0xff] }
0x1be7   :  { %v5335_v0 = vpop.xlane.xlu0 %5334 }
0x1be8   :  { %v5357_v28 = vmul.f32 0.03125, %v5335_v0 }
0x1be9   :  { %v5338_v13 = vpop.xlane.xlu1 %5337 }
0x1bea   :  { %v9077_v39 = vsub.f32 %v9038_v31, %v5357_v28  ;;  %v5358_v38 = vmul.f32 0.03125, %v5338_v13 }
0x1beb   :  { %v5341_v8 = vpop.xlane.xlu0 %5340 }
0x1bec   :  { %v9080_v60 = vsub.f32 %v9044_v45, %v5358_v38  ;;  %v5359_v12 = vmul.f32 0.03125, %v5341_v8  ;;  %v5373_v54 = vmul.f32 %v9077_v39, %v9077_v39 }
0x1bee   :  { %v9085_v29 = vsub.f32 %v9041_v50, %v5359_v12  ;;  %v5381_v51 = vsel %vm222_vm1, %v5373_v54, 0.0  ;;  %v5374_v34 = vmul.f32 %v9080_v60, %v9080_v60  ;;  %v5925_v12 = vld [vmem:[%s9214_s7 + $0xd] ss:$0 sm:$0xff] }
0x1bef   :  { %v5344_v53 = vpop.xlane.xlu0 %5343  ;;  %5382 = vadd.xlane.f32.xlu0 %v5381_v51 }
0x1bf0   :  { %v5360_v58 = vmul.f32 0.03125, %v5344_v53  ;;  %v5384_v15 = vsel %vm222_vm1, %v5374_v34, 0.0  ;;  %v5375_v17 = vmul.f32 %v9085_v29, %v9085_v29 }
0x1bf1   :  { %5385 = vadd.xlane.f32.xlu1 %v5384_v15 }
0x1bf2   :  { %v9094_v22 = vsub.f32 %v9050_v21, %v5360_v58  ;;  %v5387_v63 = vsel %vm222_vm1, %v5375_v17, 0.0 }
0x1bf3   :  { %5388 = vadd.xlane.f32.xlu0 %v5387_v63 }
0x1bf4   :  { %v5376_v43 = vmul.f32 %v9094_v22, %v9094_v22 }
0x1bf6   :  { %v5390_v18 = vsel %vm222_vm1, %v5376_v43, 0.0 }
0x1bf7   :  { %5391 = vadd.xlane.f32.xlu1 %v5390_v18 }
0x1c24   :  { %v5347_v20 = vpop.xlane.xlu0 %5346 }
0x1c25   :  { %v5361_v35 = vmul.f32 0.03125, %v5347_v20 }
0x1c26   :  { %v5350_v1 = vpop.xlane.xlu1 %5349 }
0x1c27   :  { %v9107_v56 = vsub.f32 %v9061_v57, %v5361_v35  ;;  %v5362_v62 = vmul.f32 0.03125, %v5350_v1 }
0x1c28   :  { %v5353_v33 = vpop.xlane.xlu0 %5352 }
0x1c29   :  { %v9110_v47 = vsub.f32 %v9066_v42, %v5362_v62  ;;  %v5363_v25 = vmul.f32 0.03125, %v5353_v33  ;;  %v5377_v26 = vmul.f32 %v9107_v56, %v9107_v56 }
0x1c2a   :  { %v5356_v40 = vpop.xlane.xlu1 %5355 }
0x1c2b   :  { %v9115_v55 = vsub.f32 %v9058_v6, %v5363_v25  ;;  %v5364_v41 = vmul.f32 0.03125, %v5356_v40  ;;  %v5393_v4 = vsel %vm222_vm1, %v5377_v26, 0.0  ;;  %v5378_v37 = vmul.f32 %v9110_v47, %v9110_v47 }
0x1c2c   :  { %5394 = vadd.xlane.f32.xlu0 %v5393_v4 }
0x1c2d   :  { %v9121_v24 = vsub.f32 %v9064_v32, %v5364_v41  ;;  %v5396_v48 = vsel %vm222_vm1, %v5378_v37, 0.0  ;;  %v5379_v19 = vmul.f32 %v9115_v55, %v9115_v55 }
0x1c2e   :  { %5397 = vadd.xlane.f32.xlu1 %v5396_v48 }
0x1c2f   :  { %v5399_v10 = vsel %vm222_vm1, %v5379_v19, 0.0  ;;  %v5380_v5 = vmul.f32 %v9121_v24, %v9121_v24 }
0x1c30   :  { %5400 = vadd.xlane.f32.xlu0 %v5399_v10 }
0x1c31   :  { %v5402_v44 = vsel %vm222_vm1, %v5380_v5, 0.0 }
0x1c32   :  { %5403 = vadd.xlane.f32.xlu1 %v5402_v44 }
0x1c7c   :  { %v5383_v27 = vpop.xlane.xlu0 %5382 }
0x1c7d   :  { %v5405_v61 = vmul.f32 0.03125, %v5383_v27 }
0x1c7e   :  { %v5386_v46 = vpop.xlane.xlu1 %5385 }
0x1c7f   :  { %v5413_v23 = vadd.f32 1e-06, %v5405_v61  ;;  %v5406_v11 = vmul.f32 0.03125, %v5386_v46 }
0x1c80   :  { %v5389_v9 = vpop.xlane.xlu0 %5388 }
0x1c81   :  { %7082 = vrsqrt.f32 %v5413_v23  ;;  %v5414_v16 = vadd.f32 1e-06, %v5406_v11  ;;  %v5407_v52 = vmul.f32 0.03125, %v5389_v9 }
0x1c83   :  { %7084 = vrsqrt.f32 %v5414_v16  ;;  %v5415_v2 = vadd.f32 1e-06, %v5407_v52 }
0x1c84   :  { %v5392_v7 = vpop.xlane.xlu1 %5391 }
0x1c85   :  { %7086 = vrsqrt.f32 %v5415_v2  ;;  %v5408_v14 = vmul.f32 0.03125, %v5392_v7  ;;  %v6761_v7 = vld [vmem:[%s9217_s6 + $0x38] sm:$0xff]  }
0x1c87   :  { %v5416_v49 = vadd.f32 1e-06, %v5408_v14  ;;  %v5926_v14 = vld [vmem:[%s9214_s7 + $0xe] ss:$0 sm:$0xff] }
0x1c89   :  { %7088 = vrsqrt.f32 %v5416_v49 }
0x1c8b   :  { %v7083_v3 = vpop.eup %7082 }
0x1c8c   :  { %v5429_v0 = vmul.f32 %v7083_v3, %v9077_v39 }
0x1c8d   :  { %v7085_v28 = vpop.eup %7084 }
0x1c8e   :  { %v5430_v13 = vmul.f32 %v7085_v28, %v9080_v60  ;;  %v5441_v38 = vmul.f32 %v5924_v59, %v5429_v0 }
0x1c8f   :  { %v7087_v8 = vpop.eup %7086 }
0x1c90   :  { %v5431_v54 = vmul.f32 %v7087_v8, %v9085_v29  ;;  %v5442_v51 = vmul.f32 %v5924_v59, %v5430_v13  ;;  %v5453_v34 = vadd.f32 %v5925_v12, %v5441_v38 }
0x1c92   :  { %v5454_v53 = vadd.f32 %v5925_v12, %v5442_v51  ;;  %v5443_v15 = vmul.f32 %v5924_v59, %v5431_v54 }
0x1c93   :  { %v7089_v58 = vpop.eup %7088 }
0x1c94   :  { %v5432_v17 = vmul.f32 %v7089_v58, %v9094_v22  ;;  %v5461_v63 = vpack.c.bf16 %v5454_v53, %v5453_v34  ;;  %v5455_v60 = vadd.f32 %v5925_v12, %v5443_v15 }
0x1c96   :  { %v5444_v39 = vmul.f32 %v5924_v59, %v5432_v17  ;;  %6607 = vmatprep.mubr.msk.bf16.mxu0 %vm222_vm1, %v5461_v63 }
0x1c98   :  { %v5456_v43 = vadd.f32 %v5925_v12, %v5444_v39 }
0x1c9a   :  { %v5462_v18 = vpack.c.bf16 %v5456_v43, %v5455_v60 }
0x1c9c   :  { %6608 = vmatmul.mubr.msk.bf16.vlgmr.msra.gmra.mrb[108].mxu0 %vm222_vm1, %v5462_v18 }
0x1cb9   :  { %v5395_v36 = vpop.xlane.xlu0 %5394 }
0x1cba   :  { %v5409_v30 = vmul.f32 0.03125, %v5395_v36 }
0x1cbb   :  { %v5398_v20 = vpop.xlane.xlu1 %5397 }
0x1cbc   :  { %v5417_v29 = vadd.f32 1e-06, %v5409_v30  ;;  %v5410_v35 = vmul.f32 0.03125, %v5398_v20 }
0x1cbd   :  { %v5401_v1 = vpop.xlane.xlu0 %5400 }
0x1cbe   :  { %7090 = vrsqrt.f32 %v5417_v29  ;;  %v5418_v62 = vadd.f32 1e-06, %v5410_v35  ;;  %v5411_v33 = vmul.f32 0.03125, %v5401_v1 }
0x1cbf   :  { %v5404_v25 = vpop.xlane.xlu1 %5403 }
0x1cc0   :  { %7092 = vrsqrt.f32 %v5418_v62  ;;  %v5419_v22 = vadd.f32 1e-06, %v5411_v33  ;;  %v5412_v26 = vmul.f32 0.03125, %v5404_v25 }
0x1cc2   :  { %7094 = vrsqrt.f32 %v5419_v22  ;;  %v5420_v40 = vadd.f32 1e-06, %v5412_v26 }
0x1cc4   :  { %7096 = vrsqrt.f32 %v5420_v40 }
0x1cc8   :  { %v7091_v41 = vpop.eup %7090 }
0x1cc9   :  { %v5433_v4 = vmul.f32 %v7091_v41, %v9107_v56 }
0x1cca   :  { %v7093_v37 = vpop.eup %7092 }
0x1ccb   :  { %v5434_v48 = vmul.f32 %v7093_v37, %v9110_v47  ;;  %v5445_v19 = vmul.f32 %v5924_v59, %v5433_v4  ;;  %v6758_v47 = vld [vmem:[%s9217_s6 + $0x20] sm:$0xff]  }
0x1ccc   :  { %v7095_v10 = vpop.eup %7094  ;;  %6615 = vmatprep.subr.bf16.mxu1 %v6758_v47 }
0x1ccd   :  { %v5435_v5 = vmul.f32 %v7095_v10, %v9115_v55  ;;  %v5446_v44 = vmul.f32 %v5924_v59, %v5434_v48  ;;  %v5457_v46 = vadd.f32 %v5925_v12, %v5445_v19  ;;  %v6759_v55 = vld [vmem:[%s9217_s6 + $0x28] sm:$0xff]   ;;  %6616 = vmatpush3.bf16.msra.mxu1 %v6758_v47 }
0x1cce   :  { %v7097_v27 = vpop.eup %7096  ;;  %6617 = vmatprep.subr.bf16.mxu1 %v6759_v55 }
0x1ccf   :  { %v5436_v61 = vmul.f32 %v7097_v27, %v9121_v24  ;;  %v5458_v23 = vadd.f32 %v5925_v12, %v5446_v44  ;;  %v5447_v11 = vmul.f32 %v5924_v59, %v5435_v5  ;;  %v6760_v24 = vld [vmem:[%s9217_s6 + $0x30] sm:$0xff]  }
0x1cd1   :  { %v5463_v9 = vpack.c.bf16 %v5458_v23, %v5457_v46  ;;  %v5448_v16 = vmul.f32 %v5924_v59, %v5436_v61  ;;  %v5459_v52 = vadd.f32 %v5925_v12, %v5447_v11  ;;  %6618 = vmatpush3.bf16.msra.mxu1 %v6759_v55 }
0x1cd2   :  { %6619 = vmatprep.subr.bf16.mxu1 %v6760_v24 }
0x1cd3   :  { %6611 = vmatprep.mubr.msk.bf16.mxu0 %vm222_vm1, %v5463_v9  ;;  %v5460_v56 = vadd.f32 %v5925_v12, %v5448_v16 }
0x1cd5   :  { %v5464_v2 = vpack.c.bf16 %v5460_v56, %v5459_v52  ;;  %6620 = vmatpush3.bf16.msra.mxu1 %v6760_v24 }
0x1cd6   :  { %6621 = vmatprep.subr.bf16.mxu1 %v6761_v7 }
0x1cd7   :  { %6612 = vmatmul.mubr.msk.bf16.gmra.mrb[112].mxu0 %vm222_vm1, %v5464_v2 }
0x1cd9   :  { %6622 = vmatpush3.bf16.msra.mxu1 %v6761_v7 }
0x1d6f   :  { %v6609_v49 = vpop.f32.mrb[108].mxu0 }
0x1d70   :  { %v5536_v3 = vadd.f32 %v6609_v49, %v5926_v14  ;;  %v5527_v59 = vpop.f32.mrb[109].mxu0 }
0x1d71   :  { %v5528_v0 = vadd.f32 %v5926_v14, %v5527_v59  ;;  %v6610_v28 = vpop.f32.mrb[110].mxu0 }
0x1d72   :  { %v5560_v13 = vmul.f32 %v5536_v3, %v5536_v3  ;;  %v5539_v38 = vadd.f32 %v6610_v28, %v5926_v14  ;;  %v5530_v8 = vpop.f32.mrb[111].mxu0 }
0x1d73   :  { %v5558_v12 = vmul.f32 %v5528_v0, %v5528_v0  ;;  %v5531_v54 = vadd.f32 %v5926_v14, %v5530_v8 }
0x1d74   :  { %v5568_v51 = vmul.f32 %v5560_v13, %v5536_v3  ;;  %v5561_v34 = vmul.f32 %v5539_v38, %v5539_v38 }
0x1d75   :  { %v5566_v53 = vmul.f32 %v5558_v12, %v5528_v0  ;;  %v5559_v58 = vmul.f32 %v5531_v54, %v5531_v54 }
0x1d76   :  { %v5576_v15 = vmul.f32 0.044715, %v5568_v51  ;;  %v5569_v17 = vmul.f32 %v5561_v34, %v5539_v38 }
0x1d77   :  { %v5574_v63 = vmul.f32 0.044715, %v5566_v53  ;;  %v5567_v39 = vmul.f32 %v5559_v58, %v5531_v54 }
0x1d78   :  { %v5584_v60 = vadd.f32 %v5576_v15, %v5536_v3  ;;  %v5577_v43 = vmul.f32 0.044715, %v5569_v17 }
0x1d79   :  { %v5582_v18 = vadd.f32 %v5574_v63, %v5528_v0  ;;  %v5575_v36 = vmul.f32 0.044715, %v5567_v39 }
0x1d7a   :  { %v5592_v30 = vmul.f32 0.7978846, %v5584_v60  ;;  %v5585_v20 = vadd.f32 %v5577_v43, %v5539_v38 }
0x1d7b   :  { %v5590_v29 = vmul.f32 0.7978846, %v5582_v18  ;;  %v5583_v35 = vadd.f32 %v5575_v36, %v5531_v54 }
0x1d7c   :  { %7098 = vtanh.f32 %v5592_v30  ;;  %v5593_v1 = vmul.f32 0.7978846, %v5585_v20 }
0x1d7d   :  { %7100 = vtanh.f32 %v5590_v29  ;;  %v5591_v62 = vmul.f32 0.7978846, %v5583_v35 }
0x1d7e   :  { %7102 = vtanh.f32 %v5593_v1 }
0x1d7f   :  { %7104 = vtanh.f32 %v5591_v62 }
0x1d86   :  { %v7099_v33 = vpop.eup %7098 }
0x1d87   :  { %v7101_v25 = vpop.eup %7100  ;;  %v5608_v22 = vadd.f32 1.0, %v7099_v33 }
0x1d88   :  { %v7103_v26 = vpop.eup %7102  ;;  %v5606_v40 = vadd.f32 1.0, %v7101_v25 }
0x1d89   :  { %v7105_v41 = vpop.eup %7104  ;;  %v5616_v4 = vmul.f32 0.5, %v5608_v22  ;;  %v5609_v37 = vadd.f32 1.0, %v7103_v26 }
0x1d8a   :  { %v5614_v48 = vmul.f32 0.5, %v5606_v40  ;;  %v5607_v19 = vadd.f32 1.0, %v7105_v41 }
0x1d8b   :  { %v5617_v10 = vmul.f32 0.5, %v5609_v37  ;;  %v5624_v44 = vmul.f32 %v5616_v4, %v5536_v3 }
0x1d8c   :  { %v5615_v5 = vmul.f32 0.5, %v5607_v19  ;;  %v5622_v61 = vmul.f32 %v5614_v48, %v5528_v0  ;;  %v5941_v48 = vld [vmem:[%s9214_s7 + $0xf] ss:$0 sm:$0xff] }
0x1d8d   :  { %v5625_v27 = vmul.f32 %v5617_v10, %v5539_v38 }
0x1d8e   :  { %v5623_v46 = vmul.f32 %v5615_v5, %v5531_v54 }
0x1d8f   :  { %v5631_v23 = vpack.c.bf16 %v5625_v27, %v5624_v44 }
0x1d90   :  { %v5630_v11 = vpack.c.bf16 %v5623_v46, %v5622_v61 }
0x1d92   :  { %6623 = vmatprep.mubr.msk.bf16.mxu1 %vm2884_vm14, %v5630_v11 }
0x1d93   :  { %6624 = vmatmul.mubr.msk.bf16.vlgmr.msra.gmra.mrb[108].mxu1 %vm2884_vm14, %v5631_v23 }
0x1daa   :  { %v6613_v9 = vpop.f32.mrb[112].mxu0 }
0x1dab   :  { %v5552_v16 = vadd.f32 %v6613_v9, %v5926_v14  ;;  %v5543_v52 = vpop.f32.mrb[113].mxu0 }
0x1dac   :  { %v5544_v56 = vadd.f32 %v5926_v14, %v5543_v52  ;;  %v6614_v2 = vpop.f32.mrb[114].mxu0 }
0x1dad   :  { %v5564_v47 = vmul.f32 %v5552_v16, %v5552_v16  ;;  %v5555_v55 = vadd.f32 %v6614_v2, %v5926_v14  ;;  %v5546_v24 = vpop.f32.mrb[115].mxu0 }
0x1dae   :  { %v5562_v7 = vmul.f32 %v5544_v56, %v5544_v56  ;;  %v5547_v49 = vadd.f32 %v5926_v14, %v5546_v24 }
0x1daf   :  { %v5572_v3 = vmul.f32 %v5564_v47, %v5552_v16  ;;  %v5565_v59 = vmul.f32 %v5555_v55, %v5555_v55 }
0x1db0   :  { %v5570_v0 = vmul.f32 %v5562_v7, %v5544_v56  ;;  %v5563_v28 = vmul.f32 %v5547_v49, %v5547_v49 }
0x1db1   :  { %v5580_v13 = vmul.f32 0.044715, %v5572_v3  ;;  %v5573_v38 = vmul.f32 %v5565_v59, %v5555_v55 }
0x1db2   :  { %v5578_v8 = vmul.f32 0.044715, %v5570_v0  ;;  %v5571_v12 = vmul.f32 %v5563_v28, %v5547_v49 }
0x1db3   :  { %v5588_v54 = vadd.f32 %v5580_v13, %v5552_v16  ;;  %v5581_v51 = vmul.f32 0.044715, %v5573_v38 }
0x1db4   :  { %v5586_v34 = vadd.f32 %v5578_v8, %v5544_v56  ;;  %v5579_v53 = vmul.f32 0.044715, %v5571_v12 }
0x1db5   :  { %v5596_v58 = vmul.f32 0.7978846, %v5588_v54  ;;  %v5589_v15 = vadd.f32 %v5581_v51, %v5555_v55 }
0x1db6   :  { %v5594_v17 = vmul.f32 0.7978846, %v5586_v34  ;;  %v5587_v63 = vadd.f32 %v5579_v53, %v5547_v49 }
0x1db7   :  { %7106 = vtanh.f32 %v5596_v58  ;;  %v5597_v39 = vmul.f32 0.7978846, %v5589_v15 }
0x1db8   :  { %7108 = vtanh.f32 %v5594_v17  ;;  %v5595_v14 = vmul.f32 0.7978846, %v5587_v63 }
0x1db9   :  { %7110 = vtanh.f32 %v5597_v39 }
0x1dba   :  { %7112 = vtanh.f32 %v5595_v14 }
0x1dc1   :  { %v7107_v60 = vpop.eup %7106 }
0x1dc2   :  { %v7109_v43 = vpop.eup %7108  ;;  %v5612_v18 = vadd.f32 1.0, %v7107_v60 }
0x1dc3   :  { %v7111_v36 = vpop.eup %7110  ;;  %v5610_v30 = vadd.f32 1.0, %v7109_v43 }
0x1dc4   :  { %v7113_v20 = vpop.eup %7112  ;;  %v5620_v29 = vmul.f32 0.5, %v5612_v18  ;;  %v5613_v35 = vadd.f32 1.0, %v7111_v36 }
0x1dc5   :  { %v5618_v1 = vmul.f32 0.5, %v5610_v30  ;;  %v5611_v62 = vadd.f32 1.0, %v7113_v20 }
0x1dc6   :  { %v5621_v33 = vmul.f32 0.5, %v5613_v35  ;;  %v5628_v22 = vmul.f32 %v5620_v29, %v5552_v16 }
0x1dc7   :  { %v5619_v25 = vmul.f32 0.5, %v5611_v62  ;;  %v5626_v40 = vmul.f32 %v5618_v1, %v5544_v56 }
0x1dc8   :  { %v5629_v26 = vmul.f32 %v5621_v33, %v5555_v55 }
0x1dc9   :  { %v5627_v41 = vmul.f32 %v5619_v25, %v5547_v49 }
0x1dca   :  { %v5633_v4 = vpack.c.bf16 %v5629_v26, %v5628_v22 }
0x1dcb   :  { %v5632_v37 = vpack.c.bf16 %v5627_v41, %v5626_v40 }
0x1dcd   :  { %6627 = vmatprep.mubr.msk.bf16.mxu1 %vm2884_vm14, %v5632_v37 }
0x1dce   :  { %6628 = vmatmul.mubr.msk.bf16.gmra.mrb[112].mxu1 %vm2884_vm14, %v5633_v4 }
0x1e66   :  { %v6625_v19 = vpop.f32.mrb[108].mxu1 }
0x1e67   :  { %v5737_v10 = vadd.f32 %v6625_v19, %v9041_v50  ;;  %v5704_v5 = vpop.f32.mrb[109].mxu1 }
0x1e68   :  { %v5735_v44 = vadd.f32 %v5704_v5, %v9038_v31  ;;  %v6626_v27 = vpop.f32.mrb[110].mxu1 }
0x1e69   :  { %v5749_v61 = vadd.f32 %v5941_v48, %v5737_v10  ;;  %v5738_v46 = vadd.f32 %v6626_v27, %v9050_v21  ;;  %v5707_v23 = vpop.f32.mrb[111].mxu1 }
0x1e6a   :  { %v5747_v11 = vadd.f32 %v5941_v48, %v5735_v44  ;;  %v5736_v9 = vadd.f32 %v5707_v23, %v9044_v45 }
0x1e6b   :  { %5757 = vst.msk [vmem:[%s9218_s8 + $0x10] sm:$0xff] %vm222_vm1, %v5749_v61  ;;  %v5750_v16 = vadd.f32 %v5941_v48, %v5738_v46 }
0x1e6c   :  { %5755 = vst.msk [vmem:[%s9218_s8] sm:$0xff] %vm222_vm1, %v5747_v11  ;;  %v5748_v31 = vadd.f32 %v5941_v48, %v5736_v9 }
0x1e6d   :  { %5758 = vst.msk [vmem:[%s9218_s8 + $0x18] sm:$0xff] %vm222_vm1, %v5750_v16 }
0x1e6e   :  { %5756 = vst.msk [vmem:[%s9218_s8 + $0x8] sm:$0xff] %vm222_vm1, %v5748_v31 }
0x1ea1   :  { %v6629_v50 = vpop.f32.mrb[112].mxu1 }
0x1ea2   :  { %v5741_v45 = vadd.f32 %v6629_v50, %v9058_v6  ;;  %v5720_v21 = vpop.f32.mrb[113].mxu1 }
0x1ea3   :  { %v5739_v52 = vadd.f32 %v5720_v21, %v9061_v57  ;;  %v6630_v56 = vpop.f32.mrb[114].mxu1 }
0x1ea4   :  { %v5753_v2 = vadd.f32 %v5941_v48, %v5741_v45  ;;  %v5742_v47 = vadd.f32 %v6630_v56, %v9064_v32  ;;  %v5723_v55 = vpop.f32.mrb[115].mxu1 }
0x1ea5   :  { %v5751_v24 = vadd.f32 %v5941_v48, %v5739_v52  ;;  %v5740_v7 = vadd.f32 %v5723_v55, %v9066_v42 }
0x1ea6   :  { %5761 = vst.msk [vmem:[%s9218_s8 + $0x30] sm:$0xff] %vm222_vm1, %v5753_v2  ;;  %v5754_v49 = vadd.f32 %v5941_v48, %v5742_v47 }
0x1ea7   :  { %5759 = vst.msk [vmem:[%s9218_s8 + $0x20] sm:$0xff] %vm222_vm1, %v5751_v24  ;;  %v5752_v6 = vadd.f32 %v5941_v48, %v5740_v7 }
0x1ea8   :  { %5762 = vst.msk [vmem:[%s9218_s8 + $0x38] sm:$0xff] %vm222_vm1, %v5754_v49 }
0x1ea9   :  { %5760 = vst.msk [vmem:[%s9218_s8 + $0x28] sm:$0xff] %vm222_vm1, %v5752_v6 }

</bundles_post_ra>
